<compile_context>
chip_gen: v6e
topology: v6e:2x2x1
jax: 0.10.0
libtpu: 0.0.40
codegen_flags: <defaults>
</compile_context>

<pallas_src>
import jax
import jax.numpy as jnp
from jax.experimental import pallas as pl
from jax.experimental.pallas import tpu as pltpu  # noqa: F401  (not needed: no grid/scratch)


# ----------------------------------------------------------------------------
# Fully fused EpisodicMemory forward kernel
# ----------------------------------------------------------------------------
def episodic_memory_kernel(facts_ref, q_ref, m_ref,
                           z1w_ref, z1b_ref, z2w_ref, z2b_ref,
                           wrf_ref, wwf_ref, urc_ref, uuc_ref,
                           br_ref, bw_ref, bu_ref,
                           wmm_ref, wmc_ref, wmq_ref, bm_ref,
                           mem_ref, g_ref):
    B, S, H = facts_ref.shape
    f3 = facts_ref[...]                         # (B, S, H)
    q = q_ref[...]                              # (B, H)
    m = m_ref[...]                              # (B, H)
    qb = q[:, None, :]                          # (B, 1, H) broadcast over sentences
    mb = m[:, None, :]

    # ---- attention gate: z = [f*q, f*m, |f-q|, |f-m|] -> tanh(z1) -> z2 ----
    z3 = jnp.concatenate(
        [f3 * qb, f3 * mb, jnp.abs(f3 - qb), jnp.abs(f3 - mb)], axis=-1)   # (B,S,4H)
    hid = jnp.tanh(
        jnp.dot(z3.reshape(B * S, 4 * H), z1w_ref[...],
                preferred_element_type=jnp.float32) + z1b_ref[...])        # (B*S,H)
    hid3 = hid.reshape(B, S, H)

    z2w = z2w_ref[...]                          # (1, H)
    cols = [jnp.sum(hid3[:, s, :] * z2w, axis=-1, keepdims=True)           # (B,1) each
            for s in range(S)]
    scores = jnp.concatenate(cols, axis=-1) + z2b_ref[...]                 # (B,S)

    # softmax over sentences (lane reduction)
    mx = jnp.max(scores, axis=-1, keepdims=True)
    e = jnp.exp(scores - mx)
    G = e / jnp.sum(e, axis=-1, keepdims=True)                             # (B,S)
    g_ref[...] = G.astype(g_ref.dtype)

    # ---- fact-path GRU preactivations for ALL sentences (loop-invariant) ----
    f2 = f3.reshape(B * S, H)
    pre_r = (jnp.dot(f2, wrf_ref[...], preferred_element_type=jnp.float32)
             + br_ref[...]).reshape(B, S, H)    # Wr(fact) + (Wr_b + Ur_b)
    pre_w = (jnp.dot(f2, wwf_ref[...], preferred_element_type=jnp.float32)
             + bw_ref[...]).reshape(B, S, H)    # W(fact) + W_b

    urc = urc_ref[...]                          # Ur^T  (H,H)
    uuc = uuc_ref[...]                          # U^T   (H,H)
    bu = bu_ref[...]                            # U_b   (1,H)

    # ---- attention-GRU recurrence, fully unrolled (serial by construction) ----
    C = jnp.zeros((B, H), jnp.float32)
    for s in range(S):
        g = G[:, s:s + 1]                       # (B,1) -> broadcasts over H lanes
        r = jax.nn.sigmoid(
            pre_r[:, s, :] + jnp.dot(C, urc, preferred_element_type=jnp.float32))
        h_t = jnp.tanh(
            pre_w[:, s, :]
            + r * (jnp.dot(C, uuc, preferred_element_type=jnp.float32) + bu))
        C = g * h_t + (1.0 - g) * C

    # ---- next memory: relu(Linear([prevM, C, questions])), computed once ----
    nm = (jnp.dot(m, wmm_ref[...], preferred_element_type=jnp.float32)
          + jnp.dot(C, wmc_ref[...], preferred_element_type=jnp.float32)
          + jnp.dot(q, wmq_ref[...], preferred_element_type=jnp.float32)
          + bm_ref[...])
    mem_ref[...] = jnp.maximum(nm, 0.0).astype(mem_ref.dtype)


# ----------------------------------------------------------------------------
# Parameter construction (raw torch-style params + one-time repack/transpose)
# ----------------------------------------------------------------------------
def xavier_normal(key, shape):
    fan_out, fan_in = shape
    std = (2.0 / (fan_in + fan_out)) ** 0.5
    return std * jax.random.normal(key, shape, dtype=jnp.float32)


def init_raw_params(key, H):
    ks = jax.random.split(key, 14)
    return {
        "Wr_w": xavier_normal(ks[0], (H, H)),
        "Wr_b": 0.01 * jax.random.normal(ks[1], (H,), dtype=jnp.float32),
        "Ur_w": xavier_normal(ks[2], (H, H)),
        "Ur_b": 0.01 * jax.random.normal(ks[3], (H,), dtype=jnp.float32),
        "W_w": xavier_normal(ks[4], (H, H)),
        "W_b": 0.01 * jax.random.normal(ks[5], (H,), dtype=jnp.float32),
        "U_w": xavier_normal(ks[6], (H, H)),
        "U_b": 0.01 * jax.random.normal(ks[7], (H,), dtype=jnp.float32),
        "z1_w": xavier_normal(ks[8], (H, 4 * H)),
        "z1_b": 0.01 * jax.random.normal(ks[9], (H,), dtype=jnp.float32),
        "z2_w": xavier_normal(ks[10], (1, H)),
        "z2_b": 0.01 * jax.random.normal(ks[11], (1,), dtype=jnp.float32),
        "next_mem_w": xavier_normal(ks[12], (H, 3 * H)),
        "next_mem_b": 0.01 * jax.random.normal(ks[13], (H,), dtype=jnp.float32),
    }


def prepare_params(raw):
    """One-time: transpose weights to (in, out), fuse biases, split next_mem.

    No zero padding anywhere — everything stays at its true H width.
    """
    f32 = jnp.float32
    H = raw["Wr_w"].shape[0]
    wm_t = raw["next_mem_w"].T.astype(f32)          # (3H, H); concat order [prevM|C|q]
    return {
        "z1w": raw["z1_w"].T.astype(f32),           # (4H, H)
        "z1b": raw["z1_b"].reshape(1, H).astype(f32),
        "z2w": raw["z2_w"].reshape(1, H).astype(f32),
        "z2b": raw["z2_b"].reshape(1, 1).astype(f32),
        "wrf": raw["Wr_w"].T.astype(f32),           # fact -> r
        "wwf": raw["W_w"].T.astype(f32),            # fact -> h~
        "urc": raw["Ur_w"].T.astype(f32),           # C -> r
        "uuc": raw["U_w"].T.astype(f32),            # C -> h~
        "br": (raw["Wr_b"] + raw["Ur_b"]).reshape(1, H).astype(f32),
        "bw": raw["W_b"].reshape(1, H).astype(f32),
        "bu": raw["U_b"].reshape(1, H).astype(f32),
        "wm_m": wm_t[0:H, :],                       # prevM block
        "wm_c": wm_t[H:2 * H, :],                   # C block
        "wm_q": wm_t[2 * H:3 * H, :],               # questions block
        "bm": raw["next_mem_b"].reshape(1, H).astype(f32),
    }


# ----------------------------------------------------------------------------
# Forward wrapper: ONE pallas_call, no grid, whole arrays resident in VMEM
# ----------------------------------------------------------------------------
def episodic_memory_forward(facts, questions, prevM, pp):
    """facts: (B,S,H), questions/prevM: (B,1,H). Returns (next_mem (B,1,H), G (B,S))."""
    B, S, H = facts.shape
    q = questions[:, 0, :]          # metadata-only squeeze
    m = prevM[:, 0, :]

    next_mem, G = pl.pallas_call(
        episodic_memory_kernel,
        out_shape=(jax.ShapeDtypeStruct((B, H), jnp.float32),
                   jax.ShapeDtypeStruct((B, S), jnp.float32)),
    )(facts, q, m,
      pp["z1w"], pp["z1b"], pp["z2w"], pp["z2b"],
      pp["wrf"], pp["wwf"], pp["urc"], pp["uuc"],
      pp["br"], pp["bw"], pp["bu"],
      pp["wm_m"], pp["wm_c"], pp["wm_q"], pp["bm"])

    return next_mem[:, None, :], G


# ----------------------------------------------------------------------------
# Pure-JAX reference (mirrors the PyTorch module exactly)
# ----------------------------------------------------------------------------
def episodic_memory_ref(facts, questions, prevM, p):
    B, S, H = facts.shape
    qb = jnp.broadcast_to(questions, facts.shape)
    mb = jnp.broadcast_to(prevM, facts.shape)
    z = jnp.concatenate(
        [facts * qb, facts * mb, jnp.abs(facts - qb), jnp.abs(facts - mb)], axis=2
    ).reshape(-1, 4 * H)
    Gh = jnp.tanh(z @ p["z1_w"].T + p["z1_b"])
    G = (Gh @ p["z2_w"].T + p["z2_b"]).reshape(B, S)
    G = jax.nn.softmax(G, axis=1)

    C = jnp.zeros((B, H), jnp.float32)
    for s in range(S):
        fact = facts[:, s, :]
        g = G[:, s][:, None]
        r = jax.nn.sigmoid(fact @ p["Wr_w"].T + p["Wr_b"] + C @ p["Ur_w"].T + p["Ur_b"])
        h_tilda = jnp.tanh(fact @ p["W_w"].T + p["W_b"] + r * (C @ p["U_w"].T + p["U_b"]))
        C = g * h_tilda + (1.0 - g) * C

    concat = jnp.concatenate([prevM[:, 0, :], C, questions[:, 0, :]], axis=1)
    next_mem = jax.nn.relu(concat @ p["next_mem_w"].T + p["next_mem_b"])
    return next_mem[:, None, :], G


if __name__ == "__main__":
    B, S, H = 8, 8, 32
    key = jax.random.PRNGKey(0)
    kf, kq, km, kp = jax.random.split(key, 4)

    facts = jax.random.normal(kf, (B, S, H), dtype=jnp.float32)
    questions = jax.random.normal(kq, (B, 1, H), dtype=jnp.float32)
    prevM = jax.random.normal(km, (B, 1, H), dtype=jnp.float32)

    raw = init_raw_params(kp, H)
    pp = prepare_params(raw)                 # one-time weight repack/transpose

    fwd = jax.jit(episodic_memory_forward)
    next_mem, G = fwd(facts, questions, prevM, pp)
    next_mem = jax.block_until_ready(next_mem)
    G = jax.block_until_ready(G)

    nm_ref, G_ref = episodic_memory_ref(facts, questions, prevM, raw)

    assert next_mem.shape == (B, 1, H)
    assert G.shape == (B, S)
    assert jnp.allclose(G, G_ref, atol=1e-4, rtol=1e-4), "gate mismatch vs reference"
    assert jnp.allclose(next_mem, nm_ref, atol=1e-4, rtol=1e-4), "next_mem mismatch"

    print("KERNEL_OK")
</pallas_src>

<mosaic_0001>
module attributes {stable_mosaic.version = 11 : i64} {
  func.func @episodic_memory_kernel(%arg0: memref<8x8x32xf32, #tpu.memory_space<vmem>>, %arg1: memref<8x32xf32, #tpu.memory_space<vmem>>, %arg2: memref<8x32xf32, #tpu.memory_space<vmem>>, %arg3: memref<128x32xf32, #tpu.memory_space<vmem>>, %arg4: memref<1x32xf32, #tpu.memory_space<vmem>>, %arg5: memref<1x32xf32, #tpu.memory_space<vmem>>, %arg6: memref<1x1xf32, #tpu.memory_space<vmem>>, %arg7: memref<32x32xf32, #tpu.memory_space<vmem>>, %arg8: memref<32x32xf32, #tpu.memory_space<vmem>>, %arg9: memref<32x32xf32, #tpu.memory_space<vmem>>, %arg10: memref<32x32xf32, #tpu.memory_space<vmem>>, %arg11: memref<1x32xf32, #tpu.memory_space<vmem>>, %arg12: memref<1x32xf32, #tpu.memory_space<vmem>>, %arg13: memref<1x32xf32, #tpu.memory_space<vmem>>, %arg14: memref<32x32xf32, #tpu.memory_space<vmem>>, %arg15: memref<32x32xf32, #tpu.memory_space<vmem>>, %arg16: memref<32x32xf32, #tpu.memory_space<vmem>>, %arg17: memref<1x32xf32, #tpu.memory_space<vmem>>, %arg18: memref<8x32xf32, #tpu.memory_space<vmem>>, %arg19: memref<8x8xf32, #tpu.memory_space<vmem>>) attributes {dimension_semantics = [], scalar_prefetch = 0 : i64, scratch_operands = 0 : i64, tpu.core_type = #tpu.core_type<tc>} {
    %c0 = arith.constant 0 : index
    %c0_0 = arith.constant 0 : index
    %c0_1 = arith.constant 0 : index
    %0 = vector.load %arg0[%c0, %c0_0, %c0_1] : memref<8x8x32xf32, #tpu.memory_space<vmem>>, vector<8x8x32xf32>
    %c0_2 = arith.constant 0 : index
    %c0_3 = arith.constant 0 : index
    %1 = vector.load %arg1[%c0_2, %c0_3] : memref<8x32xf32, #tpu.memory_space<vmem>>, vector<8x32xf32>
    %c0_4 = arith.constant 0 : index
    %c0_5 = arith.constant 0 : index
    %2 = vector.load %arg2[%c0_4, %c0_5] : memref<8x32xf32, #tpu.memory_space<vmem>>, vector<8x32xf32>
    %3 = vector.shape_cast %1 : vector<8x32xf32> to vector<8x1x32xf32>
    %4 = vector.shape_cast %2 : vector<8x32xf32> to vector<8x1x32xf32>
    %5 = vector.broadcast %3 : vector<8x1x32xf32> to vector<8x8x32xf32>
    %6 = arith.mulf %0, %5 : vector<8x8x32xf32>
    %7 = vector.broadcast %4 : vector<8x1x32xf32> to vector<8x8x32xf32>
    %8 = arith.mulf %0, %7 : vector<8x8x32xf32>
    %9 = vector.broadcast %3 : vector<8x1x32xf32> to vector<8x8x32xf32>
    %10 = arith.subf %0, %9 : vector<8x8x32xf32>
    %11 = math.absf %10 : vector<8x8x32xf32>
    %12 = vector.broadcast %4 : vector<8x1x32xf32> to vector<8x8x32xf32>
    %13 = arith.subf %0, %12 : vector<8x8x32xf32>
    %14 = math.absf %13 : vector<8x8x32xf32>
    %15 = tpu.concatenate %6, %8, %11, %14 in 2 : vector<8x8x32xf32>, vector<8x8x32xf32>, vector<8x8x32xf32>, vector<8x8x32xf32> -> vector<8x8x128xf32>
    %16 = vector.shape_cast %15 : vector<8x8x128xf32> to vector<64x128xf32>
    %c0_6 = arith.constant 0 : index
    %c0_7 = arith.constant 0 : index
    %17 = vector.load %arg3[%c0_6, %c0_7] : memref<128x32xf32, #tpu.memory_space<vmem>>, vector<128x32xf32>
    %cst = arith.constant dense<0.000000e+00> : vector<64x32xf32>
    %18 = tpu.matmul %16, %17, %cst {dimension_numbers = #tpu.dot_dimension_numbers<[1], [0], [0], [1], [0, 0, 1, 1], [], []>} : vector<64x128xf32>, vector<128x32xf32>, vector<64x32xf32> -> vector<64x32xf32>
    %c0_8 = arith.constant 0 : index
    %c0_9 = arith.constant 0 : index
    %19 = vector.load %arg4[%c0_8, %c0_9] : memref<1x32xf32, #tpu.memory_space<vmem>>, vector<1x32xf32>
    %20 = vector.broadcast %19 : vector<1x32xf32> to vector<64x32xf32>
    %21 = arith.addf %18, %20 : vector<64x32xf32>
    %22 = math.tanh %21 : vector<64x32xf32>
    %23 = vector.shape_cast %22 : vector<64x32xf32> to vector<8x8x32xf32>
    %c0_10 = arith.constant 0 : index
    %c0_11 = arith.constant 0 : index
    %24 = vector.load %arg5[%c0_10, %c0_11] : memref<1x32xf32, #tpu.memory_space<vmem>>, vector<1x32xf32>
    %25 = vector.extract_strided_slice %23 {offsets = [0, 0, 0], sizes = [8, 1, 32], strides = [1, 1, 1]} : vector<8x8x32xf32> to vector<8x1x32xf32>
    %26 = vector.shape_cast %25 : vector<8x1x32xf32> to vector<8x32xf32>
    %27 = vector.broadcast %24 : vector<1x32xf32> to vector<8x32xf32>
    %28 = arith.mulf %26, %27 : vector<8x32xf32>
    %cst_12 = arith.constant dense<0.000000e+00> : vector<8xf32>
    %29 = vector.multi_reduction <add>, %28, %cst_12 [1] : vector<8x32xf32> to vector<8xf32>
    %30 = vector.shape_cast %29 : vector<8xf32> to vector<8x1xf32>
    %31 = vector.extract_strided_slice %23 {offsets = [0, 1, 0], sizes = [8, 1, 32], strides = [1, 1, 1]} : vector<8x8x32xf32> to vector<8x1x32xf32>
    %32 = vector.shape_cast %31 : vector<8x1x32xf32> to vector<8x32xf32>
    %33 = vector.broadcast %24 : vector<1x32xf32> to vector<8x32xf32>
    %34 = arith.mulf %32, %33 : vector<8x32xf32>
    %cst_13 = arith.constant dense<0.000000e+00> : vector<8xf32>
    %35 = vector.multi_reduction <add>, %34, %cst_13 [1] : vector<8x32xf32> to vector<8xf32>
    %36 = vector.shape_cast %35 : vector<8xf32> to vector<8x1xf32>
    %37 = vector.extract_strided_slice %23 {offsets = [0, 2, 0], sizes = [8, 1, 32], strides = [1, 1, 1]} : vector<8x8x32xf32> to vector<8x1x32xf32>
    %38 = vector.shape_cast %37 : vector<8x1x32xf32> to vector<8x32xf32>
    %39 = vector.broadcast %24 : vector<1x32xf32> to vector<8x32xf32>
    %40 = arith.mulf %38, %39 : vector<8x32xf32>
    %cst_14 = arith.constant dense<0.000000e+00> : vector<8xf32>
    %41 = vector.multi_reduction <add>, %40, %cst_14 [1] : vector<8x32xf32> to vector<8xf32>
    %42 = vector.shape_cast %41 : vector<8xf32> to vector<8x1xf32>
    %43 = vector.extract_strided_slice %23 {offsets = [0, 3, 0], sizes = [8, 1, 32], strides = [1, 1, 1]} : vector<8x8x32xf32> to vector<8x1x32xf32>
    %44 = vector.shape_cast %43 : vector<8x1x32xf32> to vector<8x32xf32>
    %45 = vector.broadcast %24 : vector<1x32xf32> to vector<8x32xf32>
    %46 = arith.mulf %44, %45 : vector<8x32xf32>
    %cst_15 = arith.constant dense<0.000000e+00> : vector<8xf32>
    %47 = vector.multi_reduction <add>, %46, %cst_15 [1] : vector<8x32xf32> to vector<8xf32>
    %48 = vector.shape_cast %47 : vector<8xf32> to vector<8x1xf32>
    %49 = vector.extract_strided_slice %23 {offsets = [0, 4, 0], sizes = [8, 1, 32], strides = [1, 1, 1]} : vector<8x8x32xf32> to vector<8x1x32xf32>
    %50 = vector.shape_cast %49 : vector<8x1x32xf32> to vector<8x32xf32>
    %51 = vector.broadcast %24 : vector<1x32xf32> to vector<8x32xf32>
    %52 = arith.mulf %50, %51 : vector<8x32xf32>
    %cst_16 = arith.constant dense<0.000000e+00> : vector<8xf32>
    %53 = vector.multi_reduction <add>, %52, %cst_16 [1] : vector<8x32xf32> to vector<8xf32>
    %54 = vector.shape_cast %53 : vector<8xf32> to vector<8x1xf32>
    %55 = vector.extract_strided_slice %23 {offsets = [0, 5, 0], sizes = [8, 1, 32], strides = [1, 1, 1]} : vector<8x8x32xf32> to vector<8x1x32xf32>
    %56 = vector.shape_cast %55 : vector<8x1x32xf32> to vector<8x32xf32>
    %57 = vector.broadcast %24 : vector<1x32xf32> to vector<8x32xf32>
    %58 = arith.mulf %56, %57 : vector<8x32xf32>
    %cst_17 = arith.constant dense<0.000000e+00> : vector<8xf32>
    %59 = vector.multi_reduction <add>, %58, %cst_17 [1] : vector<8x32xf32> to vector<8xf32>
    %60 = vector.shape_cast %59 : vector<8xf32> to vector<8x1xf32>
    %61 = vector.extract_strided_slice %23 {offsets = [0, 6, 0], sizes = [8, 1, 32], strides = [1, 1, 1]} : vector<8x8x32xf32> to vector<8x1x32xf32>
    %62 = vector.shape_cast %61 : vector<8x1x32xf32> to vector<8x32xf32>
    %63 = vector.broadcast %24 : vector<1x32xf32> to vector<8x32xf32>
    %64 = arith.mulf %62, %63 : vector<8x32xf32>
    %cst_18 = arith.constant dense<0.000000e+00> : vector<8xf32>
    %65 = vector.multi_reduction <add>, %64, %cst_18 [1] : vector<8x32xf32> to vector<8xf32>
    %66 = vector.shape_cast %65 : vector<8xf32> to vector<8x1xf32>
    %67 = vector.extract_strided_slice %23 {offsets = [0, 7, 0], sizes = [8, 1, 32], strides = [1, 1, 1]} : vector<8x8x32xf32> to vector<8x1x32xf32>
    %68 = vector.shape_cast %67 : vector<8x1x32xf32> to vector<8x32xf32>
    %69 = vector.broadcast %24 : vector<1x32xf32> to vector<8x32xf32>
    %70 = arith.mulf %68, %69 : vector<8x32xf32>
    %cst_19 = arith.constant dense<0.000000e+00> : vector<8xf32>
    %71 = vector.multi_reduction <add>, %70, %cst_19 [1] : vector<8x32xf32> to vector<8xf32>
    %72 = vector.shape_cast %71 : vector<8xf32> to vector<8x1xf32>
    %73 = tpu.concatenate %30, %36, %42, %48, %54, %60, %66, %72 in 1 : vector<8x1xf32>, vector<8x1xf32>, vector<8x1xf32>, vector<8x1xf32>, vector<8x1xf32>, vector<8x1xf32>, vector<8x1xf32>, vector<8x1xf32> -> vector<8x8xf32>
    %c0_20 = arith.constant 0 : index
    %c0_21 = arith.constant 0 : index
    %74 = vector.load %arg6[%c0_20, %c0_21] : memref<1x1xf32, #tpu.memory_space<vmem>>, vector<1x1xf32>
    %75 = vector.broadcast %74 : vector<1x1xf32> to vector<8x8xf32>
    %76 = arith.addf %73, %75 : vector<8x8xf32>
    %cst_22 = arith.constant dense<0xFF800000> : vector<8xf32>
    %77 = vector.multi_reduction <maximumf>, %76, %cst_22 [1] : vector<8x8xf32> to vector<8xf32>
    %78 = vector.shape_cast %77 : vector<8xf32> to vector<8x1xf32>
    %79 = vector.broadcast %78 : vector<8x1xf32> to vector<8x8xf32>
    %80 = arith.subf %76, %79 : vector<8x8xf32>
    %81 = math.exp %80 : vector<8x8xf32>
    %cst_23 = arith.constant dense<0.000000e+00> : vector<8xf32>
    %82 = vector.multi_reduction <add>, %81, %cst_23 [1] : vector<8x8xf32> to vector<8xf32>
    %83 = vector.shape_cast %82 : vector<8xf32> to vector<8x1xf32>
    %84 = vector.broadcast %83 : vector<8x1xf32> to vector<8x8xf32>
    %85 = arith.divf %81, %84 : vector<8x8xf32>
    %c0_24 = arith.constant 0 : index
    %c0_25 = arith.constant 0 : index
    %86 = vector.load %arg19[%c0_24, %c0_25] : memref<8x8xf32, #tpu.memory_space<vmem>>, vector<8x8xf32>
    tpu.vector_store %arg19[%c0_24, %c0_25], %85 {strides = array<i32>} : memref<8x8xf32, #tpu.memory_space<vmem>>, vector<8x8xf32>,
    %87 = vector.shape_cast %0 : vector<8x8x32xf32> to vector<64x32xf32>
    %c0_26 = arith.constant 0 : index
    %c0_27 = arith.constant 0 : index
    %88 = vector.load %arg7[%c0_26, %c0_27] : memref<32x32xf32, #tpu.memory_space<vmem>>, vector<32x32xf32>
    %cst_28 = arith.constant dense<0.000000e+00> : vector<64x32xf32>
    %89 = tpu.matmul %87, %88, %cst_28 {dimension_numbers = #tpu.dot_dimension_numbers<[1], [0], [0], [1], [0, 0, 1, 1], [], []>} : vector<64x32xf32>, vector<32x32xf32>, vector<64x32xf32> -> vector<64x32xf32>
    %c0_29 = arith.constant 0 : index
    %c0_30 = arith.constant 0 : index
    %90 = vector.load %arg11[%c0_29, %c0_30] : memref<1x32xf32, #tpu.memory_space<vmem>>, vector<1x32xf32>
    %91 = vector.broadcast %90 : vector<1x32xf32> to vector<64x32xf32>
    %92 = arith.addf %89, %91 : vector<64x32xf32>
    %93 = vector.shape_cast %92 : vector<64x32xf32> to vector<8x8x32xf32>
    %c0_31 = arith.constant 0 : index
    %c0_32 = arith.constant 0 : index
    %94 = vector.load %arg8[%c0_31, %c0_32] : memref<32x32xf32, #tpu.memory_space<vmem>>, vector<32x32xf32>
    %cst_33 = arith.constant dense<0.000000e+00> : vector<64x32xf32>
    %95 = tpu.matmul %87, %94, %cst_33 {dimension_numbers = #tpu.dot_dimension_numbers<[1], [0], [0], [1], [0, 0, 1, 1], [], []>} : vector<64x32xf32>, vector<32x32xf32>, vector<64x32xf32> -> vector<64x32xf32>
    %c0_34 = arith.constant 0 : index
    %c0_35 = arith.constant 0 : index
    %96 = vector.load %arg12[%c0_34, %c0_35] : memref<1x32xf32, #tpu.memory_space<vmem>>, vector<1x32xf32>
    %97 = vector.broadcast %96 : vector<1x32xf32> to vector<64x32xf32>
    %98 = arith.addf %95, %97 : vector<64x32xf32>
    %99 = vector.shape_cast %98 : vector<64x32xf32> to vector<8x8x32xf32>
    %c0_36 = arith.constant 0 : index
    %c0_37 = arith.constant 0 : index
    %100 = vector.load %arg9[%c0_36, %c0_37] : memref<32x32xf32, #tpu.memory_space<vmem>>, vector<32x32xf32>
    %c0_38 = arith.constant 0 : index
    %c0_39 = arith.constant 0 : index
    %101 = vector.load %arg10[%c0_38, %c0_39] : memref<32x32xf32, #tpu.memory_space<vmem>>, vector<32x32xf32>
    %c0_40 = arith.constant 0 : index
    %c0_41 = arith.constant 0 : index
    %102 = vector.load %arg13[%c0_40, %c0_41] : memref<1x32xf32, #tpu.memory_space<vmem>>, vector<1x32xf32>
    %cst_42 = arith.constant 0.000000e+00 : f32
    %103 = vector.broadcast %cst_42 : f32 to vector<8x32xf32>
    %104 = vector.extract_strided_slice %85 {offsets = [0, 0], sizes = [8, 1], strides = [1, 1]} : vector<8x8xf32> to vector<8x1xf32>
    %105 = vector.extract_strided_slice %93 {offsets = [0, 0, 0], sizes = [8, 1, 32], strides = [1, 1, 1]} : vector<8x8x32xf32> to vector<8x1x32xf32>
    %106 = vector.shape_cast %105 : vector<8x1x32xf32> to vector<8x32xf32>
    %cst_43 = arith.constant dense<0.000000e+00> : vector<8x32xf32>
    %107 = tpu.matmul %103, %100, %cst_43 {dimension_numbers = #tpu.dot_dimension_numbers<[1], [0], [0], [1], [0, 0, 1, 1], [], []>} : vector<8x32xf32>, vector<32x32xf32>, vector<8x32xf32> -> vector<8x32xf32>
    %108 = arith.addf %106, %107 : vector<8x32xf32>
    %109 = arith.negf %108 : vector<8x32xf32>
    %110 = math.exp %109 : vector<8x32xf32>
    %cst_44 = arith.constant 1.000000e+00 : f32
    %111 = vector.broadcast %cst_44 : f32 to vector<8x32xf32>
    %112 = arith.addf %111, %110 : vector<8x32xf32>
    %113 = arith.divf %111, %112 : vector<8x32xf32>
    %114 = vector.extract_strided_slice %99 {offsets = [0, 0, 0], sizes = [8, 1, 32], strides = [1, 1, 1]} : vector<8x8x32xf32> to vector<8x1x32xf32>
    %115 = vector.shape_cast %114 : vector<8x1x32xf32> to vector<8x32xf32>
    %cst_45 = arith.constant dense<0.000000e+00> : vector<8x32xf32>
    %116 = tpu.matmul %103, %101, %cst_45 {dimension_numbers = #tpu.dot_dimension_numbers<[1], [0], [0], [1], [0, 0, 1, 1], [], []>} : vector<8x32xf32>, vector<32x32xf32>, vector<8x32xf32> -> vector<8x32xf32>
    %117 = vector.broadcast %102 : vector<1x32xf32> to vector<8x32xf32>
    %118 = arith.addf %116, %117 : vector<8x32xf32>
    %119 = arith.mulf %113, %118 : vector<8x32xf32>
    %120 = arith.addf %115, %119 : vector<8x32xf32>
    %121 = math.tanh %120 : vector<8x32xf32>
    %122 = vector.broadcast %104 : vector<8x1xf32> to vector<8x32xf32>
    %123 = arith.mulf %122, %121 : vector<8x32xf32>
    %cst_46 = arith.constant 1.000000e+00 : f32
    %124 = vector.broadcast %cst_46 : f32 to vector<8x1xf32>
    %125 = arith.subf %124, %104 : vector<8x1xf32>
    %126 = vector.broadcast %125 : vector<8x1xf32> to vector<8x32xf32>
    %127 = arith.mulf %126, %103 : vector<8x32xf32>
    %128 = arith.addf %123, %127 : vector<8x32xf32>
    %129 = vector.extract_strided_slice %85 {offsets = [0, 1], sizes = [8, 1], strides = [1, 1]} : vector<8x8xf32> to vector<8x1xf32>
    %130 = vector.extract_strided_slice %93 {offsets = [0, 1, 0], sizes = [8, 1, 32], strides = [1, 1, 1]} : vector<8x8x32xf32> to vector<8x1x32xf32>
    %131 = vector.shape_cast %130 : vector<8x1x32xf32> to vector<8x32xf32>
    %cst_47 = arith.constant dense<0.000000e+00> : vector<8x32xf32>
    %132 = tpu.matmul %128, %100, %cst_47 {dimension_numbers = #tpu.dot_dimension_numbers<[1], [0], [0], [1], [0, 0, 1, 1], [], []>} : vector<8x32xf32>, vector<32x32xf32>, vector<8x32xf32> -> vector<8x32xf32>
    %133 = arith.addf %131, %132 : vector<8x32xf32>
    %134 = arith.negf %133 : vector<8x32xf32>
    %135 = math.exp %134 : vector<8x32xf32>
    %cst_48 = arith.constant 1.000000e+00 : f32
    %136 = vector.broadcast %cst_48 : f32 to vector<8x32xf32>
    %137 = arith.addf %136, %135 : vector<8x32xf32>
    %138 = arith.divf %136, %137 : vector<8x32xf32>
    %139 = vector.extract_strided_slice %99 {offsets = [0, 1, 0], sizes = [8, 1, 32], strides = [1, 1, 1]} : vector<8x8x32xf32> to vector<8x1x32xf32>
    %140 = vector.shape_cast %139 : vector<8x1x32xf32> to vector<8x32xf32>
    %cst_49 = arith.constant dense<0.000000e+00> : vector<8x32xf32>
    %141 = tpu.matmul %128, %101, %cst_49 {dimension_numbers = #tpu.dot_dimension_numbers<[1], [0], [0], [1], [0, 0, 1, 1], [], []>} : vector<8x32xf32>, vector<32x32xf32>, vector<8x32xf32> -> vector<8x32xf32>
    %142 = vector.broadcast %102 : vector<1x32xf32> to vector<8x32xf32>
    %143 = arith.addf %141, %142 : vector<8x32xf32>
    %144 = arith.mulf %138, %143 : vector<8x32xf32>
    %145 = arith.addf %140, %144 : vector<8x32xf32>
    %146 = math.tanh %145 : vector<8x32xf32>
    %147 = vector.broadcast %129 : vector<8x1xf32> to vector<8x32xf32>
    %148 = arith.mulf %147, %146 : vector<8x32xf32>
    %cst_50 = arith.constant 1.000000e+00 : f32
    %149 = vector.broadcast %cst_50 : f32 to vector<8x1xf32>
    %150 = arith.subf %149, %129 : vector<8x1xf32>
    %151 = vector.broadcast %150 : vector<8x1xf32> to vector<8x32xf32>
    %152 = arith.mulf %151, %128 : vector<8x32xf32>
    %153 = arith.addf %148, %152 : vector<8x32xf32>
    %154 = vector.extract_strided_slice %85 {offsets = [0, 2], sizes = [8, 1], strides = [1, 1]} : vector<8x8xf32> to vector<8x1xf32>
    %155 = vector.extract_strided_slice %93 {offsets = [0, 2, 0], sizes = [8, 1, 32], strides = [1, 1, 1]} : vector<8x8x32xf32> to vector<8x1x32xf32>
    %156 = vector.shape_cast %155 : vector<8x1x32xf32> to vector<8x32xf32>
    %cst_51 = arith.constant dense<0.000000e+00> : vector<8x32xf32>
    %157 = tpu.matmul %153, %100, %cst_51 {dimension_numbers = #tpu.dot_dimension_numbers<[1], [0], [0], [1], [0, 0, 1, 1], [], []>} : vector<8x32xf32>, vector<32x32xf32>, vector<8x32xf32> -> vector<8x32xf32>
    %158 = arith.addf %156, %157 : vector<8x32xf32>
    %159 = arith.negf %158 : vector<8x32xf32>
    %160 = math.exp %159 : vector<8x32xf32>
    %cst_52 = arith.constant 1.000000e+00 : f32
    %161 = vector.broadcast %cst_52 : f32 to vector<8x32xf32>
    %162 = arith.addf %161, %160 : vector<8x32xf32>
    %163 = arith.divf %161, %162 : vector<8x32xf32>
    %164 = vector.extract_strided_slice %99 {offsets = [0, 2, 0], sizes = [8, 1, 32], strides = [1, 1, 1]} : vector<8x8x32xf32> to vector<8x1x32xf32>
    %165 = vector.shape_cast %164 : vector<8x1x32xf32> to vector<8x32xf32>
    %cst_53 = arith.constant dense<0.000000e+00> : vector<8x32xf32>
    %166 = tpu.matmul %153, %101, %cst_53 {dimension_numbers = #tpu.dot_dimension_numbers<[1], [0], [0], [1], [0, 0, 1, 1], [], []>} : vector<8x32xf32>, vector<32x32xf32>, vector<8x32xf32> -> vector<8x32xf32>
    %167 = vector.broadcast %102 : vector<1x32xf32> to vector<8x32xf32>
    %168 = arith.addf %166, %167 : vector<8x32xf32>
    %169 = arith.mulf %163, %168 : vector<8x32xf32>
    %170 = arith.addf %165, %169 : vector<8x32xf32>
    %171 = math.tanh %170 : vector<8x32xf32>
    %172 = vector.broadcast %154 : vector<8x1xf32> to vector<8x32xf32>
    %173 = arith.mulf %172, %171 : vector<8x32xf32>
    %cst_54 = arith.constant 1.000000e+00 : f32
    %174 = vector.broadcast %cst_54 : f32 to vector<8x1xf32>
    %175 = arith.subf %174, %154 : vector<8x1xf32>
    %176 = vector.broadcast %175 : vector<8x1xf32> to vector<8x32xf32>
    %177 = arith.mulf %176, %153 : vector<8x32xf32>
    %178 = arith.addf %173, %177 : vector<8x32xf32>
    %179 = vector.extract_strided_slice %85 {offsets = [0, 3], sizes = [8, 1], strides = [1, 1]} : vector<8x8xf32> to vector<8x1xf32>
    %180 = vector.extract_strided_slice %93 {offsets = [0, 3, 0], sizes = [8, 1, 32], strides = [1, 1, 1]} : vector<8x8x32xf32> to vector<8x1x32xf32>
    %181 = vector.shape_cast %180 : vector<8x1x32xf32> to vector<8x32xf32>
    %cst_55 = arith.constant dense<0.000000e+00> : vector<8x32xf32>
    %182 = tpu.matmul %178, %100, %cst_55 {dimension_numbers = #tpu.dot_dimension_numbers<[1], [0], [0], [1], [0, 0, 1, 1], [], []>} : vector<8x32xf32>, vector<32x32xf32>, vector<8x32xf32> -> vector<8x32xf32>
    %183 = arith.addf %181, %182 : vector<8x32xf32>
    %184 = arith.negf %183 : vector<8x32xf32>
    %185 = math.exp %184 : vector<8x32xf32>
    %cst_56 = arith.constant 1.000000e+00 : f32
    %186 = vector.broadcast %cst_56 : f32 to vector<8x32xf32>
    %187 = arith.addf %186, %185 : vector<8x32xf32>
    %188 = arith.divf %186, %187 : vector<8x32xf32>
    %189 = vector.extract_strided_slice %99 {offsets = [0, 3, 0], sizes = [8, 1, 32], strides = [1, 1, 1]} : vector<8x8x32xf32> to vector<8x1x32xf32>
    %190 = vector.shape_cast %189 : vector<8x1x32xf32> to vector<8x32xf32>
    %cst_57 = arith.constant dense<0.000000e+00> : vector<8x32xf32>
    %191 = tpu.matmul %178, %101, %cst_57 {dimension_numbers = #tpu.dot_dimension_numbers<[1], [0], [0], [1], [0, 0, 1, 1], [], []>} : vector<8x32xf32>, vector<32x32xf32>, vector<8x32xf32> -> vector<8x32xf32>
    %192 = vector.broadcast %102 : vector<1x32xf32> to vector<8x32xf32>
    %193 = arith.addf %191, %192 : vector<8x32xf32>
    %194 = arith.mulf %188, %193 : vector<8x32xf32>
    %195 = arith.addf %190, %194 : vector<8x32xf32>
    %196 = math.tanh %195 : vector<8x32xf32>
    %197 = vector.broadcast %179 : vector<8x1xf32> to vector<8x32xf32>
    %198 = arith.mulf %197, %196 : vector<8x32xf32>
    %cst_58 = arith.constant 1.000000e+00 : f32
    %199 = vector.broadcast %cst_58 : f32 to vector<8x1xf32>
    %200 = arith.subf %199, %179 : vector<8x1xf32>
    %201 = vector.broadcast %200 : vector<8x1xf32> to vector<8x32xf32>
    %202 = arith.mulf %201, %178 : vector<8x32xf32>
    %203 = arith.addf %198, %202 : vector<8x32xf32>
    %204 = vector.extract_strided_slice %85 {offsets = [0, 4], sizes = [8, 1], strides = [1, 1]} : vector<8x8xf32> to vector<8x1xf32>
    %205 = vector.extract_strided_slice %93 {offsets = [0, 4, 0], sizes = [8, 1, 32], strides = [1, 1, 1]} : vector<8x8x32xf32> to vector<8x1x32xf32>
    %206 = vector.shape_cast %205 : vector<8x1x32xf32> to vector<8x32xf32>
    %cst_59 = arith.constant dense<0.000000e+00> : vector<8x32xf32>
    %207 = tpu.matmul %203, %100, %cst_59 {dimension_numbers = #tpu.dot_dimension_numbers<[1], [0], [0], [1], [0, 0, 1, 1], [], []>} : vector<8x32xf32>, vector<32x32xf32>, vector<8x32xf32> -> vector<8x32xf32>
    %208 = arith.addf %206, %207 : vector<8x32xf32>
    %209 = arith.negf %208 : vector<8x32xf32>
    %210 = math.exp %209 : vector<8x32xf32>
    %cst_60 = arith.constant 1.000000e+00 : f32
    %211 = vector.broadcast %cst_60 : f32 to vector<8x32xf32>
    %212 = arith.addf %211, %210 : vector<8x32xf32>
    %213 = arith.divf %211, %212 : vector<8x32xf32>
    %214 = vector.extract_strided_slice %99 {offsets = [0, 4, 0], sizes = [8, 1, 32], strides = [1, 1, 1]} : vector<8x8x32xf32> to vector<8x1x32xf32>
    %215 = vector.shape_cast %214 : vector<8x1x32xf32> to vector<8x32xf32>
    %cst_61 = arith.constant dense<0.000000e+00> : vector<8x32xf32>
    %216 = tpu.matmul %203, %101, %cst_61 {dimension_numbers = #tpu.dot_dimension_numbers<[1], [0], [0], [1], [0, 0, 1, 1], [], []>} : vector<8x32xf32>, vector<32x32xf32>, vector<8x32xf32> -> vector<8x32xf32>
    %217 = vector.broadcast %102 : vector<1x32xf32> to vector<8x32xf32>
    %218 = arith.addf %216, %217 : vector<8x32xf32>
    %219 = arith.mulf %213, %218 : vector<8x32xf32>
    %220 = arith.addf %215, %219 : vector<8x32xf32>
    %221 = math.tanh %220 : vector<8x32xf32>
    %222 = vector.broadcast %204 : vector<8x1xf32> to vector<8x32xf32>
    %223 = arith.mulf %222, %221 : vector<8x32xf32>
    %cst_62 = arith.constant 1.000000e+00 : f32
    %224 = vector.broadcast %cst_62 : f32 to vector<8x1xf32>
    %225 = arith.subf %224, %204 : vector<8x1xf32>
    %226 = vector.broadcast %225 : vector<8x1xf32> to vector<8x32xf32>
    %227 = arith.mulf %226, %203 : vector<8x32xf32>
    %228 = arith.addf %223, %227 : vector<8x32xf32>
    %229 = vector.extract_strided_slice %85 {offsets = [0, 5], sizes = [8, 1], strides = [1, 1]} : vector<8x8xf32> to vector<8x1xf32>
    %230 = vector.extract_strided_slice %93 {offsets = [0, 5, 0], sizes = [8, 1, 32], strides = [1, 1, 1]} : vector<8x8x32xf32> to vector<8x1x32xf32>
    %231 = vector.shape_cast %230 : vector<8x1x32xf32> to vector<8x32xf32>
    %cst_63 = arith.constant dense<0.000000e+00> : vector<8x32xf32>
    %232 = tpu.matmul %228, %100, %cst_63 {dimension_numbers = #tpu.dot_dimension_numbers<[1], [0], [0], [1], [0, 0, 1, 1], [], []>} : vector<8x32xf32>, vector<32x32xf32>, vector<8x32xf32> -> vector<8x32xf32>
    %233 = arith.addf %231, %232 : vector<8x32xf32>
    %234 = arith.negf %233 : vector<8x32xf32>
    %235 = math.exp %234 : vector<8x32xf32>
    %cst_64 = arith.constant 1.000000e+00 : f32
    %236 = vector.broadcast %cst_64 : f32 to vector<8x32xf32>
    %237 = arith.addf %236, %235 : vector<8x32xf32>
    %238 = arith.divf %236, %237 : vector<8x32xf32>
    %239 = vector.extract_strided_slice %99 {offsets = [0, 5, 0], sizes = [8, 1, 32], strides = [1, 1, 1]} : vector<8x8x32xf32> to vector<8x1x32xf32>
    %240 = vector.shape_cast %239 : vector<8x1x32xf32> to vector<8x32xf32>
    %cst_65 = arith.constant dense<0.000000e+00> : vector<8x32xf32>
    %241 = tpu.matmul %228, %101, %cst_65 {dimension_numbers = #tpu.dot_dimension_numbers<[1], [0], [0], [1], [0, 0, 1, 1], [], []>} : vector<8x32xf32>, vector<32x32xf32>, vector<8x32xf32> -> vector<8x32xf32>
    %242 = vector.broadcast %102 : vector<1x32xf32> to vector<8x32xf32>
    %243 = arith.addf %241, %242 : vector<8x32xf32>
    %244 = arith.mulf %238, %243 : vector<8x32xf32>
    %245 = arith.addf %240, %244 : vector<8x32xf32>
    %246 = math.tanh %245 : vector<8x32xf32>
    %247 = vector.broadcast %229 : vector<8x1xf32> to vector<8x32xf32>
    %248 = arith.mulf %247, %246 : vector<8x32xf32>
    %cst_66 = arith.constant 1.000000e+00 : f32
    %249 = vector.broadcast %cst_66 : f32 to vector<8x1xf32>
    %250 = arith.subf %249, %229 : vector<8x1xf32>
    %251 = vector.broadcast %250 : vector<8x1xf32> to vector<8x32xf32>
    %252 = arith.mulf %251, %228 : vector<8x32xf32>
    %253 = arith.addf %248, %252 : vector<8x32xf32>
    %254 = vector.extract_strided_slice %85 {offsets = [0, 6], sizes = [8, 1], strides = [1, 1]} : vector<8x8xf32> to vector<8x1xf32>
    %255 = vector.extract_strided_slice %93 {offsets = [0, 6, 0], sizes = [8, 1, 32], strides = [1, 1, 1]} : vector<8x8x32xf32> to vector<8x1x32xf32>
    %256 = vector.shape_cast %255 : vector<8x1x32xf32> to vector<8x32xf32>
    %cst_67 = arith.constant dense<0.000000e+00> : vector<8x32xf32>
    %257 = tpu.matmul %253, %100, %cst_67 {dimension_numbers = #tpu.dot_dimension_numbers<[1], [0], [0], [1], [0, 0, 1, 1], [], []>} : vector<8x32xf32>, vector<32x32xf32>, vector<8x32xf32> -> vector<8x32xf32>
    %258 = arith.addf %256, %257 : vector<8x32xf32>
    %259 = arith.negf %258 : vector<8x32xf32>
    %260 = math.exp %259 : vector<8x32xf32>
    %cst_68 = arith.constant 1.000000e+00 : f32
    %261 = vector.broadcast %cst_68 : f32 to vector<8x32xf32>
    %262 = arith.addf %261, %260 : vector<8x32xf32>
    %263 = arith.divf %261, %262 : vector<8x32xf32>
    %264 = vector.extract_strided_slice %99 {offsets = [0, 6, 0], sizes = [8, 1, 32], strides = [1, 1, 1]} : vector<8x8x32xf32> to vector<8x1x32xf32>
    %265 = vector.shape_cast %264 : vector<8x1x32xf32> to vector<8x32xf32>
    %cst_69 = arith.constant dense<0.000000e+00> : vector<8x32xf32>
    %266 = tpu.matmul %253, %101, %cst_69 {dimension_numbers = #tpu.dot_dimension_numbers<[1], [0], [0], [1], [0, 0, 1, 1], [], []>} : vector<8x32xf32>, vector<32x32xf32>, vector<8x32xf32> -> vector<8x32xf32>
    %267 = vector.broadcast %102 : vector<1x32xf32> to vector<8x32xf32>
    %268 = arith.addf %266, %267 : vector<8x32xf32>
    %269 = arith.mulf %263, %268 : vector<8x32xf32>
    %270 = arith.addf %265, %269 : vector<8x32xf32>
    %271 = math.tanh %270 : vector<8x32xf32>
    %272 = vector.broadcast %254 : vector<8x1xf32> to vector<8x32xf32>
    %273 = arith.mulf %272, %271 : vector<8x32xf32>
    %cst_70 = arith.constant 1.000000e+00 : f32
    %274 = vector.broadcast %cst_70 : f32 to vector<8x1xf32>
    %275 = arith.subf %274, %254 : vector<8x1xf32>
    %276 = vector.broadcast %275 : vector<8x1xf32> to vector<8x32xf32>
    %277 = arith.mulf %276, %253 : vector<8x32xf32>
    %278 = arith.addf %273, %277 : vector<8x32xf32>
    %279 = vector.extract_strided_slice %85 {offsets = [0, 7], sizes = [8, 1], strides = [1, 1]} : vector<8x8xf32> to vector<8x1xf32>
    %280 = vector.extract_strided_slice %93 {offsets = [0, 7, 0], sizes = [8, 1, 32], strides = [1, 1, 1]} : vector<8x8x32xf32> to vector<8x1x32xf32>
    %281 = vector.shape_cast %280 : vector<8x1x32xf32> to vector<8x32xf32>
    %cst_71 = arith.constant dense<0.000000e+00> : vector<8x32xf32>
    %282 = tpu.matmul %278, %100, %cst_71 {dimension_numbers = #tpu.dot_dimension_numbers<[1], [0], [0], [1], [0, 0, 1, 1], [], []>} : vector<8x32xf32>, vector<32x32xf32>, vector<8x32xf32> -> vector<8x32xf32>
    %283 = arith.addf %281, %282 : vector<8x32xf32>
    %284 = arith.negf %283 : vector<8x32xf32>
    %285 = math.exp %284 : vector<8x32xf32>
    %cst_72 = arith.constant 1.000000e+00 : f32
    %286 = vector.broadcast %cst_72 : f32 to vector<8x32xf32>
    %287 = arith.addf %286, %285 : vector<8x32xf32>
    %288 = arith.divf %286, %287 : vector<8x32xf32>
    %289 = vector.extract_strided_slice %99 {offsets = [0, 7, 0], sizes = [8, 1, 32], strides = [1, 1, 1]} : vector<8x8x32xf32> to vector<8x1x32xf32>
    %290 = vector.shape_cast %289 : vector<8x1x32xf32> to vector<8x32xf32>
    %cst_73 = arith.constant dense<0.000000e+00> : vector<8x32xf32>
    %291 = tpu.matmul %278, %101, %cst_73 {dimension_numbers = #tpu.dot_dimension_numbers<[1], [0], [0], [1], [0, 0, 1, 1], [], []>} : vector<8x32xf32>, vector<32x32xf32>, vector<8x32xf32> -> vector<8x32xf32>
    %292 = vector.broadcast %102 : vector<1x32xf32> to vector<8x32xf32>
    %293 = arith.addf %291, %292 : vector<8x32xf32>
    %294 = arith.mulf %288, %293 : vector<8x32xf32>
    %295 = arith.addf %290, %294 : vector<8x32xf32>
    %296 = math.tanh %295 : vector<8x32xf32>
    %297 = vector.broadcast %279 : vector<8x1xf32> to vector<8x32xf32>
    %298 = arith.mulf %297, %296 : vector<8x32xf32>
    %cst_74 = arith.constant 1.000000e+00 : f32
    %299 = vector.broadcast %cst_74 : f32 to vector<8x1xf32>
    %300 = arith.subf %299, %279 : vector<8x1xf32>
    %301 = vector.broadcast %300 : vector<8x1xf32> to vector<8x32xf32>
    %302 = arith.mulf %301, %278 : vector<8x32xf32>
    %303 = arith.addf %298, %302 : vector<8x32xf32>
    %c0_75 = arith.constant 0 : index
    %c0_76 = arith.constant 0 : index
    %304 = vector.load %arg14[%c0_75, %c0_76] : memref<32x32xf32, #tpu.memory_space<vmem>>, vector<32x32xf32>
    %cst_77 = arith.constant dense<0.000000e+00> : vector<8x32xf32>
    %305 = tpu.matmul %2, %304, %cst_77 {dimension_numbers = #tpu.dot_dimension_numbers<[1], [0], [0], [1], [0, 0, 1, 1], [], []>} : vector<8x32xf32>, vector<32x32xf32>, vector<8x32xf32> -> vector<8x32xf32>
    %c0_78 = arith.constant 0 : index
    %c0_79 = arith.constant 0 : index
    %306 = vector.load %arg15[%c0_78, %c0_79] : memref<32x32xf32, #tpu.memory_space<vmem>>, vector<32x32xf32>
    %cst_80 = arith.constant dense<0.000000e+00> : vector<8x32xf32>
    %307 = tpu.matmul %303, %306, %cst_80 {dimension_numbers = #tpu.dot_dimension_numbers<[1], [0], [0], [1], [0, 0, 1, 1], [], []>} : vector<8x32xf32>, vector<32x32xf32>, vector<8x32xf32> -> vector<8x32xf32>
    %308 = arith.addf %305, %307 : vector<8x32xf32>
    %c0_81 = arith.constant 0 : index
    %c0_82 = arith.constant 0 : index
    %309 = vector.load %arg16[%c0_81, %c0_82] : memref<32x32xf32, #tpu.memory_space<vmem>>, vector<32x32xf32>
    %cst_83 = arith.constant dense<0.000000e+00> : vector<8x32xf32>
    %310 = tpu.matmul %1, %309, %cst_83 {dimension_numbers = #tpu.dot_dimension_numbers<[1], [0], [0], [1], [0, 0, 1, 1], [], []>} : vector<8x32xf32>, vector<32x32xf32>, vector<8x32xf32> -> vector<8x32xf32>
    %311 = arith.addf %308, %310 : vector<8x32xf32>
    %c0_84 = arith.constant 0 : index
    %c0_85 = arith.constant 0 : index
    %312 = vector.load %arg17[%c0_84, %c0_85] : memref<1x32xf32, #tpu.memory_space<vmem>>, vector<1x32xf32>
    %313 = vector.broadcast %312 : vector<1x32xf32> to vector<8x32xf32>
    %314 = arith.addf %311, %313 : vector<8x32xf32>
    %cst_86 = arith.constant 0.000000e+00 : f32
    %315 = vector.broadcast %cst_86 : f32 to vector<8x32xf32>
    %316 = arith.maximumf %314, %315 : vector<8x32xf32>
    %c0_87 = arith.constant 0 : index
    %c0_88 = arith.constant 0 : index
    %317 = vector.load %arg18[%c0_87, %c0_88] : memref<8x32xf32, #tpu.memory_space<vmem>>, vector<8x32xf32>
    tpu.vector_store %arg18[%c0_87, %c0_88], %316 {strides = array<i32>} : memref<8x32xf32, #tpu.memory_space<vmem>>, vector<8x32xf32>,
    return
  }
}

</mosaic_0001>

<bundles_post_ra>
// kernel: episodic_memory_forward.1
= control target key start
LH: loop header
LB: loop body
LE: loop exit
PB: predicated region body
PF: predicated region fallthrough
CT: control target
= control target key end

     0   :  { %s6252_s0 = inlined_call_operand.vmem [shape: f32[8,8,32], index: 0, kind: input, shape index: {}]   ;;  %s6253_s1 = inlined_call_operand.hbm [shape: f32[8,32], index: 1, kind: input, shape index: {}]   ;;  %s6254_s2 = inlined_call_operand.hbm [shape: f32[8,32], index: 2, kind: input, shape index: {}]   ;;  %s6255_s3 = inlined_call_operand.vmem [shape: f32[128,32], index: 3, kind: input, shape index: {}]   ;;  %s6256_s4 = inlined_call_operand.vmem [shape: f32[1,32], index: 4, kind: input, shape index: {}]   ;;  %s6257_s5 = inlined_call_operand.vmem [shape: f32[1,32], index: 5, kind: input, shape index: {}]   ;;  %s6258_s6 = inlined_call_operand.<no memory space> [shape: f32[1,1], index: 6, kind: input, shape index: {}]   ;;  %s6259_s7 = inlined_call_operand.vmem [shape: f32[32,32], index: 7, kind: input, shape index: {}]   ;;  %s6260_s8 = inlined_call_operand.vmem [shape: f32[32,32], index: 8, kind: input, shape index: {}]   ;;  %s6261_s9 = inlined_call_operand.vmem [shape: f32[32,32], index: 9, kind: input, shape index: {}]   ;;  %s6262_s10 = inlined_call_operand.hbm [shape: f32[32,32], index: 10, kind: input, shape index: {}]   ;;  %s6263_s11 = inlined_call_operand.hbm [shape: f32[1,32], index: 11, kind: input, shape index: {}]   ;;  %s6264_s12 = inlined_call_operand.hbm [shape: f32[1,32], index: 12, kind: input, shape index: {}]   ;;  %s6265_s13 = inlined_call_operand.hbm [shape: f32[1,32], index: 13, kind: input, shape index: {}]   ;;  %s6266_s14 = inlined_call_operand.hbm [shape: f32[32,32], index: 14, kind: input, shape index: {}]   ;;  %s6267_s15 = inlined_call_operand.hbm [shape: f32[32,32], index: 15, kind: input, shape index: {}]   ;;  %s6268_s16 = inlined_call_operand.hbm [shape: f32[32,32], index: 16, kind: input, shape index: {}]   ;;  %s6269_s17 = inlined_call_operand.hbm [shape: f32[1,32], index: 17, kind: input, shape index: {}]   ;;  %s6270_s18 = inlined_call_operand.hbm [shape: f32[8,32], index: 18, kind: output, shape index: {0}]   ;;  %s6271_s19 = inlined_call_operand.hbm [shape: f32[8,8], index: 19, kind: output, shape index: {1}]  }
   0x1   :  { %6278 = sst [smem:[#allocation31_spill]] %s6252_s0  ;;  %v25_v0 = vstv %s6258_s6 }
   0x2   :  { %6279 = sst [smem:[#allocation32_spill]] %s6253_s1  ;;  %26 = vst [vmem:[#allocation2] sm:$0x1] %v25_v0 }
   0x3   :  { %6280 = sst [smem:[#allocation33_spill]] %s6254_s2 }
   0x4   :  { %6281 = sst [smem:[#allocation34_spill]] %s6255_s3 }
   0x5   :  { %27 = vsyncpa [#allocation4], 0 }
   0x6   :  { %28 = vsyncpa [#allocation7], 0 }
   0x7   :  { %29 = vsyncpa [#allocation10], 0 }
   0x8   :  { %30 = vsyncpa [#allocation13], 0 }
   0x9   :  { %31 = vsyncpa [#allocation16], 0 }
   0xa   :  { %32 = vsyncpa [#allocation19], 0 }
   0xb   :  { %33 = vsyncpa [#allocation5], 0 }
   0xc   :  { %34 = vsyncpa [#allocation22], 0  ;;  %s5107_s20 = smov [#allocation6]   ;;  %s5108_s1 = smov [#allocation9]  }
   0xd   :  { %s53_s21 = sshll.u32 %s5107_s20, 4  ;;  %s89_s22 = sshll.u32 %s5108_s1, 4  ;;  %s54_s21 = int_to_ptr.vmem [resolvable:$true] %s53_s21  ;;  %s90_s22 = int_to_ptr.vmem [resolvable:$true] %s89_s22 }
   0xe   :  { %s4859_s2 = scalar_lea.vmem %s54_s21, 128  ;;  %p4864_p1 = scmp.lt.s32.totalorder %s54_s21, %s54_s21 }
   0xf   :  { %p4860_p0 = scmp.ne.s32.totalorder %s54_s21, %s4859_s2  ;;  %p4865_p2 = scmp.lt.s32.totalorder %s4859_s2, %s4859_s2 }
  0x11   :  { %p4866_p3 = por %p4865_p2, %p4864_p1 }
  0x13   :  { %p4867_p4 = pnand %p4866_p3, %p4860_p0 }
  0x15   :  { %4870 = shalt.err (!%p4867_p4)
}
  0x16   :  { %s6282_s24 = sld [smem:[#allocation33_spill]]  ;;  %s4879_s25 = scalar_lea.vmem %s90_s22, 16 }
  0x17   :  { %p4880_p5 = scmp.ne.s32.totalorder %s90_s22, %s4879_s25  ;;  %s4883_s3 = scalar_lea.vmem %s90_s22, 32 }
  0x18   :  { %p4884_p6 = scmp.lt.s32.totalorder %s90_s22, %s90_s22  ;;  %p4885_p7 = scmp.lt.s32.totalorder %s4883_s3, %s4879_s25 }
  0x1a   :  { %p4886_p8 = por %p4885_p7, %p4884_p6 }
  0x1c   :  { %56 = dma.hbm_to_vmem [thread:$0]  %s6282_s24, 128, %s54_s21, [#allocation7]  }
  0x1d   :  { %p4887_p9 = pnand %p4886_p8, %p4880_p5 }
  0x1f   :  { %4890 = shalt.err (!%p4887_p9)
}
  0x20   :  { %92 = dma.hbm_to_vmem [thread:$0]  %s6263_s11, 16, %s90_s22, [#allocation10]  }
  0x21   :  { %s5109_s28 = smov [#allocation12]  }
  0x22   :  { %s109_s29 = sshll.u32 %s5109_s28, 4  ;;  %s110_s29 = int_to_ptr.vmem [resolvable:$true] %s109_s29 }
  0x23   :  { %s4899_s0 = scalar_lea.vmem %s110_s29, 16  ;;  %s4903_s30 = scalar_lea.vmem %s110_s29, 32 }
  0x24   :  { %p4900_p10 = scmp.ne.s32.totalorder %s110_s29, %s4899_s0  ;;  %p4904_p11 = scmp.lt.s32.totalorder %s110_s29, %s110_s29 }
  0x25   :  { %p4905_p12 = scmp.lt.s32.totalorder %s4903_s30, %s4899_s0 }
  0x27   :  { %p4906_p13 = por %p4905_p12, %p4904_p11 }
  0x29   :  { %p4907_p0 = pnand %p4906_p13, %p4900_p10 }
  0x2b   :  { %4910 = shalt.err (!%p4907_p0)
}
  0x2c   :  { %112 = dma.hbm_to_vmem [thread:$0]  %s6265_s13, 16, %s110_s29, [#allocation13]  }
  0x2d   :  { %s5110_s1 = smov [#allocation15]   ;;  %s5111_s6 = smov [#allocation3]  }
  0x2e   :  { %s130_s2 = sshll.u32 %s5110_s1, 4  ;;  %s43_s11 = sshll.u32 %s5111_s6, 4  ;;  %s131_s2 = int_to_ptr.vmem [resolvable:$true] %s130_s2  ;;  %s44_s11 = int_to_ptr.vmem [resolvable:$true] %s43_s11 }
  0x2f   :  { %s4919_s22 = scalar_lea.vmem %s131_s2, 512  ;;  %p4924_p2 = scmp.lt.s32.totalorder %s131_s2, %s131_s2 }
  0x30   :  { %p4920_p1 = scmp.ne.s32.totalorder %s131_s2, %s4919_s22  ;;  %p4925_p3 = scmp.lt.s32.totalorder %s4919_s22, %s4919_s22 }
  0x32   :  { %p4926_p4 = por %p4925_p3, %p4924_p2 }
  0x34   :  { %p4927_p5 = pnand %p4926_p4, %p4920_p1 }
  0x36   :  { %4930 = shalt.err (!%p4927_p5)
}
  0x37   :  { %s5112_s23 = smov 128   ;;  %s5113_s24 = smov 8  }
  0x38   :  { %136 = dma.hbm_to_vmem [thread:$0]  %s6267_s15, 512, %s131_s2, [#allocation16], %s5112_s23, %s5112_s23, %s5113_s24  }
  0x39   :  { %s4939_s13 = scalar_lea.vmem %s44_s11, 128  ;;  %p4944_p7 = scmp.lt.s32.totalorder %s44_s11, %s44_s11 }
  0x3a   :  { %p4940_p6 = scmp.ne.s32.totalorder %s44_s11, %s4939_s13  ;;  %p4945_p8 = scmp.lt.s32.totalorder %s4939_s13, %s4939_s13 }
  0x3c   :  { %p4946_p9 = por %p4945_p8, %p4944_p7 }
  0x3e   :  { %p4947_p10 = pnand %p4946_p9, %p4940_p6 }
  0x40   :  { %4950 = shalt.err (!%p4947_p10)
}
  0x41   :  { %s6283_s28 = sld [smem:[#allocation32_spill]]  ;;  %s5114_s29 = smov [#allocation8]  }
  0x42   :  { %s76_s0 = sshll.u32 %s5114_s29, 4  ;;  %s5115_s30 = smov [#allocation11]   ;;  %s77_s0 = int_to_ptr.vmem [resolvable:$true] %s76_s0 }
  0x43   :  { %s99_s20 = sshll.u32 %s5115_s30, 4  ;;  %s4959_s21 = scalar_lea.vmem %s77_s0, 512  ;;  %s100_s20 = int_to_ptr.vmem [resolvable:$true] %s99_s20 }
  0x44   :  { %p4960_p11 = scmp.ne.s32.totalorder %s77_s0, %s4959_s21  ;;  %p4964_p12 = scmp.lt.s32.totalorder %s77_s0, %s77_s0 }
  0x45   :  { %p4965_p13 = scmp.lt.s32.totalorder %s4959_s21, %s4959_s21 }
  0x47   :  { %46 = dma.hbm_to_vmem [thread:$0]  %s6283_s28, 128, %s44_s11, [#allocation4]  }
  0x48   :  { %p4966_p0 = por %p4965_p13, %p4964_p12 }
  0x4a   :  { %p4967_p1 = pnand %p4966_p0, %p4960_p11 }
  0x4c   :  { %4970 = shalt.err (!%p4967_p1)
}
  0x4d   :  { %82 = dma.hbm_to_vmem [thread:$0]  %s6262_s10, 512, %s77_s0, [#allocation7], %s5112_s23, %s5112_s23, %s5113_s24  }
  0x4e   :  { %s4979_s2 = scalar_lea.vmem %s100_s20, 16  ;;  %s4983_s6 = scalar_lea.vmem %s100_s20, 32 }
  0x4f   :  { %p4980_p2 = scmp.ne.s32.totalorder %s100_s20, %s4979_s2  ;;  %p4984_p3 = scmp.lt.s32.totalorder %s100_s20, %s100_s20 }
  0x50   :  { %p4985_p4 = scmp.lt.s32.totalorder %s4983_s6, %s4979_s2 }
  0x52   :  { %p4986_p5 = por %p4985_p4, %p4984_p3 }
  0x54   :  { %p4987_p6 = pnand %p4986_p5, %p4980_p2 }
  0x56   :  { %4990 = shalt.err (!%p4987_p6)
}
  0x57   :  { %102 = dma.hbm_to_vmem [thread:$0]  %s6264_s12, 16, %s100_s20, [#allocation10]  }
  0x58   :  { %s5116_s25 = smov [#allocation14]   ;;  %s5117_s13 = smov [#allocation17]  }
  0x59   :  { %s118_s3 = sshll.u32 %s5116_s25, 4  ;;  %s142_s26 = sshll.u32 %s5117_s13, 4  ;;  %s119_s3 = int_to_ptr.vmem [resolvable:$true] %s118_s3  ;;  %s143_s26 = int_to_ptr.vmem [resolvable:$true] %s142_s26 }
  0x5a   :  { %s4999_s27 = scalar_lea.vmem %s119_s3, 512  ;;  %p5004_p8 = scmp.lt.s32.totalorder %s119_s3, %s119_s3 }
  0x5b   :  { %p5000_p7 = scmp.ne.s32.totalorder %s119_s3, %s4999_s27  ;;  %p5005_p9 = scmp.lt.s32.totalorder %s4999_s27, %s4999_s27 }
  0x5d   :  { %p5006_p10 = por %p5005_p9, %p5004_p8 }
  0x5f   :  { %p5007_p11 = pnand %p5006_p10, %p5000_p7 }
  0x61   :  { %5010 = shalt.err (!%p5007_p11)
}
  0x62   :  { %124 = dma.hbm_to_vmem [thread:$0]  %s6266_s14, 512, %s119_s3, [#allocation13], %s5112_s23, %s5112_s23, %s5113_s24  }
  0x63   :  { %s5019_s12 = scalar_lea.vmem %s143_s26, 512  ;;  %p5024_p13 = scmp.lt.s32.totalorder %s143_s26, %s143_s26 }
  0x64   :  { %p5020_p12 = scmp.ne.s32.totalorder %s143_s26, %s5019_s12  ;;  %p5025_p0 = scmp.lt.s32.totalorder %s5019_s12, %s5019_s12 }
  0x66   :  { %p5026_p1 = por %p5025_p0, %p5024_p13 }
  0x68   :  { %p5027_p2 = pnand %p5026_p1, %p5020_p12 }
  0x6a   :  { %5030 = shalt.err (!%p5027_p2)
}
  0x6b   :  { %148 = dma.hbm_to_vmem [thread:$0]  %s6268_s16, 512, %s143_s26, [#allocation16], %s5112_s23, %s5112_s23, %s5113_s24  }
  0x6c   :  { %s5118_s30 = smov [#allocation18]  }
  0x6d   :  { %s155_s20 = sshll.u32 %s5118_s30, 4  ;;  %s156_s20 = int_to_ptr.vmem [resolvable:$true] %s155_s20 }
  0x6e   :  { %s5039_s21 = scalar_lea.vmem %s156_s20, 16  ;;  %s5043_s14 = scalar_lea.vmem %s156_s20, 32 }
  0x6f   :  { %p5040_p3 = scmp.ne.s32.totalorder %s156_s20, %s5039_s21  ;;  %p5044_p4 = scmp.lt.s32.totalorder %s156_s20, %s156_s20 }
  0x70   :  { %p5045_p5 = scmp.lt.s32.totalorder %s5043_s14, %s5039_s21 }
  0x72   :  { %p5046_p6 = por %p5045_p5, %p5044_p4 }
  0x74   :  { %p5047_p7 = pnand %p5046_p6, %p5040_p3 }
  0x76   :  { %5050 = shalt.err (!%p5047_p7)
}
  0x77   :  { %158 = dma.hbm_to_vmem [thread:$0]  %s6269_s17, 16, %s156_s20, [#allocation19]  }
  0x78   :  { %5091 = dma.done.wait [#allocation4], 128  }
  0x79   :  { %5092 = vsyncadd [#allocation4], 4294967168 }
  0x7a   :  { %5093 = dma.done.wait [#allocation7], 640  }
  0x7b   :  { %5094 = vsyncadd [#allocation7], 4294966656 }
  0x7c   :  { %5095 = dma.done.wait [#allocation10], 32  }
  0x7d   :  { %5096 = vsyncadd [#allocation10], 4294967264 }
  0x7e   :  { %5097 = dma.done.wait [#allocation13], 528  }
  0x7f   :  { %5098 = vsyncadd [#allocation13], 4294966768 }
  0x80   :  { %5099 = dma.done.wait [#allocation16], 1024  }
  0x81   :  { %5100 = vsyncadd [#allocation16], 4294966272 }
  0x82   :  { %5101 = dma.done.wait [#allocation19], 16  }
  0x83   :  { %5102 = vsyncadd [#allocation19], 4294967280  ;;  %v204_v1 = vlaneseq  ;;  %v5119_v2 = vmov 1966171168   ;;  %v198_v7 = vld [vmem:[#allocation6] sm:$0xff]  ;;  %v197_v10 = vld [vmem:[#allocation3] sm:$0xff] }
  0x84   :  { %v202_v3 = vunpack.c.l.s4 %v5119_v2  ;;  %v250_v11 = vcombine.high %v198_v7, %v198_v7  ;;  %s6284_s23 = sld [smem:[#allocation31_spill]]  ;;  %v200_v14 = vcombine.high %v197_v10, %v197_v10  ;;  %vm6274_vm0 = vcmask 261120   ;;  %s5120_s16 = smov 32  }
  0x85   :  { %v205_v4 = vshrl.u32 %v204_v1, 7  ;;  %s6285_s6 = sld [smem:[#allocation34_spill]]  ;;  %s5121_s2 = smov 96   ;;  %vm532_vm1 = vcmask 523264   ;;  %vm541_vm2 = vcmask 785408   ;;  %vm838_vm3 = vcmask 261127  }
  0x86   :  { %v203_v5 = vunpack.c.0.s8 %v202_v3  ;;  %s5122_s25 = smov 64   ;;  %vm6275_vm4 = vcmask 1047559   ;;  %vm822_vm5 = vcmask 261126   ;;  %vm6276_vm6 = vcmask 1046534  }
  0x87   :  { %v5283_v9 = vsub.s32 0, %v205_v4  ;;  %vm6277_vm7 = vcmask 1045509   ;;  %vm719_vm8 = vcmask 1044484   ;;  %vm716_vm9 = vcmask 1043459  }
  0x88   :  { %v5280_v6 = vsub.s32 %v203_v5, %v205_v4  ;;  %vm806_vm10 = vcmask 261125   ;;  %vm790_vm11 = vcmask 261124   ;;  %vm713_vm12 = vcmask 1042434  }
  0x89   :  { %vm710_vm13 = vcmask 1041409   ;;  %vm774_vm14 = vcmask 261123   ;;  %vm746_vm15 = vcmask 253952  }
  0x8a   :  { %v257_v8 = vrot.slane %v198_v7, %v5280_v6  ;;  %v5288_v12 = vld [vmem:[%s6284_s23] sm:$0xff]  ;;  %v207_v13 = vrot.slane %v197_v10, %v5280_v6  ;;  %v264_v17 = vrot.slane %v250_v11, %v5280_v6  ;;  %v5312_v27 = vld [vmem:[%s6284_s23 + $0x8] sm:$0xff]  ;;  %v5323_v31 = vrot.slane %v200_v14, %v5280_v6  ;;  %v5331_v36 = vld [vmem:[%s6284_s23 + $0x10] sm:$0xff] }
  0x8b   :  { %v565_v18 = vld [vmem:[%s6285_s6 + $0x78] sm:$0xff]  ;;  %v564_v19 = vld [vmem:[%s6285_s6 + $0x70] sm:$0xff]  ;;  %4092 = vmatprep.mubr.msk.f32.mxu1 %vm6274_vm0, %v5288_v12  ;;  %v563_v26 = vld [vmem:[%s6285_s6 + $0x68] sm:$0xff] }
  0x8c   :  { %v265_v15 = vcombine.high %v257_v8, %v257_v8  ;;  %v273_v16 = vrot.slane %v257_v8, %v5280_v6  ;;  %v215_v20 = vcombine.high %v207_v13, %v207_v13  ;;  %v5302_v21 = vrot.slane %v207_v13, %v5280_v6  ;;  %4040 = vmatprep.subr.mxu0 %v565_v18  ;;  %v562_v37 = vld [vmem:[%s6285_s6 + $0x60] sm:$0xff]  ;;  %v5344_v40 = vld [vmem:[%s6284_s23 + $0x18] sm:$0xff]  ;;  %v5370_v56 = vld [vmem:[%s6284_s23 + $0x28] sm:$0xff] }
  0x8d   :  { %v266_v25 = vcombine.high %v264_v17, %v264_v17  ;;  %4041 = vmatpush3.msra.mxu0 %v565_v18  ;;  %v5320_v30 = vrot.slane %v264_v17, %v5280_v6  ;;  %v561_v47 = vld [vmem:[%s6285_s6 + $0x58] sm:$0xff]  ;;  %v5362_v51 = vld [vmem:[%s6284_s23 + $0x20] sm:$0xff]  ;;  %v560_v2 = vld [vmem:[%s6285_s6 + $0x50] sm:$0xff]  ;;  %v216_v11 = vcombine.high %v5323_v31, %v5323_v31  ;;  %v230_v13 = vrot.slane %v5323_v31, %v5280_v6 }
  0x8e   :  { %v287_v22 = vrot.slane %v265_v15, %v5280_v6  ;;  %v295_v23 = vcombine.high %v273_v16, %v273_v16  ;;  %v350_v24 = vrot.slane %v273_v16, %v5283_v9  ;;  %v237_v28 = vrot.slane %v215_v20, %v5280_v6  ;;  %4042 = vmatprep.subr.mxu0 %v564_v19  ;;  %v559_v16 = vld [vmem:[%s6285_s6 + $0x48] sm:$0xff] }
  0x8f   :  { %v5317_v29 = vrot.slane %v5302_v21, %v5283_v9  ;;  %4043 = vmatpush3.msra.mxu0 %v564_v19  ;;  %v5348_v42 = vrot.slane %v266_v25, %v5280_v6  ;;  %v245_v52 = vcombine.high %v5302_v21, %v5302_v21  ;;  %v366_v57 = vrot.slane %v5320_v30, %v5283_v9 }
  0x90   :  { %v297_v32 = vcombine.high %v287_v22, %v287_v22  ;;  %v354_v33 = vrot.slane %v287_v22, %v5283_v9  ;;  %v387_v34 = vmul.f32 %v350_v24, %v5288_v12  ;;  %v411_v35 = vsub.f32 %v5288_v12, %v350_v24  ;;  %4044 = vmatprep.subr.mxu0 %v563_v26 }
  0x91   :  { %v5337_v38 = vrot.slane %v237_v28, %v5283_v9  ;;  %v395_v39 = vsub.f32 %v5288_v12, %v5317_v29  ;;  %v358_v41 = vrot.slane %v295_v23, %v5283_v9  ;;  %4045 = vmatpush3.msra.mxu0 %v563_v26  ;;  %v370_v59 = vrot.slane %v5348_v42, %v5283_v9 }
  0x92   :  { %v388_v43 = vmul.f32 %v354_v33, %v5312_v27  ;;  %v412_v44 = vsub.f32 %v5312_v27, %v354_v33  ;;  %v419_v45 = vand.u32 2147483647, %v411_v35  ;;  %v362_v46 = vrot.slane %v297_v32, %v5283_v9  ;;  %4046 = vmatprep.subr.mxu0 %v562_v37 }
  0x93   :  { %v396_v48 = vsub.f32 %v5312_v27, %v5337_v38  ;;  %v403_v49 = vand.u32 2147483647, %v395_v39  ;;  %v389_v50 = vmul.f32 %v358_v41, %v5331_v36  ;;  %4047 = vmatpush3.msra.mxu0 %v562_v37  ;;  %v413_v60 = vsub.f32 %v5331_v36, %v358_v41 }
  0x94   :  { %v4361_v53 = vpack.i.bf16 %v388_v43, %v387_v34  ;;  %v420_v54 = vand.u32 2147483647, %v412_v44  ;;  %v390_v55 = vmul.f32 %v362_v46, %v5344_v40  ;;  %v414_v61 = vsub.f32 %v5344_v40, %v362_v46  ;;  %4048 = vmatprep.subr.mxu0 %v561_v47  ;;  %v5430_v34 = vld [vmem:[%s6284_s23 + $0x38] sm:$0xff] }
  0x95   :  { %v404_v58 = vand.u32 2147483647, %v396_v48  ;;  %v391_v0 = vmul.f32 %v366_v57, %v5362_v51  ;;  %v247_v1 = vcombine.high %v237_v28, %v237_v28  ;;  %v392_v4 = vmul.f32 %v370_v59, %v5370_v56  ;;  %4049 = vmatpush3.msra.mxu0 %v561_v47  ;;  %v558_v28 = vld [vmem:[%s6285_s6 + $0x40] sm:$0xff] }
  0x96   :  { %4362 = vrot.lane.b32.xlu0 %v4361_v53, %s5120_s16  ;;  %v4371_v62 = vpack.i.bf16 %v420_v54, %v419_v45  ;;  %v4376_v63 = vpack.i.bf16 %v390_v55, %v389_v50  ;;  %v421_v5 = vand.u32 2147483647, %v413_v60  ;;  %v422_v7 = vand.u32 2147483647, %v414_v61  ;;  %4050 = vmatprep.subr.mxu0 %v560_v2  ;;  %v557_v45 = vld [vmem:[%s6285_s6 + $0x38] sm:$0xff]  ;;  %v556_v54 = vld [vmem:[%s6285_s6 + $0x30] sm:$0xff] }
  0x97   :  { %v4366_v3 = vpack.i.bf16 %v404_v58, %v403_v49  ;;  %v5386_v8 = vrot.slane %v245_v52, %v5283_v9  ;;  %v5389_v10 = vrot.slane %v247_v1, %v5283_v9  ;;  %v415_v14 = vsub.f32 %v5362_v51, %v366_v57  ;;  %4051 = vmatpush3.msra.mxu0 %v560_v2  ;;  %v554_v61 = vld [vmem:[%s6285_s6 + $0x20] sm:$0xff] }
  0x98   :  { %4372 = vrot.lane.b32.xlu1 %v4371_v62, %s5121_s2  ;;  %v416_v15 = vsub.f32 %v5370_v56, %v370_v59  ;;  %v4381_v17 = vpack.i.bf16 %v392_v4, %v391_v0  ;;  %v4391_v20 = vpack.i.bf16 %v422_v7, %v421_v5  ;;  %v244_v21 = vrot.slane %v216_v11, %v5280_v6  ;;  %v555_v59 = vld [vmem:[%s6285_s6 + $0x28] sm:$0xff]  ;;  %v552_v5 = vld [vmem:[%s6285_s6 + $0x10] sm:$0xff]  ;;  %v550_v11 = vld [vmem:[%s6285_s6] sm:$0xff] }
  0x99   :  { %v397_v18 = vsub.f32 %v5331_v36, %v5386_v8  ;;  %v398_v19 = vsub.f32 %v5344_v40, %v5389_v10  ;;  %v5407_v22 = vrot.slane %v230_v13, %v5283_v9  ;;  %v296_v25 = vcombine.high %v5320_v30, %v5320_v30  ;;  %4052 = vmatprep.subr.mxu0 %v559_v16  ;;  %v5425_v30 = vld [vmem:[%s6284_s23 + $0x30] sm:$0xff]  ;;  %v551_v7 = vld [vmem:[%s6285_s6 + $0x8] sm:$0xff] }
  0x9a   :  { %4367 = vrot.lane.b32.xlu0 %v4366_v3, %s5122_s25  ;;  %v298_v26 = vcombine.high %v5348_v42, %v5348_v42  ;;  %v5418_v6 = vrot.slane %v244_v21, %v5283_v9  ;;  %v423_v32 = vand.u32 2147483647, %v415_v14  ;;  %v424_v33 = vand.u32 2147483647, %v416_v15  ;;  %4053 = vmatpush3.msra.mxu0 %v559_v16  ;;  %v553_v3 = vld [vmem:[%s6285_s6 + $0x18] sm:$0xff] }
  0x9b   :  { %v405_v23 = vand.u32 2147483647, %v397_v18  ;;  %v406_v24 = vand.u32 2147483647, %v398_v19  ;;  %v399_v31 = vsub.f32 %v5362_v51, %v5407_v22  ;;  %v374_v37 = vrot.slane %v296_v25, %v5283_v9  ;;  %4054 = vmatprep.subr.mxu0 %v558_v28 }
  0x9c   :  { %4377 = vrot.lane.b32.xlu1 %v4376_v63, %s5120_s16  ;;  %v378_v39 = vrot.slane %v298_v26, %v5283_v9  ;;  %v246_v41 = vcombine.high %v230_v13, %v230_v13  ;;  %v400_v42 = vsub.f32 %v5370_v56, %v5418_v6  ;;  %v248_v44 = vcombine.high %v244_v21, %v244_v21 }
  0x9d   :  { %v4386_v35 = vpack.i.bf16 %v406_v24, %v405_v23  ;;  %v407_v43 = vand.u32 2147483647, %v399_v31  ;;  %v393_v46 = vmul.f32 %v374_v37, %v5425_v30  ;;  %v417_v52 = vsub.f32 %v5425_v30, %v374_v37  ;;  %4055 = vmatpush3.msra.mxu0 %v558_v28 }
  0x9e   :  { %4382 = vrot.lane.b32.xlu0 %v4381_v17, %s5120_s16  ;;  %v394_v47 = vmul.f32 %v378_v39, %v5430_v34  ;;  %v5444_v48 = vrot.slane %v246_v41, %v5283_v9  ;;  %v408_v49 = vand.u32 2147483647, %v400_v42  ;;  %v5447_v50 = vrot.slane %v248_v44, %v5283_v9  ;;  %4056 = vmatprep.subr.mxu0 %v557_v45 }
  0x9f   :  { %v418_v53 = vsub.f32 %v5430_v34, %v378_v39  ;;  %v4401_v55 = vpack.i.bf16 %v424_v33, %v423_v32  ;;  %4057 = vmatpush3.msra.mxu0 %v557_v45  ;;  %v425_v0 = vand.u32 2147483647, %v417_v52  ;;  %v340_v14 = vmul.f32 %v5337_v38, %v5312_v27 }
  0xa0   :  { %4392 = vrot.lane.b32.xlu1 %v4391_v20, %s5121_s2  ;;  %v401_v57 = vsub.f32 %v5425_v30, %v5444_v48  ;;  %v4396_v58 = vpack.i.bf16 %v408_v49, %v407_v43  ;;  %v402_v9 = vsub.f32 %v5430_v34, %v5447_v50  ;;  %4058 = vmatprep.subr.mxu0 %v556_v54 }
  0xa1   :  { %v4406_v62 = vpack.i.bf16 %v394_v47, %v393_v46  ;;  %v426_v1 = vand.u32 2147483647, %v418_v53  ;;  %4059 = vmatpush3.msra.mxu0 %v556_v54  ;;  %v339_v18 = vmul.f32 %v5317_v29, %v5288_v12  ;;  %v341_v37 = vmul.f32 %v5386_v8, %v5331_v36 }
  0xa2   :  { %4387 = vrot.lane.b32.xlu0 %v4386_v35, %s5122_s25  ;;  %v409_v60 = vand.u32 2147483647, %v401_v57  ;;  %v410_v63 = vand.u32 2147483647, %v402_v9  ;;  %4060 = vmatprep.subr.mxu0 %v555_v59  ;;  %v342_v35 = vmul.f32 %v5389_v10, %v5344_v40  ;;  %v344_v43 = vmul.f32 %v5418_v6, %v5370_v56 }
  0xa3   :  { %4061 = vmatpush3.msra.mxu0 %v555_v59  ;;  %v4416_v4 = vpack.i.bf16 %v426_v1, %v425_v0  ;;  %v343_v44 = vmul.f32 %v5407_v22, %v5362_v51  ;;  %v346_v1 = vmul.f32 %v5447_v50, %v5430_v34 }
  0xa4   :  { %4397 = vrot.lane.b32.xlu1 %v4396_v58, %s5122_s25  ;;  %v4411_v2 = vpack.i.bf16 %v410_v63, %v409_v60  ;;  %4062 = vmatprep.subr.mxu0 %v554_v61 }
  0xa5   :  { %4063 = vmatpush3.msra.mxu0 %v554_v61 }
  0xa6   :  { %4402 = vrot.lane.b32.xlu0 %v4401_v55, %s5121_s2  ;;  %4064 = vmatprep.subr.mxu0 %v553_v3 }
  0xa7   :  { %4065 = vmatpush3.msra.mxu0 %v553_v3 }
  0xa8   :  { %4407 = vrot.lane.b32.xlu1 %v4406_v62, %s5120_s16  ;;  %4066 = vmatprep.subr.mxu0 %v552_v5 }
  0xa9   :  { %4067 = vmatpush3.msra.mxu0 %v552_v5 }
  0xaa   :  { %4412 = vrot.lane.b32.xlu0 %v4411_v2, %s5122_s25  ;;  %4068 = vmatprep.subr.mxu0 %v551_v7  ;;  %v345_v2 = vmul.f32 %v5444_v48, %v5425_v30 }
  0xab   :  { %4069 = vmatpush3.msra.mxu0 %v551_v7 }
  0xac   :  { %4417 = vrot.lane.b32.xlu1 %v4416_v4, %s5121_s2  ;;  %4070 = vmatprep.subr.mxu0 %v550_v11 }
  0xad   :  { %4071 = vmatpush3.msra.mxu0 %v550_v11 }
 0x108   :  { %v4363_v13 = vpop.permute.xlu0 %4362 }
 0x109   :  { %v4365_v15 = vunpack.i.h.bf16 %v4363_v13  ;;  %v4364_v16 = vunpack.i.l.bf16 %v4363_v13 }
 0x10a   :  { %v4373_v17 = vpop.permute.xlu1 %4372 }
 0x10b   :  { %v4375_v19 = vunpack.i.h.bf16 %v4373_v17  ;;  %v4374_v20 = vunpack.i.l.bf16 %v4373_v17  ;;  %v524_v26 = vsel %vm6274_vm0, %v339_v18, %v4364_v16  ;;  %v525_v28 = vsel %vm6274_vm0, %v340_v14, %v4365_v15 }
 0x10c   :  { %v4368_v21 = vpop.permute.xlu0 %4367 }
 0x10d   :  { %v4370_v23 = vunpack.i.h.bf16 %v4368_v21  ;;  %v4369_v24 = vunpack.i.l.bf16 %v4368_v21 }
 0x10e   :  { %v4378_v25 = vpop.permute.xlu1 %4377 }
 0x10f   :  { %v533_v38 = vsel %vm532_vm1, %v524_v26, %v4369_v24  ;;  %v534_v31 = vsel %vm532_vm1, %v525_v28, %v4370_v23  ;;  %v4380_v39 = vunpack.i.h.bf16 %v4378_v25  ;;  %v4379_v41 = vunpack.i.l.bf16 %v4378_v25  ;;  %v3793_v28 = vld [vmem:[%s6256_s4] ss:$0 sm:$0xff] }
 0x110   :  { %v4383_v32 = vpop.permute.xlu0 %4382  ;;  %v542_v33 = vsel %vm541_vm2, %v533_v38, %v4374_v20  ;;  %v543_v29 = vsel %vm541_vm2, %v534_v31, %v4375_v19  ;;  %v5123_v26 = vmov 0  }
 0x111   :  { %4072 = vmatprep.mubr.f32.mxu0 %v542_v33  ;;  %v4385_v49 = vunpack.i.h.bf16 %v4383_v32  ;;  %v4384_v52 = vunpack.i.l.bf16 %v4383_v32  ;;  %v526_v54 = vsel %vm6274_vm0, %v341_v37, %v4379_v41  ;;  %v527_v8 = vsel %vm6274_vm0, %v342_v35, %v4380_v39  ;;  %4421 = vset.pattern.permute.xlu0 %v5123_v26 }
 0x112   :  { %v4393_v42 = vpop.permute.xlu1 %4392  ;;  %4073 = vmatmul.mubr.f32.vlgmr.msra.gmra.mxu0 %v543_v29  ;;  %4422 = vset.pattern.permute.xlu1 %v5123_v26 }
 0x113   :  { %v4395_v45 = vunpack.i.h.bf16 %v4393_v42  ;;  %v4394_v46 = vunpack.i.l.bf16 %v4393_v42  ;;  %v528_v63 = vsel %vm6274_vm0, %v343_v44, %v4384_v52  ;;  %v529_v0 = vsel %vm6274_vm0, %v344_v43, %v4385_v49  ;;  %v5528_v43 = vld [vmem:[%s6257_s5] ss:$0 sm:$0xff] }
 0x114   :  { %v4388_v47 = vpop.permute.xlu0 %4387 }
 0x115   :  { %v4390_v53 = vunpack.i.h.bf16 %v4388_v47  ;;  %v4389_v10 = vunpack.i.l.bf16 %v4388_v47 }
 0x116   :  { %v4398_v55 = vpop.permute.xlu1 %4397 }
 0x117   :  { %v535_v57 = vsel %vm532_vm1, %v526_v54, %v4389_v10  ;;  %v536_v58 = vsel %vm532_vm1, %v527_v8, %v4390_v53  ;;  %v4400_v6 = vunpack.i.h.bf16 %v4398_v55  ;;  %v4399_v9 = vunpack.i.l.bf16 %v4398_v55 }
 0x118   :  { %v4403_v59 = vpop.permute.xlu0 %4402  ;;  %v544_v22 = vsel %vm541_vm2, %v535_v57, %v4394_v46  ;;  %v545_v60 = vsel %vm541_vm2, %v536_v58, %v4395_v45 }
 0x119   :  { %v4405_v61 = vunpack.i.h.bf16 %v4403_v59  ;;  %v4404_v62 = vunpack.i.l.bf16 %v4403_v59  ;;  %4075 = vmatprep.mubr.f32.mxu0 %v544_v22  ;;  %v537_v3 = vsel %vm532_vm1, %v528_v63, %v4399_v9  ;;  %v538_v4 = vsel %vm532_vm1, %v529_v0, %v4400_v6 }
 0x11a   :  { %4076 = vmatmul.mubr.f32.gmra.mxu0 %v545_v60  ;;  %v4408_v5 = vpop.permute.xlu1 %4407 }
 0x11b   :  { %v546_v7 = vsel %vm541_vm2, %v537_v3, %v4404_v62  ;;  %v4410_v11 = vunpack.i.h.bf16 %v4408_v5  ;;  %v4409_v13 = vunpack.i.l.bf16 %v4408_v5  ;;  %v547_v17 = vsel %vm541_vm2, %v538_v4, %v4405_v61 }
 0x11c   :  { %4078 = vmatprep.mubr.f32.mxu0 %v546_v7  ;;  %v4413_v14 = vpop.permute.xlu0 %4412 }
 0x11d   :  { %v4415_v15 = vunpack.i.h.bf16 %v4413_v14  ;;  %v4414_v16 = vunpack.i.l.bf16 %v4413_v14  ;;  %v530_v50 = vsel %vm6274_vm0, %v345_v2, %v4409_v13  ;;  %v531_v48 = vsel %vm6274_vm0, %v346_v1, %v4410_v11 }
 0x11e   :  { %4079 = vmatmul.mubr.f32.gmra.mxu0 %v547_v17  ;;  %v4418_v18 = vpop.permute.xlu1 %4417 }
 0x11f   :  { %v539_v19 = vsel %vm532_vm1, %v530_v50, %v4414_v16  ;;  %v540_v20 = vsel %vm532_vm1, %v531_v48, %v4415_v15  ;;  %v4420_v21 = vunpack.i.h.bf16 %v4418_v18  ;;  %v4419_v23 = vunpack.i.l.bf16 %v4418_v18 }
 0x120   :  { %vm758_vm1 = vcmask 261122  }
 0x121   :  { %v548_v24 = vsel %vm541_vm2, %v539_v19, %v4419_v23  ;;  %v549_v25 = vsel %vm541_vm2, %v540_v20, %v4420_v21  ;;  %vm742_vm2 = vcmask 261121  }
 0x122   :  { %4081 = vmatprep.mubr.f32.mxu0 %v548_v24 }
 0x123   :  { %4082 = vmatmul.mubr.f32.gmra.mxu0 %v549_v25 }
 0x1d2   :  { %v4074_v38 = vpop.f32.mrf.mxu0 }
 0x1d3   :  { %v645_v31 = vadd.f32 %v4074_v38, %v3793_v28 }
 0x1d4   :  { %v639_v32 = vpop.f32.mrf.mxu0 }
 0x1d5   :  { %4436 = vtanh.f32 %v645_v31  ;;  %v640_v33 = vadd.f32 %v3793_v28, %v639_v32 }
 0x1d7   :  { %4438 = vtanh.f32 %v640_v33 }
 0x1da   :  { %v4077_v29 = vpop.f32.mrf.mxu0 }
 0x1db   :  { %v655_v35 = vadd.f32 %v4077_v29, %v3793_v28 }
 0x1dc   :  { %v649_v37 = vpop.f32.mrf.mxu0 }
 0x1dd   :  { %4440 = vtanh.f32 %v655_v35  ;;  %v650_v39 = vadd.f32 %v3793_v28, %v649_v37 }
 0x1de   :  { %v4080_v41 = vpop.f32.mrf.mxu0 }
 0x1df   :  { %4442 = vtanh.f32 %v650_v39  ;;  %v665_v42 = vadd.f32 %v4080_v41, %v3793_v28 }
 0x1e0   :  { %v659_v44 = vpop.f32.mrf.mxu0 }
 0x1e1   :  { %4444 = vtanh.f32 %v665_v42  ;;  %v660_v45 = vadd.f32 %v3793_v28, %v659_v44 }
 0x1e2   :  { %v4437_v46 = vpop.eup %4436 }
 0x1e3   :  { %v694_v47 = vmul.f32 %v4437_v46, %v5528_v43  ;;  %4446 = vtanh.f32 %v660_v45  ;;  %v4083_v52 = vpop.f32.mrf.mxu0 }
 0x1e4   :  { %v4439_v49 = vpop.eup %4438  ;;  %v675_v54 = vadd.f32 %v4083_v52, %v3793_v28 }
 0x1e5   :  { %v5531_v53 = vrot.slane %v694_v47, 7  ;;  %v693_v10 = vmul.f32 %v4439_v49, %v5528_v43  ;;  %v669_v8 = vpop.f32.mrf.mxu0 }
 0x1e6   :  { %4448 = vtanh.f32 %v675_v54  ;;  %v670_v55 = vadd.f32 %v3793_v28, %v669_v8 }
 0x1e7   :  { %v839_v57 = vsel %vm838_vm3, %v693_v10, 0.0  ;;  %v814_v58 = vsel %vm6275_vm4, %v5531_v53, %v693_v10  ;;  %v798_v1 = vsel %vm6276_vm6, %v5531_v53, %v693_v10  ;;  %v782_v2 = vsel %vm6277_vm7, %v5531_v53, %v693_v10 }
 0x1e8   :  { %840 = vadd.xlane.f32.xlu0 %v839_v57  ;;  %4450 = vtanh.f32 %v670_v55  ;;  %v823_v9 = vsel %vm822_vm5, %v814_v58, 0.0  ;;  %v766_v3 = vsel %vm719_vm8, %v5531_v53, %v693_v10  ;;  %v750_v4 = vsel %vm716_vm9, %v5531_v53, %v693_v10 }
 0x1e9   :  { %v734_v17 = vsel %vm713_vm12, %v5531_v53, %v693_v10  ;;  %v711_v19 = vsel %vm710_vm13, %v5531_v53, %v693_v10  ;;  %vm762_vm3 = vcmask 254976   ;;  %vm794_vm5 = vcmask 257024  }
 0x1ea   :  { %v4441_v6 = vpop.eup %4440 }
 0x1eb   :  { %v696_v22 = vmul.f32 %v4441_v6, %v5528_v43 }
 0x1ec   :  { %v4443_v59 = vpop.eup %4442  ;;  %824 = vadd.xlane.f32.xlu0 %v823_v9 }
 0x1ed   :  { %v695_v60 = vmul.f32 %v4443_v59, %v5528_v43  ;;  %v5549_v5 = vrot.slane %v696_v22, 5 }
 0x1ee   :  { %v4445_v61 = vpop.eup %4444 }
 0x1ef   :  { %v5538_v62 = vrot.slane %v695_v60, 6  ;;  %v698_v63 = vmul.f32 %v4445_v61, %v5528_v43 }
 0x1f0   :  { %v4447_v0 = vpop.eup %4446 }
 0x1f1   :  { %v697_v7 = vmul.f32 %v4447_v0, %v5528_v43  ;;  %v799_v11 = vsel %vm6275_vm4, %v5538_v62, %v798_v1  ;;  %v783_v13 = vsel %vm6276_vm6, %v5538_v62, %v782_v2  ;;  %v767_v15 = vsel %vm6277_vm7, %v5538_v62, %v766_v3 }
 0x1f2   :  { %v807_v14 = vsel %vm806_vm10, %v799_v11, 0.0  ;;  %v751_v16 = vsel %vm719_vm8, %v5538_v62, %v750_v4  ;;  %v5563_v50 = vrot.slane %v698_v63, 3  ;;  %v784_v18 = vsel %vm6275_vm4, %v5549_v5, %v783_v13 }
 0x1f3   :  { %v5565_v48 = vrot.slane %v697_v7, 4  ;;  %808 = vadd.xlane.f32.xlu0 %v807_v14  ;;  %v4449_v20 = vpop.eup %4448  ;;  %v768_v21 = vsel %vm6276_vm6, %v5549_v5, %v767_v15  ;;  %v752_v23 = vsel %vm6277_vm7, %v5549_v5, %v751_v16  ;;  %v735_v24 = vsel %vm716_vm9, %v5538_v62, %v734_v17 }
 0x1f4   :  { %v714_v25 = vsel %vm713_vm12, %v5538_v62, %v711_v19  ;;  %v700_v26 = vmul.f32 %v4449_v20, %v5528_v43  ;;  %v791_v32 = vsel %vm790_vm11, %v784_v18, 0.0  ;;  %v736_v35 = vsel %vm719_vm8, %v5549_v5, %v735_v24  ;;  %v934_v24 = vld [vmem:[%s6259_s7 + $0x8] sm:$0xff] }
 0x1f5   :  { %v769_v28 = vsel %vm6275_vm4, %v5565_v48, %v768_v21  ;;  %v753_v38 = vsel %vm6276_vm6, %v5565_v48, %v752_v23  ;;  %v4451_v31 = vpop.eup %4450  ;;  %v737_v41 = vsel %vm6277_vm7, %v5565_v48, %v736_v35  ;;  %v717_v42 = vsel %vm716_vm9, %v5549_v5, %v714_v25  ;;  %v936_v21 = vld [vmem:[%s6259_s7 + $0x18] sm:$0xff]  ;;  %v935_v23 = vld [vmem:[%s6259_s7 + $0x10] sm:$0xff]  ;;  %v933_v25 = vld [vmem:[%s6259_s7] sm:$0xff] }
 0x1f6   :  { %v775_v33 = vsel %vm774_vm14, %v769_v28, 0.0  ;;  %v754_v29 = vsel %vm6275_vm4, %v5563_v50, %v753_v38  ;;  %v727_v37 = vrot.slane %v700_v26, 1  ;;  %v699_v39 = vmul.f32 %v4451_v31, %v5528_v43  ;;  %4084 = vmatprep.subr.mxu1 %v936_v21  ;;  %v1076_v26 = vld [vmem:[%s6260_s8 + $0x18] sm:$0xff]  ;;  %v1075_v28 = vld [vmem:[%s6260_s8 + $0x10] sm:$0xff]  ;;  %v1074_v38 = vld [vmem:[%s6260_s8 + $0x8] sm:$0xff] }
 0x1f7   :  { %792 = vadd.xlane.f32.xlu0 %v791_v32  ;;  %776 = vadd.xlane.f32.xlu1 %v775_v33  ;;  %v720_v44 = vsel %vm719_vm8, %v5565_v48, %v717_v42  ;;  %v759_v47 = vsel %vm758_vm1, %v754_v29, 0.0  ;;  %v738_v49 = vsel %vm6276_vm6, %v5563_v50, %v737_v41  ;;  %v785_v54 = vsel %vm710_vm13, %v5563_v50, %v5565_v48  ;;  %v1073_v31 = vld [vmem:[%s6260_s8] sm:$0xff]  ;;  %v5689_v32 = vld [vmem:[%s6261_s9 + $0x18] sm:$0xff]  ;;  %v5696_v33 = vld [vmem:[%s6261_s9 + $0x10] sm:$0xff] }
 0x1f8   :  { %v724_v45 = vrot.slane %v699_v39, 2  ;;  %v747_v46 = vsel %vm746_vm15, %v727_v37, 0.0  ;;  %v723_v43 = vsel %vm6277_vm7, %v5563_v50, %v720_v44  ;;  %v800_v57 = vsel %vm710_vm13, %v5565_v48, %v5549_v5  ;;  %4085 = vmatpush3.msra.mxu1 %v936_v21 }
 0x1f9   :  { %v815_v58 = vsel %vm710_vm13, %v5549_v5, %v5538_v62  ;;  %v801_v61 = vsel %vm713_vm12, %v5563_v50, %v800_v57  ;;  %v830_v1 = vsel %vm710_vm13, %v5538_v62, %v5531_v53  ;;  %vm778_vm10 = vcmask 256000   ;;  %4086 = vmatprep.subr.mxu1 %v935_v23 }
 0x1fa   :  { %v739_v52 = vsel %vm6275_vm4, %v724_v45, %v738_v49  ;;  %v726_v10 = vsel %vm6276_vm6, %v724_v45, %v723_v43  ;;  %v786_v55 = vsel %vm713_vm12, %v724_v45, %v785_v54  ;;  %v816_v59 = vsel %vm713_vm12, %v5565_v48, %v815_v58  ;;  %4087 = vmatpush3.msra.mxu1 %v935_v23 }
 0x1fb   :  { %748 = vadd.xlane.f32.xlu1 %v747_v46  ;;  %760 = vadd.xlane.f32.xlu0 %v759_v47  ;;  %v729_v8 = vsel %vm6275_vm4, %v727_v37, %v726_v10  ;;  %v743_v6 = vsel %vm742_vm2, %v739_v52, 0.0  ;;  %v755_v22 = vsel %vm710_vm13, %v727_v37, %v724_v45  ;;  %v787_v60 = vsel %vm716_vm9, %v727_v37, %v786_v55 }
 0x1fc   :  { %v731_v9 = vsel %vm6274_vm0, %v729_v8, 0.0  ;;  %v770_v63 = vsel %vm710_vm13, %v724_v45, %v5563_v50  ;;  %v802_v0 = vsel %vm716_vm9, %v724_v45, %v801_v61  ;;  %v763_v2 = vsel %vm762_vm3, %v755_v22, 0.0  ;;  %4088 = vmatprep.subr.mxu1 %v934_v24 }
 0x1fd   :  { %v795_v3 = vsel %vm794_vm5, %v787_v60, 0.0  ;;  %v817_v4 = vsel %vm716_vm9, %v5563_v50, %v816_v59  ;;  %v771_v7 = vsel %vm713_vm12, %v727_v37, %v770_v63  ;;  %v803_v11 = vsel %vm719_vm8, %v727_v37, %v802_v0  ;;  %4089 = vmatpush3.msra.mxu1 %v934_v24 }
 0x1fe   :  { %vm810_vm11 = vcmask 258048   ;;  %v831_v13 = vsel %vm713_vm12, %v5549_v5, %v830_v1  ;;  %v818_v14 = vsel %vm719_vm8, %v724_v45, %v817_v4  ;;  %v779_v62 = vsel %vm778_vm10, %v771_v7, 0.0  ;;  %4090 = vmatprep.subr.mxu1 %v933_v25 }
 0x1ff   :  { %744 = vadd.xlane.f32.xlu0 %v743_v6  ;;  %732 = vadd.xlane.f32.xlu1 %v731_v9  ;;  %v832_v53 = vsel %vm716_vm9, %v5565_v48, %v831_v13  ;;  %v811_v15 = vsel %vm810_vm11, %v803_v11, 0.0  ;;  %v819_v16 = vsel %vm6277_vm7, %v727_v37, %v818_v14  ;;  %vm826_vm14 = vcmask 259072   ;;  %v3795_v48 = vld [vmem:[#allocation2] ss:$0 sm:$0xff] }
 0x200   :  { %v833_v17 = vsel %vm719_vm8, %v5563_v50, %v832_v53  ;;  %v827_v19 = vsel %vm826_vm14, %v819_v16, 0.0  ;;  %vm842_vm15 = vcmask 260096   ;;  %v5124_v50 = vmov 0.0   ;;  %4091 = vmatpush3.msra.mxu1 %v933_v25 }
 0x201   :  { %v834_v18 = vsel %vm6277_vm7, %v724_v45, %v833_v17  ;;  %4135 = vmatprep.subr.mxu0 %v5124_v50  ;;  %vm5125_vm1 = vmmov 0   ;;  %4093 = vmatmul.mubr.msk.f32.vlgmr.msra.gmra.mxu1 %vm6274_vm0, %v5312_v27  ;;  %vm848_vm2 = vcmask 1046528   ;;  %vm855_vm3 = vcmask 1045504  }
 0x202   :  { %v835_v5 = vsel %vm6276_vm6, %v727_v37, %v834_v18  ;;  %4143 = vmatprep.mubr.msk.f32.mxu0 %vm5125_vm1, %v5124_v50  ;;  %4104 = vmatprep.subr.mxu1 %v1076_v26  ;;  %vm895_vm5 = vcmask 7168   ;;  %vm897_vm10 = vcmask 15360   ;;  %vm862_vm11 = vcmask 1044480   ;;  %v5742_v18 = vld [vmem:[#allocation8 + $0x18] sm:$0xff] }
 0x203   :  { %764 = vadd.xlane.f32.xlu0 %v763_v2  ;;  %796 = vadd.xlane.f32.xlu1 %v795_v3  ;;  %v843_v20 = vsel %vm842_vm15, %v835_v5, 0.0  ;;  %vm869_vm14 = vcmask 1043456   ;;  %vm899_vm15 = vcmask 23552   ;;  %vm883_vm4 = vcmask 1041408   ;;  %v5750_v5 = vld [vmem:[#allocation8 + $0x8] sm:$0xff] }
 0x204   :  { %4095 = vmatprep.mubr.msk.f32.mxu1 %vm6274_vm0, %v5331_v36  ;;  %4105 = vmatpush3.msra.mxu1 %v1076_v26  ;;  %vm890_vm6 = vcmask 1040384   ;;  %vm905_vm7 = vcmask 48128  }
 0x205   :  { %4106 = vmatprep.subr.mxu1 %v1075_v28  ;;  %4096 = vmatmul.mubr.msk.f32.gmra.mxu1 %vm6274_vm0, %v5344_v40 }
 0x206   :  { %4107 = vmatpush3.msra.mxu1 %v1075_v28  ;;  %4098 = vmatprep.mubr.msk.f32.mxu1 %vm6274_vm0, %v5362_v51 }
 0x207   :  { %780 = vadd.xlane.f32.xlu0 %v779_v62  ;;  %812 = vadd.xlane.f32.xlu1 %v811_v15 }
 0x208   :  { %4108 = vmatprep.subr.mxu1 %v1074_v38  ;;  %4136 = vmatpush3.msra.mxu0 %v5742_v18 }
 0x209   :  { %4109 = vmatpush3.msra.mxu1 %v1074_v38  ;;  %4137 = vmatprep.subr.mxu0 %v5124_v50 }
 0x20a   :  { %4110 = vmatprep.subr.mxu1 %v1073_v31  ;;  %4099 = vmatmul.mubr.msk.f32.gmra.mxu1 %vm6274_vm0, %v5370_v56 }
 0x20b   :  { %828 = vadd.xlane.f32.xlu1 %v827_v19  ;;  %4111 = vmatpush3.msra.mxu1 %v1073_v31  ;;  %v5744_v19 = vld [vmem:[#allocation8 + $0x10] sm:$0xff] }
 0x20c   :  { %4124 = vmatprep.subr.mxu1 %v5124_v50  ;;  %4101 = vmatprep.mubr.msk.f32.mxu1 %vm6274_vm0, %v5425_v30 }
 0x20d   :  { %4138 = vmatpush3.msra.mxu0 %v5744_v19 }
 0x20e   :  { %4102 = vmatmul.mubr.msk.f32.gmra.mxu1 %vm6274_vm0, %v5430_v34  ;;  %4139 = vmatprep.subr.mxu0 %v5124_v50 }
 0x20f   :  { %844 = vadd.xlane.f32.xlu1 %v843_v20  ;;  %4112 = vmatprep.mubr.msk.f32.mxu1 %vm6274_vm0, %v5288_v12  ;;  %v5705_v12 = vld [vmem:[%s6261_s9 + $0x8] sm:$0xff]  ;;  %v5752_v20 = vld [vmem:[#allocation8] sm:$0xff] }
 0x210   :  { %4140 = vmatpush3.msra.mxu0 %v5750_v5 }
 0x211   :  { %4141 = vmatprep.subr.mxu0 %v5124_v50 }
 0x212   :  { %4113 = vmatmul.mubr.msk.f32.vlgmr.msra.gmra.mxu1 %vm6274_vm0, %v5312_v27  ;;  %v5714_v27 = vld [vmem:[%s6261_s9] sm:$0xff]  ;;  %4142 = vmatpush3.msra.mxu0 %v5752_v20 }
 0x213   :  { %4115 = vmatprep.mubr.msk.f32.mxu1 %vm6274_vm0, %v5331_v36  ;;  %4125 = vmatpush3.msra.mxu1 %v5689_v32 }
 0x214   :  { %4126 = vmatprep.subr.mxu1 %v5124_v50  ;;  %4144 = vmatmul.mubr.f32.vlgmr.msra.gmra.mxu0 %v5124_v50 }
 0x215   :  { %4127 = vmatpush3.msra.mxu1 %v5696_v33  ;;  %4157 = vmatprep.subr.mxu0 %v5124_v50 }
 0x216   :  { %4116 = vmatmul.mubr.msk.f32.gmra.mxu1 %vm6274_vm0, %v5344_v40  ;;  %4128 = vmatprep.subr.mxu1 %v5124_v50 }
 0x217   :  { %4118 = vmatprep.mubr.msk.f32.mxu1 %vm6274_vm0, %v5362_v51  ;;  %4129 = vmatpush3.msra.mxu1 %v5705_v12 }
 0x218   :  { %4130 = vmatprep.subr.mxu1 %v5124_v50  ;;  %4158 = vmatpush3.msra.mxu0 %v5742_v18 }
 0x219   :  { %4131 = vmatpush3.msra.mxu1 %v5714_v27  ;;  %4165 = vmatprep.mubr.msk.f32.mxu0 %vm5125_vm1, %v5124_v50 }
 0x21a   :  { %4119 = vmatmul.mubr.msk.f32.gmra.mxu1 %vm6274_vm0, %v5370_v56  ;;  %4146 = vmatprep.subr.mxu1 %v5124_v50 }
 0x21b   :  { %4121 = vmatprep.mubr.msk.f32.mxu1 %vm6274_vm0, %v5425_v30  ;;  %4159 = vmatprep.subr.mxu0 %v5124_v50 }
 0x21c   :  { %4160 = vmatpush3.msra.mxu0 %v5744_v19 }
 0x21d   :  { %916 = vperm.xlu0 %4421, %v3795_v48   ;;  %4161 = vmatprep.subr.mxu0 %v5124_v50 }
 0x21e   :  { %4122 = vmatmul.mubr.msk.f32.gmra.mxu1 %vm6274_vm0, %v5430_v34  ;;  %vm901_vm0 = vcmask 31744   ;;  %4162 = vmatpush3.msra.mxu0 %v5750_v5 }
 0x21f   :  { %4132 = vmatprep.mubr.msk.f32.mxu1 %vm5125_vm1, %v5124_v50  ;;  %4163 = vmatprep.subr.mxu0 %v5124_v50 }
 0x220   :  { %4164 = vmatpush3.msra.mxu0 %v5752_v20 }
 0x221   :  { %4179 = vmatprep.subr.mxu0 %v5124_v50 }
 0x222   :  { %4133 = vmatmul.mubr.f32.vlgmr.msra.gmra.mxu1 %v5124_v50 }
 0x223   :  { %4147 = vmatpush3.msra.mxu1 %v5689_v32  ;;  %4154 = vmatprep.mubr.msk.f32.mxu1 %vm5125_vm1, %v5124_v50 }
 0x224   :  { %4148 = vmatprep.subr.mxu1 %v5124_v50 }
 0x225   :  { %4149 = vmatpush3.msra.mxu1 %v5696_v33 }
 0x226   :  { %4150 = vmatprep.subr.mxu1 %v5124_v50 }
 0x227   :  { %4151 = vmatpush3.msra.mxu1 %v5705_v12 }
 0x228   :  { %4152 = vmatprep.subr.mxu1 %v5124_v50 }
 0x229   :  { %4153 = vmatpush3.msra.mxu1 %v5714_v27 }
 0x22a   :  { %4168 = vmatprep.subr.mxu1 %v5124_v50 }
 0x271   :  { %v841_v36 = vpop.xlane.xlu0 %840 }
 0x272   :  { %v891_v11 = vrot.slane %v841_v36, 7 }
 0x275   :  { %v825_v40 = vpop.xlane.xlu0 %824 }
 0x276   :  { %v884_v1 = vrot.slane %v825_v40, 6 }
 0x27c   :  { %v809_v51 = vpop.xlane.xlu0 %808 }
 0x27d   :  { %v877_v61 = vrot.slane %v809_v51, 5 }
 0x280   :  { %v793_v56 = vpop.xlane.xlu0 %792  ;;  %v777_v30 = vpop.xlane.xlu1 %776 }
 0x281   :  { %v863_v54 = vrot.slane %v777_v30, 3  ;;  %v870_v55 = vrot.slane %v793_v56, 4  ;;  %v5126_v56 = vmov 3  }
 0x282   :  { %4425 = vset.pattern.permute.xlu0 %v5126_v56 }
 0x284   :  { %v749_v34 = vpop.xlane.xlu1 %748  ;;  %v761_v29 = vpop.xlane.xlu0 %760 }
 0x285   :  { %v850_v44 = vrot.slane %v749_v34, 1  ;;  %v856_v46 = vrot.slane %v761_v29, 2 }
 0x288   :  { %v745_v35 = vpop.xlane.xlu0 %744  ;;  %v733_v37 = vpop.xlane.xlu1 %732 }
 0x289   :  { %v849_v39 = vrot.slane %v745_v35, 1 }
 0x28b   :  { %v851_v47 = vsel %vm848_vm2, %v849_v39, %v850_v44  ;;  %vm876_vm2 = vcmask 1042432  }
 0x28c   :  { %v765_v41 = vpop.xlane.xlu0 %764  ;;  %v797_v42 = vpop.xlane.xlu1 %796  ;;  %v896_v57 = vsel %vm895_vm5, %v733_v37, %v851_v47  ;;  %vm907_vm5 = vcmask 56320  }
 0x28d   :  { %v857_v45 = vrot.slane %v765_v41, 2  ;;  %v871_v43 = vrot.slane %v797_v42, 4  ;;  %v3796_v42 = vld [vmem:[#allocation9] ss:$0 sm:$0xff] }
 0x28f   :  { %v858_v49 = vsel %vm855_vm3, %v856_v46, %v857_v45  ;;  %v872_v59 = vsel %vm869_vm14, %v870_v55, %v871_v43  ;;  %vm903_vm3 = vcmask 39936  }
 0x290   :  { %v781_v52 = vpop.xlane.xlu0 %780  ;;  %v813_v10 = vpop.xlane.xlu1 %812  ;;  %v898_v58 = vsel %vm897_vm10, %v896_v57, %v858_v49  ;;  %vm920_vm10 = vcmask 64512  }
 0x291   :  { %v864_v8 = vrot.slane %v781_v52, 3  ;;  %v878_v9 = vrot.slane %v813_v10, 5 }
 0x293   :  { %v865_v6 = vsel %vm862_vm11, %v863_v54, %v864_v8  ;;  %v879_v2 = vsel %vm876_vm2, %v877_v61, %v878_v9 }
 0x294   :  { %v900_v22 = vsel %vm899_vm15, %v898_v58, %v865_v6  ;;  %v829_v60 = vpop.xlane.xlu1 %828 }
 0x295   :  { %v885_v63 = vrot.slane %v829_v60, 6  ;;  %v902_v0 = vsel %vm901_vm0, %v900_v22, %v872_v59  ;;  %vm6286_vm0 = vcmask 1045509  }
 0x296   :  { %v904_v7 = vsel %vm903_vm3, %v902_v0, %v879_v2  ;;  %vm6291_vm14 = vmmov %vm6286_vm0 }
 0x297   :  { %v886_v3 = vsel %vm883_vm4, %v884_v1, %v885_v63  ;;  %vm6287_vm4 = vcmask 1046534  }
 0x298   :  { %v845_v4 = vpop.xlane.xlu1 %844  ;;  %v917_v14 = vpop.permute.xlu0 %916  ;;  %v906_v62 = vsel %vm905_vm7, %v904_v7, %v886_v3  ;;  %vm6289_vm7 = vcmask 261120   ;;  %vm6292_vm15 = vmmov %vm6287_vm4 }
 0x299   :  { %v892_v13 = vrot.slane %v845_v4, 7  ;;  %vm6290_vm11 = vmmov %vm6289_vm7 }
 0x29a   :  { %vm6294_vm3 = vmmov %vm6289_vm7 }
 0x29b   :  { %v893_v53 = vsel %vm890_vm6, %v891_v11, %v892_v13  ;;  %vm6288_vm6 = vcmask 1047559  }
 0x29c   :  { %v908_v15 = vsel %vm907_vm5, %v906_v62, %v893_v53  ;;  %vm6293_vm2 = vmmov %vm6288_vm6 }
 0x29d   :  { %v919_v16 = vadd.f32 %v917_v14, %v908_v15  ;;  %vm6295_vm5 = vmmov %vm6294_vm3 }
 0x29f   :  { %v921_v17 = vsel %vm920_vm10, %v919_v16, -inf }
 0x2a0   :  { %922 = vmax.xlane.f32.xlu1 %v921_v17 }
 0x2c1   :  { %v4094_v26 = vpop.f32.mrf.mxu1 }
 0x2c2   :  { %v5792_v47 = vadd.f32 %v4094_v26, %v3796_v42 }
 0x2c3   :  { %v1034_v28 = vpop.f32.mrf.mxu1 }
 0x2c4   :  { %v5788_v45 = vadd.f32 %v3796_v42, %v1034_v28 }
 0x2c5   :  { %v4097_v38 = vpop.f32.mrf.mxu1 }
 0x2c6   :  { %v5794_v49 = vadd.f32 %v4097_v38, %v3796_v42 }
 0x2c7   :  { %v1044_v31 = vpop.f32.mrf.mxu1 }
 0x2c8   :  { %v5796_v43 = vadd.f32 %v3796_v42, %v1044_v31 }
 0x2ca   :  { %v4100_v36 = vpop.f32.mrf.mxu1 }
 0x2cb   :  { %v5800_v10 = vadd.f32 %v4100_v36, %v3796_v42 }
 0x2cc   :  { %v1054_v40 = vpop.f32.mrf.mxu1 }
 0x2cd   :  { %v5798_v52 = vadd.f32 %v3796_v42, %v1054_v40 }
 0x2ce   :  { %v4103_v51 = vpop.f32.mrf.mxu1 }
 0x2cf   :  { %v5802_v54 = vadd.f32 %v4103_v51, %v3796_v42 }
 0x2d0   :  { %v1064_v30 = vpop.f32.mrf.mxu1 }
 0x2d1   :  { %v5804_v8 = vadd.f32 %v3796_v42, %v1064_v30 }
 0x2d2   :  { %v5774_v34 = vpop.f32.mrf.mxu1 }
 0x2d4   :  { %v5776_v29 = vpop.f32.mrf.mxu1  ;;  %v1415_v36 = vpop.f32.mrf.mxu0 }
 0x2d6   :  { %v5778_v35 = vpop.f32.mrf.mxu1 }
 0x2d8   :  { %v5780_v37 = vpop.f32.mrf.mxu1 }
 0x2da   :  { %v5782_v39 = vpop.f32.mrf.mxu1 }
 0x2dc   :  { %v5784_v41 = vpop.f32.mrf.mxu1 }
 0x2de   :  { %v5786_v44 = vpop.f32.mrf.mxu1 }
 0x2e0   :  { %v5790_v46 = vpop.f32.mrf.mxu1 }
 0x2e2   :  { %v1267_v55 = vpop.f32.mrf.mxu1 }
 0x2e3   :  { %v1272_v57 = vrot.slane %v1267_v55, 1  ;;  %v1273_v58 = vrot.slane %v1267_v55, 2  ;;  %v1274_v6 = vrot.slane %v1267_v55, 3  ;;  %v1275_v9 = vrot.slane %v1267_v55, 4 }
 0x2e4   :  { %v1276_v59 = vrot.slane %v1267_v55, 5  ;;  %v1277_v22 = vrot.slane %v1267_v55, 6  ;;  %v1278_v60 = vrot.slane %v1267_v55, 7  ;;  %v1287_v61 = vadd.f32 %v1267_v55, %v5788_v45  ;;  %v4134_v63 = vpop.f32.mrf.mxu1  ;;  %v4145_v55 = vpop.f32.mrf.mxu0 }
 0x2e5   :  { %v1288_v0 = vadd.f32 %v1272_v57, %v5792_v47  ;;  %v1289_v1 = vadd.f32 %v1273_v58, %v5796_v43  ;;  %v1290_v2 = vadd.f32 %v1274_v6, %v5794_v49  ;;  %v1291_v3 = vadd.f32 %v1275_v9, %v5798_v52 }
 0x2e6   :  { %v1292_v4 = vadd.f32 %v1276_v59, %v5800_v10  ;;  %v1293_v7 = vadd.f32 %v1277_v22, %v5804_v8  ;;  %v3814_v11 = vmul.f32 -1.442695, %v1287_v61  ;;  %v1294_v13 = vadd.f32 %v1278_v60, %v5802_v54  ;;  %v5814_v22 = vld [vmem:[#allocation12] ss:$0 sm:$0xff]  ;;  %v3805_v61 = vld [vmem:[#allocation11] ss:$0 sm:$0xff] }
 0x2e7   :  { %v3815_v14 = vmul.f32 -1.442695, %v1288_v0  ;;  %v3816_v53 = vmul.f32 -1.442695, %v1289_v1  ;;  %v3817_v62 = vmul.f32 -1.442695, %v1290_v2  ;;  %v1416_v60 = vadd.f32 %v5814_v22, %v1415_v36 }
 0x2e8   :  { %v3818_v15 = vmul.f32 -1.442695, %v1291_v3  ;;  %v3820_v17 = vmul.f32 -1.442695, %v1293_v7  ;;  %v5818_v63 = vadd.f32 %v3805_v61, %v5776_v29  ;;  %v5821_v1 = vadd.f32 %v5774_v34, %v3805_v61 }
 0x2e9   :  { %v1420_v2 = vrot.slane %v1416_v60, 1  ;;  %v5827_v7 = vadd.f32 %v3805_v61, %v5780_v37  ;;  %v5833_v29 = vadd.f32 %v3805_v61, %v5784_v41 }
 0x329   :  { %v923_v48 = vpop.xlane.xlu1 %922 }
 0x32a   :  { %v924_v21 = vsub.f32 %v919_v16, %v923_v48  ;;  %v3819_v16 = vmul.f32 -1.442695, %v1292_v4  ;;  %v3821_v48 = vmul.f32 -1.442695, %v1294_v13  ;;  %v5824_v4 = vadd.f32 %v5778_v35, %v3805_v61 }
 0x32b   :  { %v1421_v13 = vrot.slane %v1416_v60, 2 }
 0x32c   :  { %v925_v23 = vmul.f32 1.442695, %v924_v21 }
 0x32e   :  { %4452 = vpow2.f32 %v925_v23 }
 0x32f   :  { %4454 = vpow2.f32 %v3814_v11 }
 0x330   :  { %4456 = vpow2.f32 %v3815_v14 }
 0x331   :  { %4458 = vpow2.f32 %v3816_v53  ;;  %v5830_v53 = vadd.f32 %v5782_v39, %v3805_v61 }
 0x332   :  { %4460 = vpow2.f32 %v3817_v62  ;;  %v1422_v62 = vrot.slane %v1416_v60, 3 }
 0x333   :  { %4462 = vpow2.f32 %v3818_v15 }
 0x334   :  { %4464 = vpow2.f32 %v3819_v16  ;;  %v5836_v16 = vadd.f32 %v5786_v44, %v3805_v61 }
 0x335   :  { %4466 = vpow2.f32 %v3820_v17  ;;  %v1423_v17 = vrot.slane %v1416_v60, 4 }
 0x336   :  { %4468 = vpow2.f32 %v3821_v48 }
 0x33b   :  { %v5769_v24 = vpop.eup %4452 }
 0x33c   :  { %v927_v25 = vsel %vm920_vm10, %v5769_v24, 0.0  ;;  %v4455_v21 = vpop.eup %4454 }
 0x33d   :  { %928 = vadd.xlane.f32.xlu1 %v927_v25  ;;  %v4457_v23 = vpop.eup %4456  ;;  %v1319_v25 = vadd.f32 1.0, %v4455_v21  ;;  %v5840_v21 = vadd.f32 %v3805_v61, %v5790_v46 }
 0x33e   :  { %v4459_v26 = vpop.eup %4458  ;;  %v1320_v28 = vadd.f32 1.0, %v4457_v23  ;;  %v1424_v23 = vrot.slane %v1416_v60, 5 }
 0x33f   :  { %v4461_v38 = vpop.eup %4460  ;;  %v1321_v31 = vadd.f32 1.0, %v4459_v26  ;;  %4470 = vrcp.f32 %v1319_v25  ;;  %v1425_v26 = vrot.slane %v1416_v60, 6 }
 0x340   :  { %v4463_v40 = vpop.eup %4462  ;;  %v1322_v51 = vadd.f32 1.0, %v4461_v38  ;;  %4472 = vrcp.f32 %v1320_v28 }
 0x341   :  { %v4465_v30 = vpop.eup %4464  ;;  %v1323_v42 = vadd.f32 1.0, %v4463_v40  ;;  %4474 = vrcp.f32 %v1321_v31  ;;  %v1426_v31 = vrot.slane %v1416_v60, 7 }
 0x342   :  { %v4467_v57 = vpop.eup %4466  ;;  %v1324_v58 = vadd.f32 1.0, %v4465_v30  ;;  %4476 = vrcp.f32 %v1322_v51 }
 0x343   :  { %v4469_v6 = vpop.eup %4468  ;;  %v1325_v9 = vadd.f32 1.0, %v4467_v57  ;;  %4478 = vrcp.f32 %v1323_v42 }
 0x344   :  { %v1326_v59 = vadd.f32 1.0, %v4469_v6  ;;  %4480 = vrcp.f32 %v1324_v58 }
 0x345   :  { %4482 = vrcp.f32 %v1325_v9 }
 0x346   :  { %4484 = vrcp.f32 %v1326_v59 }
 0x34c   :  { %v4471_v0 = vpop.eup %4470 }
 0x34d   :  { %v4473_v3 = vpop.eup %4472  ;;  %v1435_v11 = vmul.f32 %v4471_v0, %v1416_v60 }
 0x34e   :  { %v4475_v14 = vpop.eup %4474  ;;  %v1436_v34 = vmul.f32 %v4473_v3, %v1420_v2 }
 0x34f   :  { %v4477_v15 = vpop.eup %4476  ;;  %v1443_v35 = vadd.f32 %v1435_v11, %v5818_v63  ;;  %v1437_v37 = vmul.f32 %v4475_v14, %v1421_v13 }
 0x350   :  { %v4479_v48 = vpop.eup %4478  ;;  %v1438_v39 = vmul.f32 %v4477_v15, %v1422_v62  ;;  %v1444_v25 = vadd.f32 %v1436_v34, %v5821_v1 }
 0x351   :  { %v4481_v41 = vpop.eup %4480  ;;  %4486 = vtanh.f32 %v1443_v35  ;;  %v1439_v28 = vmul.f32 %v4479_v48, %v1423_v17  ;;  %v1445_v38 = vadd.f32 %v1437_v37, %v5827_v7 }
 0x352   :  { %v4483_v44 = vpop.eup %4482  ;;  %v1440_v36 = vmul.f32 %v4481_v41, %v1424_v23  ;;  %v1446_v40 = vadd.f32 %v1438_v39, %v5824_v4  ;;  %4488 = vtanh.f32 %v1444_v25 }
 0x353   :  { %v4485_v51 = vpop.eup %4484  ;;  %v1441_v30 = vmul.f32 %v4483_v44, %v1425_v26  ;;  %v1447_v46 = vadd.f32 %v1439_v28, %v5833_v29  ;;  %4490 = vtanh.f32 %v1445_v38 }
 0x354   :  { %v1442_v42 = vmul.f32 %v4485_v51, %v1426_v31  ;;  %v1448_v55 = vadd.f32 %v1440_v36, %v5830_v53  ;;  %4492 = vtanh.f32 %v1446_v40  ;;  %v5127_v31 = vmov 4  }
 0x355   :  { %v1449_v57 = vadd.f32 %v1441_v30, %v5840_v21  ;;  %4494 = vtanh.f32 %v1447_v46  ;;  %v5128_v36 = vmov 1   ;;  %v5129_v40 = vmov 6  }
 0x356   :  { %v1450_v58 = vadd.f32 %v1442_v42, %v5836_v16  ;;  %4496 = vtanh.f32 %v1448_v55  ;;  %v5130_v51 = vmov 7   ;;  %v5132_v30 = vmov 5  }
 0x357   :  { %4498 = vtanh.f32 %v1449_v57 }
 0x358   :  { %4500 = vtanh.f32 %v1450_v58 }
 0x35e   :  { %v4487_v6 = vpop.eup %4486 }
 0x35f   :  { %v4489_v9 = vpop.eup %4488 }
 0x360   :  { %v4491_v59 = vpop.eup %4490  ;;  %v1472_v60 = vrot.slane %v4489_v9, 7 }
 0x361   :  { %v4493_v61 = vpop.eup %4492  ;;  %v1474_v0 = vrot.slane %v4491_v59, 6 }
 0x362   :  { %v4495_v2 = vpop.eup %4494  ;;  %v1473_v3 = vsel %vm710_vm13, %v1472_v60, %v4487_v6  ;;  %v1476_v11 = vrot.slane %v4493_v61, 5 }
 0x363   :  { %v4497_v13 = vpop.eup %4496  ;;  %v1475_v14 = vsel %vm713_vm12, %v1474_v0, %v1473_v3  ;;  %v1478_v62 = vrot.slane %v4495_v2, 4 }
 0x364   :  { %v4499_v34 = vpop.eup %4498  ;;  %v1477_v15 = vsel %vm716_vm9, %v1476_v11, %v1475_v14  ;;  %v1480_v35 = vrot.slane %v4497_v13, 3 }
 0x365   :  { %v4501_v17 = vpop.eup %4500  ;;  %v1479_v37 = vsel %vm719_vm8, %v1478_v62, %v1477_v15  ;;  %v1482_v48 = vrot.slane %v4499_v34, 2 }
 0x366   :  { %v1481_v23 = vsel %vm6286_vm0, %v1480_v35, %v1479_v37  ;;  %v1484_v39 = vrot.slane %v4501_v17, 1 }
 0x367   :  { %v1483_v25 = vsel %vm6287_vm4, %v1482_v48, %v1481_v23 }
 0x368   :  { %v1485_v41 = vsel %vm6288_vm6, %v1484_v39, %v1483_v25  ;;  %vm6299_vm6 = vmmov %vm6294_vm3 }
 0x3c6   :  { %v929_v26 = vpop.xlane.xlu1 %928 }
 0x3c7   :  { %4502 = vrcp.f32 %v929_v26 }
 0x3d4   :  { %v4503_v28 = vpop.eup %4502 }
 0x3d5   :  { %v931_v38 = vmul.f32 %v4503_v28, %v5769_v24  ;;  %v5131_v24 = vmov 2  }
 0x3d7   :  { %932 = vst.msk [vmem:[#allocation21] sm:$0xff] %vm920_vm10, %v931_v38  ;;  %2330 = vperm.xlu0 %4425, %v931_v38   ;;  %1461 = vperm.xlu1 %4422, %v931_v38   ;;  %v1488_v44 = vsub.f32 1.0, %v931_v38  ;;  %vm6296_vm10 = vmmov %vm6286_vm0 }
 0x3d8   :  { %vm6297_vm0 = vmmov %vm6287_vm4 }
 0x3d9   :  { %vm6298_vm4 = vmmov %vm6293_vm2 }
 0x3db   :  { %4428 = vset.pattern.permute.xlu0 %v5127_v31  ;;  %1491 = vperm.xlu1 %4422, %v1488_v44  }
 0x3dc   :  { %2647 = vperm.xlu0 %4428, %v1488_v44  }
 0x3df   :  { %4423 = vset.pattern.permute.xlu1 %v5128_v36 }
 0x3e0   :  { %4430 = vset.pattern.permute.xlu0 %v5129_v40  ;;  %1752 = vperm.xlu1 %4423, %v931_v38  }
 0x3e1   :  { %3197 = vperm.xlu0 %4430, %v931_v38  }
 0x3e4   :  { %1780 = vperm.xlu1 %4423, %v1488_v44  }
 0x3e5   :  { %4433 = vset.pattern.permute.xlu0 %v5130_v51 }
 0x3e6   :  { %3514 = vperm.xlu0 %4433, %v1488_v44  }
 0x3e8   :  { %4424 = vset.pattern.permute.xlu1 %v5131_v24 }
 0x3e9   :  { %2041 = vperm.xlu1 %4424, %v931_v38  }
 0x3ed   :  { %2069 = vperm.xlu1 %4424, %v1488_v44  }
 0x3f1   :  { %4426 = vset.pattern.permute.xlu1 %v5126_v56 }
 0x3f2   :  { %2358 = vperm.xlu1 %4426, %v1488_v44  }
 0x3f6   :  { %4427 = vset.pattern.permute.xlu1 %v5127_v31 }
 0x3f7   :  { %2619 = vperm.xlu1 %4427, %v931_v38  }
 0x3fb   :  { %4429 = vset.pattern.permute.xlu1 %v5132_v30 }
 0x3fc   :  { %2908 = vperm.xlu1 %4429, %v931_v38  }
 0x400   :  { %2936 = vperm.xlu1 %4429, %v1488_v44  }
 0x404   :  { %4431 = vset.pattern.permute.xlu1 %v5129_v40 }
 0x405   :  { %3225 = vperm.xlu1 %4431, %v1488_v44  }
 0x409   :  { %4432 = vset.pattern.permute.xlu1 %v5130_v51 }
 0x40a   :  { %3486 = vperm.xlu1 %4432, %v931_v38  }
 0x452   :  { %v1462_v46 = vpop.permute.xlu1 %1461 }
 0x453   :  { %v1487_v55 = vmul.f32 %v1485_v41, %v1462_v46 }
 0x456   :  { %v1492_v42 = vpop.permute.xlu1 %1491 }
 0x457   :  { %v1494_v57 = vmul.f32 0.0, %v1492_v42 }
 0x459   :  { %v5859_v58 = vadd.f32 %v1494_v57, %v1487_v55 }
 0x45b   :  { %4155 = vmatmul.mubr.msk.f32.vlgmr.msra.gmra.mxu1 %vm6289_vm7, %v5859_v58  ;;  %4166 = vmatmul.mubr.msk.f32.vlgmr.msra.gmra.mxu0 %vm6290_vm11, %v5859_v58  ;;  %vm6300_vm7 = vmmov %vm6294_vm3 }
 0x45c   :  { %4169 = vmatpush3.msra.mxu1 %v5689_v32  ;;  %4180 = vmatpush3.msra.mxu0 %v5742_v18  ;;  %vm6301_vm11 = vmmov %vm6296_vm10 }
 0x45d   :  { %4170 = vmatprep.subr.mxu1 %v5124_v50  ;;  %4181 = vmatprep.subr.mxu0 %v5124_v50 }
 0x45e   :  { %4171 = vmatpush3.msra.mxu1 %v5696_v33  ;;  %4182 = vmatpush3.msra.mxu0 %v5744_v19 }
 0x45f   :  { %4172 = vmatprep.subr.mxu1 %v5124_v50  ;;  %4183 = vmatprep.subr.mxu0 %v5124_v50 }
 0x460   :  { %4173 = vmatpush3.msra.mxu1 %v5705_v12  ;;  %4184 = vmatpush3.msra.mxu0 %v5750_v5 }
 0x461   :  { %4174 = vmatprep.subr.mxu1 %v5124_v50  ;;  %4185 = vmatprep.subr.mxu0 %v5124_v50 }
 0x462   :  { %4175 = vmatpush3.msra.mxu1 %v5714_v27  ;;  %4176 = vmatprep.mubr.msk.f32.mxu1 %vm5125_vm1, %v5124_v50 }
 0x463   :  { %4186 = vmatpush3.msra.mxu0 %v5752_v20  ;;  %4187 = vmatprep.mubr.msk.f32.mxu0 %vm5125_vm1, %v5124_v50 }
 0x464   :  { %4190 = vmatprep.subr.mxu1 %v5124_v50  ;;  %4201 = vmatprep.subr.mxu0 %v5124_v50 }
 0x51b   :  { %v1565_v56 = vpop.f32.mrf.mxu1  ;;  %v1707_v6 = vpop.f32.mrf.mxu0 }
 0x51c   :  { %v1570_v9 = vrot.slane %v1565_v56, 7  ;;  %v1571_v59 = vrot.slane %v1565_v56, 1  ;;  %v1572_v60 = vrot.slane %v1565_v56, 2  ;;  %v1573_v61 = vrot.slane %v1565_v56, 3 }
 0x51d   :  { %v1574_v0 = vrot.slane %v1565_v56, 4  ;;  %v1575_v2 = vrot.slane %v1565_v56, 5  ;;  %v1576_v3 = vrot.slane %v1565_v56, 6  ;;  %v1586_v11 = vadd.f32 %v1565_v56, %v5792_v47  ;;  %v4156_v13 = vpop.f32.mrf.mxu1  ;;  %v4167_v14 = vpop.f32.mrf.mxu0 }
 0x51e   :  { %v1585_v62 = vadd.f32 %v1570_v9, %v5788_v45  ;;  %v1587_v34 = vadd.f32 %v1571_v59, %v5796_v43  ;;  %v1588_v15 = vadd.f32 %v1572_v60, %v5794_v49  ;;  %v1589_v35 = vadd.f32 %v1573_v61, %v5798_v52 }
 0x51f   :  { %v1590_v17 = vadd.f32 %v1574_v0, %v5800_v10  ;;  %v1591_v37 = vadd.f32 %v1575_v2, %v5804_v8  ;;  %v3825_v48 = vmul.f32 -1.442695, %v1586_v11  ;;  %v1592_v23 = vadd.f32 %v1576_v3, %v5802_v54 }
 0x520   :  { %v3824_v39 = vmul.f32 -1.442695, %v1585_v62  ;;  %v3826_v25 = vmul.f32 -1.442695, %v1587_v34  ;;  %v3827_v41 = vmul.f32 -1.442695, %v1588_v15  ;;  %v1708_v2 = vadd.f32 %v5814_v22, %v1707_v6 }
 0x521   :  { %4504 = vpow2.f32 %v3825_v48  ;;  %v3828_v26 = vmul.f32 -1.442695, %v1589_v35  ;;  %v3829_v28 = vmul.f32 -1.442695, %v1590_v17  ;;  %v3830_v38 = vmul.f32 -1.442695, %v1591_v37 }
 0x522   :  { %4506 = vpow2.f32 %v3824_v39  ;;  %v3831_v44 = vmul.f32 -1.442695, %v1592_v23  ;;  %v1712_v11 = vrot.slane %v1708_v2, 7  ;;  %v1713_v14 = vrot.slane %v1708_v2, 1 }
 0x523   :  { %4508 = vpow2.f32 %v3826_v25  ;;  %v1714_v15 = vrot.slane %v1708_v2, 2  ;;  %v1715_v37 = vrot.slane %v1708_v2, 3  ;;  %v1717_v6 = vrot.slane %v1708_v2, 5 }
 0x524   :  { %4510 = vpow2.f32 %v3827_v41  ;;  %v1716_v41 = vrot.slane %v1708_v2, 4 }
 0x525   :  { %4512 = vpow2.f32 %v3828_v26 }
 0x526   :  { %4514 = vpow2.f32 %v3829_v28 }
 0x527   :  { %4516 = vpow2.f32 %v3830_v38 }
 0x528   :  { %4518 = vpow2.f32 %v3831_v44 }
 0x52e   :  { %v4505_v31 = vpop.eup %4504 }
 0x52f   :  { %v4507_v36 = vpop.eup %4506  ;;  %v1618_v40 = vadd.f32 1.0, %v4505_v31 }
 0x530   :  { %v4509_v51 = vpop.eup %4508  ;;  %v1617_v24 = vadd.f32 1.0, %v4507_v36  ;;  %v1718_v36 = vrot.slane %v1708_v2, 6 }
 0x531   :  { %v4511_v30 = vpop.eup %4510  ;;  %v1619_v46 = vadd.f32 1.0, %v4509_v51  ;;  %4520 = vrcp.f32 %v1618_v40 }
 0x532   :  { %v4513_v42 = vpop.eup %4512  ;;  %v1620_v55 = vadd.f32 1.0, %v4511_v30  ;;  %4522 = vrcp.f32 %v1617_v24 }
 0x533   :  { %v4515_v57 = vpop.eup %4514  ;;  %v1621_v56 = vadd.f32 1.0, %v4513_v42  ;;  %4524 = vrcp.f32 %v1619_v46 }
 0x534   :  { %v4517_v9 = vpop.eup %4516  ;;  %v1622_v59 = vadd.f32 1.0, %v4515_v57  ;;  %4526 = vrcp.f32 %v1620_v55 }
 0x535   :  { %v4519_v60 = vpop.eup %4518  ;;  %v1623_v61 = vadd.f32 1.0, %v4517_v9  ;;  %4528 = vrcp.f32 %v1621_v56 }
 0x536   :  { %v1624_v0 = vadd.f32 1.0, %v4519_v60  ;;  %4530 = vrcp.f32 %v1622_v59 }
 0x537   :  { %4532 = vrcp.f32 %v1623_v61  ;;  %v1753_v61 = vpop.permute.xlu1 %1752 }
 0x538   :  { %4534 = vrcp.f32 %v1624_v0 }
 0x53e   :  { %v4521_v3 = vpop.eup %4520 }
 0x53f   :  { %v4523_v13 = vpop.eup %4522  ;;  %v1728_v62 = vmul.f32 %v4521_v3, %v1708_v2 }
 0x540   :  { %v4525_v34 = vpop.eup %4524  ;;  %v1727_v35 = vmul.f32 %v4523_v13, %v1712_v11 }
 0x541   :  { %v4527_v17 = vpop.eup %4526  ;;  %v1729_v48 = vmul.f32 %v4525_v34, %v1713_v14  ;;  %v1736_v23 = vadd.f32 %v1728_v62, %v5821_v1 }
 0x542   :  { %v4529_v39 = vpop.eup %4528  ;;  %v1735_v25 = vadd.f32 %v1727_v35, %v5818_v63  ;;  %v1730_v26 = vmul.f32 %v4527_v17, %v1714_v15 }
 0x543   :  { %v4531_v28 = vpop.eup %4530  ;;  %4536 = vtanh.f32 %v1736_v23  ;;  %v1731_v38 = vmul.f32 %v4529_v39, %v1715_v37  ;;  %v1737_v44 = vadd.f32 %v1729_v48, %v5827_v7 }
 0x544   :  { %v4533_v31 = vpop.eup %4532  ;;  %v1732_v40 = vmul.f32 %v4531_v28, %v1716_v41  ;;  %v1738_v51 = vadd.f32 %v1730_v26, %v5824_v4  ;;  %4538 = vtanh.f32 %v1735_v25  ;;  %v1781_v25 = vpop.permute.xlu1 %1780 }
 0x545   :  { %v4535_v24 = vpop.eup %4534  ;;  %v1733_v30 = vmul.f32 %v4533_v31, %v1717_v6  ;;  %v1739_v46 = vadd.f32 %v1731_v38, %v5833_v29  ;;  %4540 = vtanh.f32 %v1737_v44  ;;  %v1783_v38 = vmul.f32 %v1781_v25, %v5859_v58 }
 0x546   :  { %v1734_v42 = vmul.f32 %v4535_v24, %v1718_v36  ;;  %v1740_v55 = vadd.f32 %v1732_v40, %v5830_v53  ;;  %4542 = vtanh.f32 %v1738_v51 }
 0x547   :  { %v1741_v57 = vadd.f32 %v1733_v30, %v5840_v21  ;;  %4544 = vtanh.f32 %v1739_v46 }
 0x548   :  { %v1742_v56 = vadd.f32 %v1734_v42, %v5836_v16  ;;  %4546 = vtanh.f32 %v1740_v55 }
 0x549   :  { %4548 = vtanh.f32 %v1741_v57 }
 0x54a   :  { %4550 = vtanh.f32 %v1742_v56 }
 0x550   :  { %v4537_v9 = vpop.eup %4536 }
 0x551   :  { %v4539_v59 = vpop.eup %4538 }
 0x552   :  { %v4541_v60 = vpop.eup %4540  ;;  %v1763_v0 = vrot.slane %v4539_v59, 1 }
 0x553   :  { %v4543_v2 = vpop.eup %4542  ;;  %v1765_v3 = vrot.slane %v4541_v60, 7 }
 0x554   :  { %v4545_v11 = vpop.eup %4544  ;;  %v1764_v13 = vsel %vm710_vm13, %v4537_v9, %v1763_v0  ;;  %v1767_v14 = vrot.slane %v4543_v2, 6 }
 0x555   :  { %v4547_v62 = vpop.eup %4546  ;;  %v1766_v34 = vsel %vm713_vm12, %v1765_v3, %v1764_v13  ;;  %v1769_v15 = vrot.slane %v4545_v11, 5 }
 0x556   :  { %v4549_v35 = vpop.eup %4548  ;;  %v1768_v17 = vsel %vm716_vm9, %v1767_v14, %v1766_v34  ;;  %v1771_v37 = vrot.slane %v4547_v62, 4 }
 0x557   :  { %v4551_v48 = vpop.eup %4550  ;;  %v1770_v23 = vsel %vm719_vm8, %v1769_v15, %v1768_v17  ;;  %v1773_v39 = vrot.slane %v4549_v35, 3 }
 0x558   :  { %v1772_v41 = vsel %vm6291_vm14, %v1771_v37, %v1770_v23  ;;  %v1775_v26 = vrot.slane %v4551_v48, 2  ;;  %vm6302_vm14 = vmmov %vm6297_vm0 }
 0x559   :  { %v1774_v28 = vsel %vm6292_vm15, %v1773_v39, %v1772_v41  ;;  %vm6303_vm15 = vmmov %vm6293_vm2 }
 0x55a   :  { %v1776_v6 = vsel %vm6293_vm2, %v1775_v26, %v1774_v28  ;;  %vm6304_vm2 = vmmov %vm6294_vm3 }
 0x55b   :  { %v1778_v44 = vmul.f32 %v1776_v6, %v1753_v61 }
 0x55d   :  { %v5910_v31 = vadd.f32 %v1783_v38, %v1778_v44 }
 0x55f   :  { %4177 = vmatmul.mubr.msk.f32.vlgmr.msra.gmra.mxu1 %vm6294_vm3, %v5910_v31  ;;  %4188 = vmatmul.mubr.msk.f32.vlgmr.msra.gmra.mxu0 %vm6295_vm5, %v5910_v31  ;;  %vm6305_vm3 = vmmov %vm6304_vm2 }
 0x560   :  { %4191 = vmatpush3.msra.mxu1 %v5689_v32  ;;  %4202 = vmatpush3.msra.mxu0 %v5742_v18  ;;  %vm6306_vm5 = vmmov %vm6296_vm10 }
 0x561   :  { %4192 = vmatprep.subr.mxu1 %v5124_v50  ;;  %4203 = vmatprep.subr.mxu0 %v5124_v50 }
 0x562   :  { %4193 = vmatpush3.msra.mxu1 %v5696_v33  ;;  %4204 = vmatpush3.msra.mxu0 %v5744_v19 }
 0x563   :  { %4194 = vmatprep.subr.mxu1 %v5124_v50  ;;  %4205 = vmatprep.subr.mxu0 %v5124_v50 }
 0x564   :  { %4195 = vmatpush3.msra.mxu1 %v5705_v12  ;;  %4206 = vmatpush3.msra.mxu0 %v5750_v5 }
 0x565   :  { %4196 = vmatprep.subr.mxu1 %v5124_v50  ;;  %4207 = vmatprep.subr.mxu0 %v5124_v50 }
 0x566   :  { %4197 = vmatpush3.msra.mxu1 %v5714_v27  ;;  %4198 = vmatprep.mubr.msk.f32.mxu1 %vm5125_vm1, %v5124_v50 }
 0x567   :  { %4208 = vmatpush3.msra.mxu0 %v5752_v20  ;;  %4209 = vmatprep.mubr.msk.f32.mxu0 %vm5125_vm1, %v5124_v50 }
 0x568   :  { %4212 = vmatprep.subr.mxu1 %v5124_v50  ;;  %4223 = vmatprep.subr.mxu0 %v5124_v50 }
 0x61f   :  { %v1854_v32 = vpop.f32.mrf.mxu1  ;;  %v1996_v33 = vpop.f32.mrf.mxu0 }
 0x620   :  { %v1859_v12 = vrot.slane %v1854_v32, 6  ;;  %v1860_v18 = vrot.slane %v1854_v32, 7  ;;  %v1861_v19 = vrot.slane %v1854_v32, 1  ;;  %v1862_v5 = vrot.slane %v1854_v32, 2 }
 0x621   :  { %v1863_v58 = vrot.slane %v1854_v32, 3  ;;  %v1864_v27 = vrot.slane %v1854_v32, 4  ;;  %v1865_v36 = vrot.slane %v1854_v32, 5  ;;  %v1876_v40 = vadd.f32 %v1854_v32, %v5796_v43  ;;  %v4178_v51 = vpop.f32.mrf.mxu1  ;;  %v4189_v20 = vpop.f32.mrf.mxu0 }
 0x622   :  { %v1874_v24 = vadd.f32 %v1859_v12, %v5788_v45  ;;  %v1875_v30 = vadd.f32 %v1860_v18, %v5792_v47  ;;  %v1877_v46 = vadd.f32 %v1861_v19, %v5794_v49  ;;  %v1878_v42 = vadd.f32 %v1862_v5, %v5798_v52 }
 0x623   :  { %v1879_v55 = vadd.f32 %v1863_v58, %v5800_v10  ;;  %v1880_v57 = vadd.f32 %v1864_v27, %v5804_v8  ;;  %v3836_v56 = vmul.f32 -1.442695, %v1876_v40  ;;  %v1881_v9 = vadd.f32 %v1865_v36, %v5802_v54 }
 0x624   :  { %v3834_v59 = vmul.f32 -1.442695, %v1874_v24  ;;  %v3835_v60 = vmul.f32 -1.442695, %v1875_v30  ;;  %v3837_v61 = vmul.f32 -1.442695, %v1877_v46  ;;  %v1997_v38 = vadd.f32 %v5814_v22, %v1996_v33 }
 0x625   :  { %4552 = vpow2.f32 %v3836_v56  ;;  %v3838_v0 = vmul.f32 -1.442695, %v1878_v42  ;;  %v3839_v2 = vmul.f32 -1.442695, %v1879_v55  ;;  %v3840_v3 = vmul.f32 -1.442695, %v1880_v57 }
 0x626   :  { %4554 = vpow2.f32 %v3834_v59  ;;  %v3841_v11 = vmul.f32 -1.442695, %v1881_v9  ;;  %v2001_v32 = vrot.slane %v1997_v38, 6  ;;  %v2002_v18 = vrot.slane %v1997_v38, 7 }
 0x627   :  { %4556 = vpow2.f32 %v3835_v60  ;;  %v2003_v58 = vrot.slane %v1997_v38, 1  ;;  %v2004_v40 = vrot.slane %v1997_v38, 2  ;;  %v2005_v46 = vrot.slane %v1997_v38, 3 }
 0x628   :  { %4558 = vpow2.f32 %v3837_v61  ;;  %v2006_v57 = vrot.slane %v1997_v38, 4  ;;  %v2007_v59 = vrot.slane %v1997_v38, 5 }
 0x629   :  { %4560 = vpow2.f32 %v3838_v0 }
 0x62a   :  { %4562 = vpow2.f32 %v3839_v2 }
 0x62b   :  { %4564 = vpow2.f32 %v3840_v3 }
 0x62c   :  { %4566 = vpow2.f32 %v3841_v11 }
 0x632   :  { %v4553_v13 = vpop.eup %4552 }
 0x633   :  { %v4555_v14 = vpop.eup %4554  ;;  %v1908_v62 = vadd.f32 1.0, %v4553_v13 }
 0x634   :  { %v4557_v34 = vpop.eup %4556  ;;  %v1906_v15 = vadd.f32 1.0, %v4555_v14 }
 0x635   :  { %v4559_v35 = vpop.eup %4558  ;;  %v1907_v17 = vadd.f32 1.0, %v4557_v34  ;;  %4568 = vrcp.f32 %v1908_v62 }
 0x636   :  { %v4561_v37 = vpop.eup %4560  ;;  %v1909_v48 = vadd.f32 1.0, %v4559_v35  ;;  %4570 = vrcp.f32 %v1906_v15 }
 0x637   :  { %v4563_v23 = vpop.eup %4562  ;;  %v1910_v39 = vadd.f32 1.0, %v4561_v37  ;;  %4572 = vrcp.f32 %v1907_v17 }
 0x638   :  { %v4565_v25 = vpop.eup %4564  ;;  %v1911_v41 = vadd.f32 1.0, %v4563_v23  ;;  %4574 = vrcp.f32 %v1909_v48 }
 0x639   :  { %v4567_v26 = vpop.eup %4566  ;;  %v1912_v28 = vadd.f32 1.0, %v4565_v25  ;;  %4576 = vrcp.f32 %v1910_v39  ;;  %v2042_v25 = vpop.permute.xlu1 %2041 }
 0x63a   :  { %v1913_v6 = vadd.f32 1.0, %v4567_v26  ;;  %4578 = vrcp.f32 %v1911_v41 }
 0x63b   :  { %4580 = vrcp.f32 %v1912_v28 }
 0x63c   :  { %4582 = vrcp.f32 %v1913_v6 }
 0x642   :  { %v4569_v44 = vpop.eup %4568 }
 0x643   :  { %v4571_v12 = vpop.eup %4570  ;;  %v2018_v19 = vmul.f32 %v4569_v44, %v1997_v38 }
 0x644   :  { %v4573_v5 = vpop.eup %4572  ;;  %v2016_v27 = vmul.f32 %v4571_v12, %v2001_v32 }
 0x645   :  { %v4575_v36 = vpop.eup %4574  ;;  %v2017_v51 = vmul.f32 %v4573_v5, %v2002_v18  ;;  %v2026_v20 = vadd.f32 %v2018_v19, %v5827_v7 }
 0x646   :  { %v4577_v24 = vpop.eup %4576  ;;  %v2024_v30 = vadd.f32 %v2016_v27, %v5818_v63  ;;  %v2019_v42 = vmul.f32 %v4575_v36, %v2003_v58  ;;  %v2070_v36 = vpop.permute.xlu1 %2069 }
 0x647   :  { %v4579_v55 = vpop.eup %4578  ;;  %v2025_v33 = vadd.f32 %v2017_v51, %v5821_v1  ;;  %4584 = vtanh.f32 %v2026_v20  ;;  %v2020_v56 = vmul.f32 %v4577_v24, %v2004_v40  ;;  %v2072_v20 = vmul.f32 %v2070_v36, %v5910_v31  ;;  %v5981_v31 = vld [vmem:[%s6261_s9 + $0x10] sm:$0xff] }
 0x648   :  { %v4581_v9 = vpop.eup %4580  ;;  %v2021_v60 = vmul.f32 %v4579_v55, %v2005_v46  ;;  %v2027_v61 = vadd.f32 %v2019_v42, %v5824_v4  ;;  %4586 = vtanh.f32 %v2024_v30  ;;  %v5970_v30 = vld [vmem:[%s6261_s9 + $0x18] sm:$0xff]  ;;  %v5973_v46 = vld [vmem:[#allocation8 + $0x18] sm:$0xff]  ;;  %v5984_v42 = vld [vmem:[#allocation8 + $0x10] sm:$0xff] }
 0x649   :  { %v4583_v0 = vpop.eup %4582  ;;  %v2022_v2 = vmul.f32 %v4581_v9, %v2006_v57  ;;  %v2028_v3 = vadd.f32 %v2020_v56, %v5833_v29  ;;  %4588 = vtanh.f32 %v2025_v33  ;;  %v5992_v55 = vld [vmem:[%s6261_s9 + $0x8] sm:$0xff]  ;;  %v5995_v33 = vld [vmem:[#allocation8 + $0x8] sm:$0xff]  ;;  %v6008_v56 = vld [vmem:[#allocation8] sm:$0xff] }
 0x64a   :  { %v2023_v11 = vmul.f32 %v4583_v0, %v2007_v59  ;;  %v2029_v13 = vadd.f32 %v2021_v60, %v5830_v53  ;;  %4590 = vtanh.f32 %v2027_v61  ;;  %v6003_v57 = vld [vmem:[%s6261_s9] sm:$0xff]  ;;  %s5133_s9 = smov [#allocation21]  }
 0x64b   :  { %v2030_v14 = vadd.f32 %v2022_v2, %v5840_v21  ;;  %4592 = vtanh.f32 %v2028_v3  ;;  %s3775_s10 = sshll.u32 %s5133_s9, 4  ;;  %s3776_s10 = int_to_ptr.vmem [resolvable:$true] %s3775_s10 }
 0x64c   :  { %v2031_v62 = vadd.f32 %v2023_v11, %v5836_v16  ;;  %4594 = vtanh.f32 %v2029_v13  ;;  %s5051_s28 = scalar_lea.vmem %s3776_s10, 128  ;;  %p5056_p9 = scmp.lt.s32.totalorder %s3776_s10, %s3776_s10 }
 0x64d   :  { %4596 = vtanh.f32 %v2030_v14  ;;  %p5052_p8 = scmp.ne.s32.totalorder %s3776_s10, %s5051_s28  ;;  %p5057_p10 = scmp.lt.s32.totalorder %s5051_s28, %s5051_s28 }
 0x64e   :  { %4598 = vtanh.f32 %v2031_v62 }
 0x64f   :  { %p5058_p11 = por %p5057_p10, %p5056_p9 }
 0x651   :  { %p5059_p12 = pnand %p5058_p11, %p5052_p8 }
 0x654   :  { %v4585_v34 = vpop.eup %4584 }
 0x655   :  { %v4587_v15 = vpop.eup %4586 }
 0x656   :  { %v4589_v35 = vpop.eup %4588  ;;  %v2052_v17 = vrot.slane %v4587_v15, 2 }
 0x657   :  { %v4591_v37 = vpop.eup %4590  ;;  %v2053_v48 = vrot.slane %v4589_v35, 1 }
 0x658   :  { %v4593_v23 = vpop.eup %4592  ;;  %v2056_v26 = vrot.slane %v4591_v37, 7 }
 0x659   :  { %v4595_v39 = vpop.eup %4594  ;;  %v2054_v41 = vsel %vm710_vm13, %v2053_v48, %v2052_v17  ;;  %v2058_v38 = vrot.slane %v4593_v23, 6 }
 0x65a   :  { %v4597_v28 = vpop.eup %4596  ;;  %v2055_v6 = vsel %vm713_vm12, %v4585_v34, %v2054_v41  ;;  %v2060_v12 = vrot.slane %v4595_v39, 5 }
 0x65b   :  { %v4599_v44 = vpop.eup %4598  ;;  %v2057_v32 = vsel %vm716_vm9, %v2056_v26, %v2055_v6  ;;  %v2062_v19 = vrot.slane %v4597_v28, 4 }
 0x65c   :  { %v2059_v18 = vsel %vm719_vm8, %v2058_v38, %v2057_v32  ;;  %v2064_v58 = vrot.slane %v4599_v44, 3 }
 0x65d   :  { %v2061_v5 = vsel %vm6296_vm10, %v2060_v12, %v2059_v18  ;;  %vm6307_vm10 = vmmov %vm6297_vm0 }
 0x65e   :  { %v2063_v27 = vsel %vm6297_vm0, %v2062_v19, %v2061_v5  ;;  %vm6308_vm0 = vmmov %vm6298_vm4 }
 0x65f   :  { %v2065_v40 = vsel %vm6298_vm4, %v2064_v58, %v2063_v27  ;;  %vm6309_vm4 = vmmov %vm6304_vm2 }
 0x660   :  { %v2067_v51 = vmul.f32 %v2065_v40, %v2042_v25 }
 0x662   :  { %v5961_v24 = vadd.f32 %v2072_v20, %v2067_v51 }
 0x664   :  { %4199 = vmatmul.mubr.msk.f32.vlgmr.msra.gmra.mxu1 %vm6299_vm6, %v5961_v24  ;;  %4210 = vmatmul.mubr.msk.f32.vlgmr.msra.gmra.mxu0 %vm6300_vm7, %v5961_v24  ;;  %vm6310_vm6 = vmmov %vm6304_vm2 }
 0x665   :  { %4213 = vmatpush3.msra.mxu1 %v5970_v30  ;;  %4224 = vmatpush3.msra.mxu0 %v5973_v46  ;;  %vm6311_vm7 = vmmov %vm6306_vm5 }
 0x666   :  { %4214 = vmatprep.subr.mxu1 %v5124_v50  ;;  %4225 = vmatprep.subr.mxu0 %v5124_v50 }
 0x667   :  { %4215 = vmatpush3.msra.mxu1 %v5981_v31  ;;  %4226 = vmatpush3.msra.mxu0 %v5984_v42 }
 0x668   :  { %4216 = vmatprep.subr.mxu1 %v5124_v50  ;;  %4227 = vmatprep.subr.mxu0 %v5124_v50 }
 0x669   :  { %4217 = vmatpush3.msra.mxu1 %v5992_v55  ;;  %4228 = vmatpush3.msra.mxu0 %v5995_v33 }
 0x66a   :  { %4218 = vmatprep.subr.mxu1 %v5124_v50  ;;  %4229 = vmatprep.subr.mxu0 %v5124_v50 }
 0x66b   :  { %4219 = vmatpush3.msra.mxu1 %v6003_v57  ;;  %4220 = vmatprep.mubr.msk.f32.mxu1 %vm5125_vm1, %v5124_v50 }
 0x66c   :  { %4230 = vmatpush3.msra.mxu0 %v6008_v56  ;;  %4231 = vmatprep.mubr.msk.f32.mxu0 %vm5125_vm1, %v5124_v50 }
 0x66d   :  { %4234 = vmatprep.subr.mxu1 %v5124_v50  ;;  %4245 = vmatprep.subr.mxu0 %v5124_v50 }
 0x724   :  { %v2143_v9 = vpop.f32.mrf.mxu1  ;;  %v2285_v59 = vpop.f32.mrf.mxu0 }
 0x725   :  { %v2148_v60 = vrot.slane %v2143_v9, 5  ;;  %v2149_v61 = vrot.slane %v2143_v9, 6  ;;  %v2150_v0 = vrot.slane %v2143_v9, 7  ;;  %v2151_v2 = vrot.slane %v2143_v9, 1 }
 0x726   :  { %v2152_v3 = vrot.slane %v2143_v9, 2  ;;  %v2153_v11 = vrot.slane %v2143_v9, 3  ;;  %v2154_v13 = vrot.slane %v2143_v9, 4  ;;  %v2166_v14 = vadd.f32 %v2143_v9, %v5794_v49  ;;  %v4200_v62 = vpop.f32.mrf.mxu1  ;;  %v4211_v34 = vpop.f32.mrf.mxu0 }
 0x727   :  { %v2163_v15 = vadd.f32 %v2148_v60, %v5788_v45  ;;  %v2164_v35 = vadd.f32 %v2149_v61, %v5792_v47  ;;  %v2165_v17 = vadd.f32 %v2150_v0, %v5796_v43  ;;  %v2167_v37 = vadd.f32 %v2151_v2, %v5798_v52 }
 0x728   :  { %v2168_v48 = vadd.f32 %v2152_v3, %v5800_v10  ;;  %v2169_v23 = vadd.f32 %v2153_v11, %v5804_v8  ;;  %v3847_v39 = vmul.f32 -1.442695, %v2166_v14  ;;  %v2170_v25 = vadd.f32 %v2154_v13, %v5802_v54 }
 0x729   :  { %v3844_v41 = vmul.f32 -1.442695, %v2163_v15  ;;  %v3845_v26 = vmul.f32 -1.442695, %v2164_v35  ;;  %v3846_v28 = vmul.f32 -1.442695, %v2165_v17  ;;  %v2286_v11 = vadd.f32 %v5814_v22, %v2285_v59 }
 0x72a   :  { %4600 = vpow2.f32 %v3847_v39  ;;  %v3848_v6 = vmul.f32 -1.442695, %v2167_v37  ;;  %v3849_v38 = vmul.f32 -1.442695, %v2168_v48  ;;  %v3850_v44 = vmul.f32 -1.442695, %v2169_v23 }
 0x72b   :  { %4602 = vpow2.f32 %v3844_v41  ;;  %v3851_v32 = vmul.f32 -1.442695, %v2170_v25  ;;  %v2290_v14 = vrot.slane %v2286_v11, 5  ;;  %v2291_v34 = vrot.slane %v2286_v11, 6 }
 0x72c   :  { %4604 = vpow2.f32 %v3845_v26  ;;  %v2292_v17 = vrot.slane %v2286_v11, 7  ;;  %v2293_v23 = vrot.slane %v2286_v11, 1  ;;  %v2295_v59 = vrot.slane %v2286_v11, 3 }
 0x72d   :  { %4606 = vpow2.f32 %v3846_v28 }
 0x72e   :  { %4608 = vpow2.f32 %v3848_v6  ;;  %v2294_v6 = vrot.slane %v2286_v11, 2 }
 0x72f   :  { %4610 = vpow2.f32 %v3849_v38 }
 0x730   :  { %4612 = vpow2.f32 %v3850_v44 }
 0x731   :  { %4614 = vpow2.f32 %v3851_v32 }
 0x737   :  { %v4601_v12 = vpop.eup %4600 }
 0x738   :  { %v4603_v18 = vpop.eup %4602  ;;  %v2198_v19 = vadd.f32 1.0, %v4601_v12  ;;  %v2296_v12 = vrot.slane %v2286_v11, 4 }
 0x739   :  { %v4605_v5 = vpop.eup %4604  ;;  %v2195_v58 = vadd.f32 1.0, %v4603_v18 }
 0x73a   :  { %v4607_v27 = vpop.eup %4606  ;;  %v2196_v36 = vadd.f32 1.0, %v4605_v5  ;;  %4616 = vrcp.f32 %v2198_v19 }
 0x73b   :  { %v4609_v40 = vpop.eup %4608  ;;  %v2197_v51 = vadd.f32 1.0, %v4607_v27  ;;  %4618 = vrcp.f32 %v2195_v58 }
 0x73c   :  { %v4611_v20 = vpop.eup %4610  ;;  %v2199_v9 = vadd.f32 1.0, %v4609_v40  ;;  %4620 = vrcp.f32 %v2196_v36 }
 0x73d   :  { %v4613_v60 = vpop.eup %4612  ;;  %v2200_v61 = vadd.f32 1.0, %v4611_v20  ;;  %4622 = vrcp.f32 %v2197_v51 }
 0x73e   :  { %v4615_v0 = vpop.eup %4614  ;;  %v2201_v2 = vadd.f32 1.0, %v4613_v60  ;;  %4624 = vrcp.f32 %v2199_v9 }
 0x73f   :  { %v2202_v3 = vadd.f32 1.0, %v4615_v0  ;;  %4626 = vrcp.f32 %v2200_v61 }
 0x740   :  { %4628 = vrcp.f32 %v2201_v2 }
 0x741   :  { %4630 = vrcp.f32 %v2202_v3 }
 0x747   :  { %v4617_v13 = vpop.eup %4616 }
 0x748   :  { %v4619_v62 = vpop.eup %4618  ;;  %v2308_v15 = vmul.f32 %v4617_v13, %v2286_v11 }
 0x749   :  { %v4621_v35 = vpop.eup %4620  ;;  %v2305_v37 = vmul.f32 %v4619_v62, %v2290_v14 }
 0x74a   :  { %v4623_v48 = vpop.eup %4622  ;;  %v2306_v39 = vmul.f32 %v4621_v35, %v2291_v34  ;;  %v2316_v25 = vadd.f32 %v2308_v15, %v5824_v4 }
 0x74b   :  { %v4625_v41 = vpop.eup %4624  ;;  %v2307_v26 = vmul.f32 %v4623_v48, %v2292_v17  ;;  %v2313_v28 = vadd.f32 %v2305_v37, %v5818_v63 }
 0x74c   :  { %v4627_v38 = vpop.eup %4626  ;;  %v2314_v22 = vadd.f32 %v2306_v39, %v5821_v1  ;;  %4632 = vtanh.f32 %v2316_v25  ;;  %v2309_v44 = vmul.f32 %v4625_v41, %v2293_v23 }
 0x74d   :  { %v4629_v32 = vpop.eup %4628  ;;  %v2310_v18 = vmul.f32 %v4627_v38, %v2294_v6  ;;  %v2315_v19 = vadd.f32 %v2307_v26, %v5827_v7  ;;  %4634 = vtanh.f32 %v2313_v28  ;;  %v2331_v28 = vpop.permute.xlu0 %2330 }
 0x74e   :  { %v4631_v5 = vpop.eup %4630  ;;  %v2311_v58 = vmul.f32 %v4629_v32, %v2295_v59  ;;  %v2317_v27 = vadd.f32 %v2309_v44, %v5833_v29  ;;  %4636 = vtanh.f32 %v2314_v22  ;;  %v2359_v6 = vpop.permute.xlu1 %2358 }
 0x74f   :  { %v2312_v36 = vmul.f32 %v4631_v5, %v2296_v12  ;;  %v2318_v40 = vadd.f32 %v2310_v18, %v5830_v53  ;;  %4638 = vtanh.f32 %v2315_v19  ;;  %v2361_v59 = vmul.f32 %v2359_v6, %v5961_v24 }
 0x750   :  { %v2319_v51 = vadd.f32 %v2311_v58, %v5840_v21  ;;  %4640 = vtanh.f32 %v2317_v27 }
 0x751   :  { %v2320_v20 = vadd.f32 %v2312_v36, %v5836_v16  ;;  %4642 = vtanh.f32 %v2318_v40 }
 0x752   :  { %4644 = vtanh.f32 %v2319_v51 }
 0x753   :  { %4646 = vtanh.f32 %v2320_v20 }
 0x759   :  { %v4633_v9 = vpop.eup %4632 }
 0x75a   :  { %v4635_v60 = vpop.eup %4634 }
 0x75b   :  { %v4637_v61 = vpop.eup %4636  ;;  %v2341_v0 = vrot.slane %v4635_v60, 3 }
 0x75c   :  { %v4639_v2 = vpop.eup %4638  ;;  %v2342_v3 = vrot.slane %v4637_v61, 2 }
 0x75d   :  { %v4641_v11 = vpop.eup %4640  ;;  %v2344_v13 = vrot.slane %v4639_v2, 1 }
 0x75e   :  { %v4643_v14 = vpop.eup %4642  ;;  %v2343_v62 = vsel %vm710_vm13, %v2342_v3, %v2341_v0  ;;  %v2347_v35 = vrot.slane %v4641_v11, 7 }
 0x75f   :  { %v4645_v34 = vpop.eup %4644  ;;  %v2345_v15 = vsel %vm713_vm12, %v2344_v13, %v2343_v62  ;;  %v2349_v48 = vrot.slane %v4643_v14, 6 }
 0x760   :  { %v4647_v17 = vpop.eup %4646  ;;  %v2346_v37 = vsel %vm716_vm9, %v4633_v9, %v2345_v15  ;;  %v2351_v39 = vrot.slane %v4645_v34, 5 }
 0x761   :  { %v2348_v23 = vsel %vm719_vm8, %v2347_v35, %v2346_v37  ;;  %v2353_v41 = vrot.slane %v4647_v17, 4 }
 0x762   :  { %v2350_v25 = vsel %vm6301_vm11, %v2349_v48, %v2348_v23  ;;  %vm6312_vm11 = vmmov %vm6307_vm10 }
 0x763   :  { %v2352_v26 = vsel %vm6302_vm14, %v2351_v39, %v2350_v25  ;;  %vm6313_vm14 = vmmov %vm6308_vm0 }
 0x764   :  { %v2354_v38 = vsel %vm6303_vm15, %v2353_v41, %v2352_v26  ;;  %vm6314_vm15 = vmmov %vm6304_vm2 }
 0x765   :  { %v2356_v22 = vmul.f32 %v2354_v38, %v2331_v28 }
 0x767   :  { %v6040_v44 = vadd.f32 %v2361_v59, %v2356_v22 }
 0x769   :  { %4221 = vmatmul.mubr.msk.f32.vlgmr.msra.gmra.mxu1 %vm6304_vm2, %v6040_v44  ;;  %4232 = vmatmul.mubr.msk.f32.vlgmr.msra.gmra.mxu0 %vm6305_vm3, %v6040_v44  ;;  %vm6315_vm3 = vmmov %vm6306_vm5 }
 0x76a   :  { %4235 = vmatpush3.msra.mxu1 %v5970_v30  ;;  %4246 = vmatpush3.msra.mxu0 %v5973_v46 }
 0x76b   :  { %4236 = vmatprep.subr.mxu1 %v5124_v50  ;;  %4247 = vmatprep.subr.mxu0 %v5124_v50 }
 0x76c   :  { %4237 = vmatpush3.msra.mxu1 %v5981_v31  ;;  %4248 = vmatpush3.msra.mxu0 %v5984_v42 }
 0x76d   :  { %4238 = vmatprep.subr.mxu1 %v5124_v50  ;;  %4249 = vmatprep.subr.mxu0 %v5124_v50 }
 0x76e   :  { %4239 = vmatpush3.msra.mxu1 %v5992_v55  ;;  %4250 = vmatpush3.msra.mxu0 %v5995_v33 }
 0x76f   :  { %4240 = vmatprep.subr.mxu1 %v5124_v50  ;;  %4251 = vmatprep.subr.mxu0 %v5124_v50 }
 0x770   :  { %4241 = vmatpush3.msra.mxu1 %v6003_v57  ;;  %4242 = vmatprep.mubr.msk.f32.mxu1 %vm5125_vm1, %v5124_v50 }
 0x771   :  { %4252 = vmatpush3.msra.mxu0 %v6008_v56  ;;  %4253 = vmatprep.mubr.msk.f32.mxu0 %vm5125_vm1, %v5124_v50 }
 0x772   :  { %4256 = vmatprep.subr.mxu1 %v5124_v50  ;;  %4267 = vmatprep.subr.mxu0 %v5124_v50 }
 0x829   :  { %v2432_v24 = vpop.f32.mrf.mxu1  ;;  %v2574_v32 = vpop.f32.mrf.mxu0 }
 0x82a   :  { %v2437_v12 = vrot.slane %v2432_v24, 4  ;;  %v2438_v18 = vrot.slane %v2432_v24, 5  ;;  %v2439_v19 = vrot.slane %v2432_v24, 6  ;;  %v2440_v5 = vrot.slane %v2432_v24, 7 }
 0x82b   :  { %v2441_v58 = vrot.slane %v2432_v24, 1  ;;  %v2442_v27 = vrot.slane %v2432_v24, 2  ;;  %v2443_v36 = vrot.slane %v2432_v24, 3  ;;  %v2456_v40 = vadd.f32 %v2432_v24, %v5798_v52  ;;  %v4222_v51 = vpop.f32.mrf.mxu1  ;;  %v4233_v20 = vpop.f32.mrf.mxu0 }
 0x82c   :  { %v2452_v9 = vadd.f32 %v2437_v12, %v5788_v45  ;;  %v2453_v60 = vadd.f32 %v2438_v18, %v5792_v47  ;;  %v2454_v61 = vadd.f32 %v2439_v19, %v5796_v43  ;;  %v2455_v0 = vadd.f32 %v2440_v5, %v5794_v49 }
 0x82d   :  { %v2457_v2 = vadd.f32 %v2441_v58, %v5800_v10  ;;  %v2458_v3 = vadd.f32 %v2442_v27, %v5804_v8  ;;  %v3858_v11 = vmul.f32 -1.442695, %v2456_v40  ;;  %v2459_v13 = vadd.f32 %v2443_v36, %v5802_v54  ;;  %v6074_v58 = vld [vmem:[#allocation12] ss:$0 sm:$0xff] }
 0x82e   :  { %v3854_v14 = vmul.f32 -1.442695, %v2452_v9  ;;  %v3855_v62 = vmul.f32 -1.442695, %v2453_v60  ;;  %v3856_v34 = vmul.f32 -1.442695, %v2454_v61  ;;  %v2575_v27 = vadd.f32 %v6074_v58, %v2574_v32 }
 0x82f   :  { %v3857_v15 = vmul.f32 -1.442695, %v2455_v0  ;;  %4648 = vpow2.f32 %v3858_v11  ;;  %v3859_v35 = vmul.f32 -1.442695, %v2457_v2  ;;  %v3860_v17 = vmul.f32 -1.442695, %v2458_v3 }
 0x830   :  { %4650 = vpow2.f32 %v3854_v14  ;;  %v3861_v37 = vmul.f32 -1.442695, %v2459_v13  ;;  %v2579_v40 = vrot.slane %v2575_v27, 4  ;;  %v2580_v20 = vrot.slane %v2575_v27, 5 }
 0x831   :  { %4652 = vpow2.f32 %v3855_v62  ;;  %v2581_v61 = vrot.slane %v2575_v27, 6  ;;  %v2582_v3 = vrot.slane %v2575_v27, 7 }
 0x832   :  { %4654 = vpow2.f32 %v3856_v34 }
 0x833   :  { %4656 = vpow2.f32 %v3857_v15  ;;  %v2583_v15 = vrot.slane %v2575_v27, 1 }
 0x834   :  { %4658 = vpow2.f32 %v3859_v35 }
 0x835   :  { %4660 = vpow2.f32 %v3860_v17  ;;  %v2584_v17 = vrot.slane %v2575_v27, 2 }
 0x836   :  { %4662 = vpow2.f32 %v3861_v37 }
 0x83c   :  { %v4649_v48 = vpop.eup %4648 }
 0x83d   :  { %v4651_v23 = vpop.eup %4650  ;;  %v2488_v39 = vadd.f32 1.0, %v4649_v48 }
 0x83e   :  { %v4653_v25 = vpop.eup %4652  ;;  %v2484_v41 = vadd.f32 1.0, %v4651_v23  ;;  %v2585_v23 = vrot.slane %v2575_v27, 3 }
 0x83f   :  { %v4655_v26 = vpop.eup %4654  ;;  %v2485_v28 = vadd.f32 1.0, %v4653_v25  ;;  %4664 = vrcp.f32 %v2488_v39 }
 0x840   :  { %v4657_v6 = vpop.eup %4656  ;;  %v2486_v38 = vadd.f32 1.0, %v4655_v26  ;;  %4666 = vrcp.f32 %v2484_v41 }
 0x841   :  { %v4659_v22 = vpop.eup %4658  ;;  %v2487_v59 = vadd.f32 1.0, %v4657_v6  ;;  %4668 = vrcp.f32 %v2485_v28 }
 0x842   :  { %v4661_v24 = vpop.eup %4660  ;;  %v2489_v12 = vadd.f32 1.0, %v4659_v22  ;;  %4670 = vrcp.f32 %v2486_v38 }
 0x843   :  { %v4663_v18 = vpop.eup %4662  ;;  %v2490_v19 = vadd.f32 1.0, %v4661_v24  ;;  %4672 = vrcp.f32 %v2487_v59 }
 0x844   :  { %v2491_v5 = vadd.f32 1.0, %v4663_v18  ;;  %4674 = vrcp.f32 %v2489_v12 }
 0x845   :  { %4676 = vrcp.f32 %v2490_v19 }
 0x846   :  { %4678 = vrcp.f32 %v2491_v5 }
 0x84c   :  { %v4665_v36 = vpop.eup %4664 }
 0x84d   :  { %v4667_v51 = vpop.eup %4666  ;;  %v2598_v9 = vmul.f32 %v4665_v36, %v2575_v27 }
 0x84e   :  { %v4669_v60 = vpop.eup %4668  ;;  %v2594_v0 = vmul.f32 %v4667_v51, %v2579_v40 }
 0x84f   :  { %v4671_v2 = vpop.eup %4670  ;;  %v2595_v11 = vmul.f32 %v4669_v60, %v2580_v20  ;;  %v2606_v13 = vadd.f32 %v2598_v9, %v5833_v29 }
 0x850   :  { %v4673_v14 = vpop.eup %4672  ;;  %v2596_v62 = vmul.f32 %v4671_v2, %v2581_v61  ;;  %v2602_v34 = vadd.f32 %v2594_v0, %v5818_v63 }
 0x851   :  { %v4675_v35 = vpop.eup %4674  ;;  %v2603_v32 = vadd.f32 %v2595_v11, %v5821_v1  ;;  %4680 = vtanh.f32 %v2606_v13  ;;  %v2597_v37 = vmul.f32 %v4673_v14, %v2582_v3 }
 0x852   :  { %v4677_v48 = vpop.eup %4676  ;;  %v2599_v39 = vmul.f32 %v4675_v35, %v2583_v15  ;;  %v2604_v25 = vadd.f32 %v2596_v62, %v5827_v7  ;;  %4682 = vtanh.f32 %v2602_v34  ;;  %v2648_v15 = vpop.permute.xlu0 %2647 }
 0x853   :  { %v4679_v41 = vpop.eup %4678  ;;  %v2600_v26 = vmul.f32 %v4677_v48, %v2584_v17  ;;  %v2605_v28 = vadd.f32 %v2597_v37, %v5824_v4  ;;  %4684 = vtanh.f32 %v2603_v32  ;;  %v2620_v35 = vpop.permute.xlu1 %2619  ;;  %v2650_v37 = vmul.f32 %v2648_v15, %v6040_v44 }
 0x854   :  { %v2601_v6 = vmul.f32 %v4679_v41, %v2585_v23  ;;  %v2607_v38 = vadd.f32 %v2599_v39, %v5830_v53  ;;  %4686 = vtanh.f32 %v2604_v25 }
 0x855   :  { %v2608_v22 = vadd.f32 %v2600_v26, %v5840_v21  ;;  %4688 = vtanh.f32 %v2605_v28 }
 0x856   :  { %v2609_v59 = vadd.f32 %v2601_v6, %v5836_v16  ;;  %4690 = vtanh.f32 %v2607_v38 }
 0x857   :  { %4692 = vtanh.f32 %v2608_v22 }
 0x858   :  { %4694 = vtanh.f32 %v2609_v59 }
 0x85e   :  { %v4681_v24 = vpop.eup %4680 }
 0x85f   :  { %v4683_v12 = vpop.eup %4682 }
 0x860   :  { %v4685_v18 = vpop.eup %4684  ;;  %v2630_v19 = vrot.slane %v4683_v12, 4 }
 0x861   :  { %v4687_v5 = vpop.eup %4686  ;;  %v2631_v27 = vrot.slane %v4685_v18, 3 }
 0x862   :  { %v4689_v36 = vpop.eup %4688  ;;  %v2633_v40 = vrot.slane %v4687_v5, 2 }
 0x863   :  { %v4691_v51 = vpop.eup %4690  ;;  %v2632_v20 = vsel %vm710_vm13, %v2631_v27, %v2630_v19  ;;  %v2635_v9 = vrot.slane %v4689_v36, 1 }
 0x864   :  { %v4693_v60 = vpop.eup %4692  ;;  %v2634_v61 = vsel %vm713_vm12, %v2633_v40, %v2632_v20  ;;  %v2638_v3 = vrot.slane %v4691_v51, 7 }
 0x865   :  { %v4695_v0 = vpop.eup %4694  ;;  %v2636_v2 = vsel %vm716_vm9, %v2635_v9, %v2634_v61  ;;  %v2640_v13 = vrot.slane %v4693_v60, 6 }
 0x866   :  { %v2637_v11 = vsel %vm719_vm8, %v4681_v24, %v2636_v2  ;;  %v2642_v62 = vrot.slane %v4695_v0, 5 }
 0x867   :  { %v2639_v14 = vsel %vm6306_vm5, %v2638_v3, %v2637_v11  ;;  %vm6316_vm5 = vmmov %vm6307_vm10 }
 0x868   :  { %v2641_v34 = vsel %vm6307_vm10, %v2640_v13, %v2639_v14  ;;  %vm6317_vm10 = vmmov %vm6308_vm0 }
 0x869   :  { %v2643_v32 = vsel %vm6308_vm0, %v2642_v62, %v2641_v34  ;;  %vm6318_vm0 = vmmov %vm6304_vm2 }
 0x86a   :  { %v2645_v17 = vmul.f32 %v2643_v32, %v2620_v35 }
 0x86c   :  { %v6093_v48 = vadd.f32 %v2650_v37, %v2645_v17 }
 0x86e   :  { %4243 = vmatmul.mubr.msk.f32.vlgmr.msra.gmra.mxu1 %vm6309_vm4, %v6093_v48  ;;  %4254 = vmatmul.mubr.msk.f32.vlgmr.msra.gmra.mxu0 %vm6310_vm6, %v6093_v48  ;;  %vm6319_vm4 = vmmov %vm6318_vm0 }
 0x86f   :  { %4257 = vmatpush3.msra.mxu1 %v5970_v30  ;;  %4268 = vmatpush3.msra.mxu0 %v5973_v46  ;;  %vm6320_vm6 = vmmov %vm6318_vm0 }
 0x870   :  { %4258 = vmatprep.subr.mxu1 %v5124_v50  ;;  %4269 = vmatprep.subr.mxu0 %v5124_v50 }
 0x871   :  { %4259 = vmatpush3.msra.mxu1 %v5981_v31  ;;  %4270 = vmatpush3.msra.mxu0 %v5984_v42 }
 0x872   :  { %4260 = vmatprep.subr.mxu1 %v5124_v50  ;;  %4271 = vmatprep.subr.mxu0 %v5124_v50 }
 0x873   :  { %4261 = vmatpush3.msra.mxu1 %v5992_v55  ;;  %4272 = vmatpush3.msra.mxu0 %v5995_v33 }
 0x874   :  { %4262 = vmatprep.subr.mxu1 %v5124_v50  ;;  %4273 = vmatprep.subr.mxu0 %v5124_v50 }
 0x875   :  { %4263 = vmatpush3.msra.mxu1 %v6003_v57  ;;  %4264 = vmatprep.mubr.msk.f32.mxu1 %vm5125_vm1, %v5124_v50 }
 0x876   :  { %4274 = vmatpush3.msra.mxu0 %v6008_v56  ;;  %4275 = vmatprep.mubr.msk.f32.mxu0 %vm5125_vm1, %v5124_v50 }
 0x877   :  { %4278 = vmatprep.subr.mxu1 %v5124_v50  ;;  %4289 = vmatprep.subr.mxu0 %v5124_v50 }
 0x92e   :  { %v2721_v44 = vpop.f32.mrf.mxu1  ;;  %v2863_v23 = vpop.f32.mrf.mxu0 }
 0x92f   :  { %v2726_v39 = vrot.slane %v2721_v44, 3  ;;  %v2727_v25 = vrot.slane %v2721_v44, 4  ;;  %v2728_v41 = vrot.slane %v2721_v44, 5  ;;  %v2729_v26 = vrot.slane %v2721_v44, 6 }
 0x930   :  { %v2730_v28 = vrot.slane %v2721_v44, 7  ;;  %v2731_v6 = vrot.slane %v2721_v44, 1  ;;  %v2732_v38 = vrot.slane %v2721_v44, 2  ;;  %v2746_v22 = vadd.f32 %v2721_v44, %v5800_v10  ;;  %v4244_v59 = vpop.f32.mrf.mxu1  ;;  %v4255_v24 = vpop.f32.mrf.mxu0 }
 0x931   :  { %v2741_v12 = vadd.f32 %v2726_v39, %v5788_v45  ;;  %v2742_v18 = vadd.f32 %v2727_v25, %v5792_v47  ;;  %v2743_v19 = vadd.f32 %v2728_v41, %v5796_v43  ;;  %v2744_v5 = vadd.f32 %v2729_v26, %v5794_v49 }
 0x932   :  { %v2745_v27 = vadd.f32 %v2730_v28, %v5798_v52  ;;  %v2747_v36 = vadd.f32 %v2731_v6, %v5804_v8  ;;  %v3869_v40 = vmul.f32 -1.442695, %v2746_v22  ;;  %v2748_v51 = vadd.f32 %v2732_v38, %v5802_v54 }
 0x933   :  { %v3864_v20 = vmul.f32 -1.442695, %v2741_v12  ;;  %v3865_v9 = vmul.f32 -1.442695, %v2742_v18  ;;  %v3866_v60 = vmul.f32 -1.442695, %v2743_v19  ;;  %v2864_v6 = vadd.f32 %v6074_v58, %v2863_v23 }
 0x934   :  { %v3867_v61 = vmul.f32 -1.442695, %v2744_v5  ;;  %4696 = vpow2.f32 %v3869_v40  ;;  %v3868_v0 = vmul.f32 -1.442695, %v2745_v27  ;;  %v3870_v2 = vmul.f32 -1.442695, %v2747_v36 }
 0x935   :  { %4698 = vpow2.f32 %v3864_v20  ;;  %v3871_v3 = vmul.f32 -1.442695, %v2748_v51  ;;  %v2868_v22 = vrot.slane %v2864_v6, 3  ;;  %v2869_v24 = vrot.slane %v2864_v6, 4 }
 0x936   :  { %4700 = vpow2.f32 %v3865_v9  ;;  %v2870_v18 = vrot.slane %v2864_v6, 5  ;;  %v2871_v27 = vrot.slane %v2864_v6, 6  ;;  %v2872_v51 = vrot.slane %v2864_v6, 7 }
 0x937   :  { %4702 = vpow2.f32 %v3866_v60  ;;  %v2873_v23 = vrot.slane %v2864_v6, 1 }
 0x938   :  { %4704 = vpow2.f32 %v3867_v61 }
 0x939   :  { %4706 = vpow2.f32 %v3868_v0 }
 0x93a   :  { %4708 = vpow2.f32 %v3870_v2 }
 0x93b   :  { %4710 = vpow2.f32 %v3871_v3 }
 0x941   :  { %v4697_v11 = vpop.eup %4696 }
 0x942   :  { %v4699_v13 = vpop.eup %4698  ;;  %v2778_v14 = vadd.f32 1.0, %v4697_v11  ;;  %v2874_v11 = vrot.slane %v2864_v6, 2 }
 0x943   :  { %v4701_v62 = vpop.eup %4700  ;;  %v2773_v34 = vadd.f32 1.0, %v4699_v13 }
 0x944   :  { %v4703_v15 = vpop.eup %4702  ;;  %v2774_v35 = vadd.f32 1.0, %v4701_v62  ;;  %4712 = vrcp.f32 %v2778_v14 }
 0x945   :  { %v4705_v32 = vpop.eup %4704  ;;  %v2775_v17 = vadd.f32 1.0, %v4703_v15  ;;  %4714 = vrcp.f32 %v2773_v34 }
 0x946   :  { %v4707_v37 = vpop.eup %4706  ;;  %v2776_v44 = vadd.f32 1.0, %v4705_v32  ;;  %4716 = vrcp.f32 %v2774_v35 }
 0x947   :  { %v4709_v39 = vpop.eup %4708  ;;  %v2777_v25 = vadd.f32 1.0, %v4707_v37  ;;  %4718 = vrcp.f32 %v2775_v17 }
 0x948   :  { %v4711_v41 = vpop.eup %4710  ;;  %v2779_v26 = vadd.f32 1.0, %v4709_v39  ;;  %4720 = vrcp.f32 %v2776_v44 }
 0x949   :  { %v2780_v28 = vadd.f32 1.0, %v4711_v41  ;;  %4722 = vrcp.f32 %v2777_v25 }
 0x94a   :  { %4724 = vrcp.f32 %v2779_v26 }
 0x94b   :  { %4726 = vrcp.f32 %v2780_v28 }
 0x951   :  { %v4713_v38 = vpop.eup %4712 }
 0x952   :  { %v4715_v59 = vpop.eup %4714  ;;  %v2888_v61 = vmul.f32 %v4713_v38, %v2864_v6 }
 0x953   :  { %v4717_v12 = vpop.eup %4716  ;;  %v2883_v19 = vmul.f32 %v4715_v59, %v2868_v22  ;;  %v2909_v59 = vpop.permute.xlu1 %2908 }
 0x954   :  { %v4719_v5 = vpop.eup %4718  ;;  %v2884_v36 = vmul.f32 %v4717_v12, %v2869_v24  ;;  %v2896_v17 = vadd.f32 %v2888_v61, %v5830_v53 }
 0x955   :  { %v4721_v40 = vpop.eup %4720  ;;  %v2885_v20 = vmul.f32 %v4719_v5, %v2870_v18  ;;  %v2891_v9 = vadd.f32 %v2883_v19, %v5818_v63 }
 0x956   :  { %v4723_v60 = vpop.eup %4722  ;;  %v2892_v0 = vadd.f32 %v2884_v36, %v5821_v1  ;;  %v2886_v2 = vmul.f32 %v4721_v40, %v2871_v27 }
 0x957   :  { %v4725_v3 = vpop.eup %4724  ;;  %v2887_v13 = vmul.f32 %v4723_v60, %v2872_v51  ;;  %v2893_v14 = vadd.f32 %v2885_v20, %v5827_v7  ;;  %4728 = vtanh.f32 %v2891_v9 }
 0x958   :  { %v4727_v62 = vpop.eup %4726  ;;  %v2889_v34 = vmul.f32 %v4725_v3, %v2873_v23  ;;  %v2894_v15 = vadd.f32 %v2886_v2, %v5824_v4  ;;  %4730 = vtanh.f32 %v2892_v0  ;;  %v2937_v0 = vpop.permute.xlu1 %2936 }
 0x959   :  { %v2890_v35 = vmul.f32 %v4727_v62, %v2874_v11  ;;  %v2895_v32 = vadd.f32 %v2887_v13, %v5833_v29  ;;  %4732 = vtanh.f32 %v2893_v14  ;;  %v2939_v3 = vmul.f32 %v2937_v0, %v6093_v48 }
 0x95a   :  { %v2897_v37 = vadd.f32 %v2889_v34, %v5840_v21  ;;  %4734 = vtanh.f32 %v2894_v15 }
 0x95b   :  { %v2898_v44 = vadd.f32 %v2890_v35, %v5836_v16  ;;  %4736 = vtanh.f32 %v2895_v32 }
 0x95c   :  { %4738 = vtanh.f32 %v2897_v37 }
 0x95d   :  { %4740 = vtanh.f32 %v2898_v44 }
 0x95e   :  { %4742 = vtanh.f32 %v2896_v17 }
 0x964   :  { %v4729_v39 = vpop.eup %4728 }
 0x965   :  { %v4731_v25 = vpop.eup %4730  ;;  %v2919_v41 = vrot.slane %v4729_v39, 5 }
 0x966   :  { %v4733_v26 = vpop.eup %4732  ;;  %v2920_v28 = vrot.slane %v4731_v25, 4 }
 0x967   :  { %v4735_v6 = vpop.eup %4734  ;;  %v2922_v38 = vrot.slane %v4733_v26, 3 }
 0x968   :  { %v4737_v22 = vpop.eup %4736  ;;  %v2921_v24 = vsel %vm710_vm13, %v2920_v28, %v2919_v41  ;;  %v2924_v12 = vrot.slane %v4735_v6, 2 }
 0x969   :  { %v4739_v18 = vpop.eup %4738  ;;  %v2923_v19 = vsel %vm713_vm12, %v2922_v38, %v2921_v24  ;;  %v2926_v5 = vrot.slane %v4737_v22, 1 }
 0x96a   :  { %v4741_v27 = vpop.eup %4740  ;;  %v2925_v36 = vsel %vm716_vm9, %v2924_v12, %v2923_v19  ;;  %v2929_v20 = vrot.slane %v4739_v18, 7 }
 0x96b   :  { %v4743_v40 = vpop.eup %4742  ;;  %v2927_v51 = vsel %vm719_vm8, %v2926_v5, %v2925_v36  ;;  %v2931_v60 = vrot.slane %v4741_v27, 6 }
 0x96c   :  { %v2928_v9 = vsel %vm6311_vm7, %v4743_v40, %v2927_v51  ;;  %vm6321_vm7 = vmmov %vm6315_vm3 }
 0x96d   :  { %v2930_v61 = vsel %vm6312_vm11, %v2929_v20, %v2928_v9  ;;  %vm6322_vm11 = vmmov %vm6316_vm5 }
 0x96e   :  { %v2932_v23 = vsel %vm6313_vm14, %v2931_v60, %v2930_v61 }
 0x96f   :  { %v2934_v2 = vmul.f32 %v2932_v23, %v2909_v59 }
 0x971   :  { %v6144_v11 = vadd.f32 %v2939_v3, %v2934_v2 }
 0x973   :  { %4265 = vmatmul.mubr.msk.f32.vlgmr.msra.gmra.mxu1 %vm6314_vm15, %v6144_v11  ;;  %4276 = vmatmul.mubr.msk.f32.vlgmr.msra.gmra.mxu0 %vm6304_vm2, %v6144_v11 }
 0x974   :  { %4279 = vmatpush3.msra.mxu1 %v5970_v30  ;;  %4290 = vmatpush3.msra.mxu0 %v5973_v46 }
 0x975   :  { %4280 = vmatprep.subr.mxu1 %v5124_v50  ;;  %4291 = vmatprep.subr.mxu0 %v5124_v50 }
 0x976   :  { %4281 = vmatpush3.msra.mxu1 %v5981_v31  ;;  %4292 = vmatpush3.msra.mxu0 %v5984_v42 }
 0x977   :  { %4282 = vmatprep.subr.mxu1 %v5124_v50  ;;  %4293 = vmatprep.subr.mxu0 %v5124_v50 }
 0x978   :  { %4283 = vmatpush3.msra.mxu1 %v5992_v55  ;;  %4294 = vmatpush3.msra.mxu0 %v5995_v33 }
 0x979   :  { %4284 = vmatprep.subr.mxu1 %v5124_v50  ;;  %4295 = vmatprep.subr.mxu0 %v5124_v50 }
 0x97a   :  { %4285 = vmatpush3.msra.mxu1 %v6003_v57  ;;  %4286 = vmatprep.mubr.msk.f32.mxu1 %vm5125_vm1, %v5124_v50 }
 0x97b   :  { %4296 = vmatpush3.msra.mxu0 %v6008_v56  ;;  %4297 = vmatprep.mubr.msk.f32.mxu0 %vm5125_vm1, %v5124_v50 }
 0x97c   :  { %4300 = vmatprep.subr.mxu1 %v5124_v50  ;;  %4311 = vmatprep.subr.mxu0 %v5124_v50 }
 0xa33   :  { %v3010_v30 = vpop.f32.mrf.mxu1  ;;  %v3152_v46 = vpop.f32.mrf.mxu0 }
 0xa34   :  { %v3015_v31 = vrot.slane %v3010_v30, 2  ;;  %v3016_v42 = vrot.slane %v3010_v30, 3  ;;  %v3017_v55 = vrot.slane %v3010_v30, 4  ;;  %v3018_v33 = vrot.slane %v3010_v30, 5 }
 0xa35   :  { %v3019_v48 = vrot.slane %v3010_v30, 6  ;;  %v3020_v57 = vrot.slane %v3010_v30, 7  ;;  %v3021_v13 = vrot.slane %v3010_v30, 1  ;;  %v3036_v14 = vadd.f32 %v3010_v30, %v5804_v8  ;;  %v4266_v62 = vpop.f32.mrf.mxu1  ;;  %v4277_v56 = vpop.f32.mrf.mxu0 }
 0xa36   :  { %v3030_v34 = vadd.f32 %v3015_v31, %v5788_v45  ;;  %v3031_v15 = vadd.f32 %v3016_v42, %v5792_v47  ;;  %v3032_v35 = vadd.f32 %v3017_v55, %v5796_v43  ;;  %v3033_v32 = vadd.f32 %v3018_v33, %v5794_v49 }
 0xa37   :  { %v3034_v17 = vadd.f32 %v3019_v48, %v5798_v52  ;;  %v3035_v37 = vadd.f32 %v3020_v57, %v5800_v10  ;;  %v3880_v44 = vmul.f32 -1.442695, %v3036_v14  ;;  %v3037_v39 = vadd.f32 %v3021_v13, %v5802_v54 }
 0xa38   :  { %v3874_v25 = vmul.f32 -1.442695, %v3030_v34  ;;  %v3875_v41 = vmul.f32 -1.442695, %v3031_v15  ;;  %v3876_v26 = vmul.f32 -1.442695, %v3032_v35  ;;  %v3153_v2 = vadd.f32 %v6074_v58, %v3152_v46 }
 0xa39   :  { %v3877_v28 = vmul.f32 -1.442695, %v3033_v32  ;;  %4744 = vpow2.f32 %v3880_v44  ;;  %v3878_v6 = vmul.f32 -1.442695, %v3034_v17  ;;  %v3879_v38 = vmul.f32 -1.442695, %v3035_v37 }
 0xa3a   :  { %4746 = vpow2.f32 %v3874_v25  ;;  %v3881_v22 = vmul.f32 -1.442695, %v3037_v39  ;;  %v3157_v30 = vrot.slane %v3153_v2, 2  ;;  %v3158_v42 = vrot.slane %v3153_v2, 3 }
 0xa3b   :  { %4748 = vpow2.f32 %v3875_v41  ;;  %v3159_v33 = vrot.slane %v3153_v2, 4  ;;  %v3160_v13 = vrot.slane %v3153_v2, 5  ;;  %v3161_v56 = vrot.slane %v3153_v2, 6 }
 0xa3c   :  { %4750 = vpow2.f32 %v3876_v26  ;;  %v3162_v17 = vrot.slane %v3153_v2, 7  ;;  %v3163_v46 = vrot.slane %v3153_v2, 1 }
 0xa3d   :  { %4752 = vpow2.f32 %v3877_v28 }
 0xa3e   :  { %4754 = vpow2.f32 %v3878_v6 }
 0xa3f   :  { %4756 = vpow2.f32 %v3879_v38 }
 0xa40   :  { %4758 = vpow2.f32 %v3881_v22 }
 0xa46   :  { %v4745_v59 = vpop.eup %4744 }
 0xa47   :  { %v4747_v24 = vpop.eup %4746  ;;  %v3068_v12 = vadd.f32 1.0, %v4745_v59 }
 0xa48   :  { %v4749_v18 = vpop.eup %4748  ;;  %v3062_v19 = vadd.f32 1.0, %v4747_v24 }
 0xa49   :  { %v4751_v5 = vpop.eup %4750  ;;  %v3063_v27 = vadd.f32 1.0, %v4749_v18  ;;  %4760 = vrcp.f32 %v3068_v12 }
 0xa4a   :  { %v4753_v36 = vpop.eup %4752  ;;  %v3064_v40 = vadd.f32 1.0, %v4751_v5  ;;  %4762 = vrcp.f32 %v3062_v19 }
 0xa4b   :  { %v4755_v51 = vpop.eup %4754  ;;  %v3065_v20 = vadd.f32 1.0, %v4753_v36  ;;  %4764 = vrcp.f32 %v3063_v27 }
 0xa4c   :  { %v4757_v9 = vpop.eup %4756  ;;  %v3066_v60 = vadd.f32 1.0, %v4755_v51  ;;  %4766 = vrcp.f32 %v3064_v40 }
 0xa4d   :  { %v4759_v61 = vpop.eup %4758  ;;  %v3067_v0 = vadd.f32 1.0, %v4757_v9  ;;  %4768 = vrcp.f32 %v3065_v20 }
 0xa4e   :  { %v3069_v23 = vadd.f32 1.0, %v4759_v61  ;;  %4770 = vrcp.f32 %v3066_v60 }
 0xa4f   :  { %4772 = vrcp.f32 %v3067_v0 }
 0xa50   :  { %4774 = vrcp.f32 %v3069_v23 }
 0xa56   :  { %v4761_v3 = vpop.eup %4760 }
 0xa57   :  { %v4763_v31 = vpop.eup %4762  ;;  %v3178_v39 = vmul.f32 %v4761_v3, %v3153_v2 }
 0xa58   :  { %v4765_v55 = vpop.eup %4764  ;;  %v3172_v48 = vmul.f32 %v4763_v31, %v3157_v30 }
 0xa59   :  { %v4767_v57 = vpop.eup %4766  ;;  %v3173_v14 = vmul.f32 %v4765_v55, %v3158_v42  ;;  %v3186_v24 = vadd.f32 %v3178_v39, %v5840_v21  ;;  %v4849_v39 = vld [vmem:[#allocation6] sm:$0xff] }
 0xa5a   :  { %v4769_v62 = vpop.eup %4768  ;;  %v3174_v34 = vmul.f32 %v4767_v57, %v3159_v33  ;;  %v3180_v15 = vadd.f32 %v3172_v48, %v5818_v63  ;;  %v3198_v57 = vpop.permute.xlu0 %3197 }
 0xa5b   :  { %v4771_v35 = vpop.eup %4770  ;;  %v3181_v32 = vadd.f32 %v3173_v14, %v5821_v1  ;;  %v3175_v37 = vmul.f32 %v4769_v62, %v3160_v13  ;;  %v3226_v13 = vpop.permute.xlu1 %3225 }
 0xa5c   :  { %v4773_v44 = vpop.eup %4772  ;;  %v3176_v25 = vmul.f32 %v4771_v35, %v3161_v56  ;;  %v3182_v41 = vadd.f32 %v3174_v34, %v5827_v7  ;;  %4776 = vtanh.f32 %v3180_v15  ;;  %v3228_v56 = vmul.f32 %v3226_v13, %v6144_v11  ;;  %v3526_v15 = vld [vmem:[#allocation15 + $0x18] sm:$0xff]  ;;  %v3521_v11 = vld [vmem:[#allocation14 + $0x10] sm:$0xff] }
 0xa5d   :  { %v4775_v26 = vpop.eup %4774  ;;  %v3177_v28 = vmul.f32 %v4773_v44, %v3162_v17  ;;  %v3183_v6 = vadd.f32 %v3175_v37, %v5824_v4  ;;  %4778 = vtanh.f32 %v3181_v32  ;;  %v3522_v35 = vld [vmem:[#allocation14 + $0x18] sm:$0xff]  ;;  %v3525_v32 = vld [vmem:[#allocation15 + $0x10] sm:$0xff]  ;;  %v3524_v17 = vld [vmem:[#allocation15 + $0x8] sm:$0xff] }
 0xa5e   :  { %v3179_v38 = vmul.f32 %v4775_v26, %v3163_v46  ;;  %v3184_v22 = vadd.f32 %v3176_v25, %v5833_v29  ;;  %4780 = vtanh.f32 %v3182_v41  ;;  %v3520_v46 = vld [vmem:[#allocation14 + $0x8] sm:$0xff]  ;;  %v3523_v37 = vld [vmem:[#allocation15] sm:$0xff] }
 0xa5f   :  { %v3185_v59 = vadd.f32 %v3177_v28, %v5830_v53  ;;  %4782 = vtanh.f32 %v3183_v6  ;;  %v3519_v44 = vld [vmem:[#allocation14] sm:$0xff] }
 0xa60   :  { %v3187_v12 = vadd.f32 %v3179_v38, %v5836_v16  ;;  %4784 = vtanh.f32 %v3184_v22 }
 0xa61   :  { %4786 = vtanh.f32 %v3185_v59 }
 0xa62   :  { %4788 = vtanh.f32 %v3187_v12 }
 0xa63   :  { %4790 = vtanh.f32 %v3186_v24 }
 0xa69   :  { %v4777_v18 = vpop.eup %4776 }
 0xa6a   :  { %v4779_v19 = vpop.eup %4778  ;;  %v3208_v5 = vrot.slane %v4777_v18, 6 }
 0xa6b   :  { %v4781_v27 = vpop.eup %4780  ;;  %v3209_v36 = vrot.slane %v4779_v19, 5 }
 0xa6c   :  { %v4783_v40 = vpop.eup %4782  ;;  %v3211_v51 = vrot.slane %v4781_v27, 4 }
 0xa6d   :  { %v4785_v20 = vpop.eup %4784  ;;  %v3210_v9 = vsel %vm710_vm13, %v3209_v36, %v3208_v5  ;;  %v3213_v60 = vrot.slane %v4783_v40, 3 }
 0xa6e   :  { %v4787_v61 = vpop.eup %4786  ;;  %v3212_v0 = vsel %vm713_vm12, %v3211_v51, %v3210_v9  ;;  %v3215_v23 = vrot.slane %v4785_v20, 2 }
 0xa6f   :  { %v4789_v2 = vpop.eup %4788  ;;  %v3214_v3 = vsel %vm716_vm9, %v3213_v60, %v3212_v0  ;;  %v3217_v30 = vrot.slane %v4787_v61, 1 }
 0xa70   :  { %v3216_v31 = vsel %vm719_vm8, %v3215_v23, %v3214_v3  ;;  %v4791_v42 = vpop.eup %4790  ;;  %v3220_v33 = vrot.slane %v4789_v2, 7 }
 0xa71   :  { %v3218_v55 = vsel %vm6315_vm3, %v3217_v30, %v3216_v31 }
 0xa72   :  { %v3219_v48 = vsel %vm6316_vm5, %v4791_v42, %v3218_v55 }
 0xa73   :  { %v3221_v14 = vsel %vm6317_vm10, %v3220_v33, %v3219_v48 }
 0xa74   :  { %v3223_v62 = vmul.f32 %v3221_v14, %v3198_v57 }
 0xa76   :  { %v6195_v34 = vadd.f32 %v3228_v56, %v3223_v62 }
 0xa78   :  { %4287 = vmatmul.mubr.msk.f32.vlgmr.msra.gmra.mxu1 %vm6318_vm0, %v6195_v34  ;;  %4298 = vmatmul.mubr.msk.f32.vlgmr.msra.gmra.mxu0 %vm6319_vm4, %v6195_v34 }
 0xa79   :  { %4308 = vmatprep.mubr.msk.f32.mxu1 %vm5125_vm1, %v5124_v50  ;;  %4319 = vmatprep.mubr.msk.f32.mxu0 %vm5125_vm1, %v5124_v50 }
 0xa7a   :  { %4301 = vmatpush3.msra.mxu1 %v3526_v15  ;;  %4312 = vmatpush3.msra.mxu0 %v3522_v35 }
 0xa7b   :  { %4302 = vmatprep.subr.mxu1 %v5124_v50  ;;  %4313 = vmatprep.subr.mxu0 %v5124_v50 }
 0xa7c   :  { %4303 = vmatpush3.msra.mxu1 %v3525_v32  ;;  %4314 = vmatpush3.msra.mxu0 %v3521_v11 }
 0xa7d   :  { %4304 = vmatprep.subr.mxu1 %v5124_v50  ;;  %4315 = vmatprep.subr.mxu0 %v5124_v50 }
 0xa7e   :  { %4305 = vmatpush3.msra.mxu1 %v3524_v17  ;;  %4316 = vmatpush3.msra.mxu0 %v3520_v46 }
 0xa7f   :  { %4306 = vmatprep.subr.mxu1 %v5124_v50  ;;  %4317 = vmatprep.subr.mxu0 %v5124_v50 }
 0xa80   :  { %4307 = vmatpush3.msra.mxu1 %v3523_v37  ;;  %4318 = vmatpush3.msra.mxu0 %v3519_v44 }
 0xa81   :  { %4322 = vmatprep.subr.mxu1 %v5124_v50  ;;  %4320 = vmatmul.mubr.msk.f32.vlgmr.msra.gmra.mxu0 %vm6320_vm6, %v4849_v39 }
 0xb38   :  { %v3299_v25 = vpop.f32.mrf.mxu1  ;;  %v3441_v41 = vpop.f32.mrf.mxu0 }
 0xb39   :  { %v3304_v26 = vrot.slane %v3299_v25, 1  ;;  %v3305_v28 = vrot.slane %v3299_v25, 2  ;;  %v3306_v6 = vrot.slane %v3299_v25, 3  ;;  %v3307_v38 = vrot.slane %v3299_v25, 4 }
 0xb3a   :  { %v3308_v22 = vrot.slane %v3299_v25, 5  ;;  %v3309_v59 = vrot.slane %v3299_v25, 6  ;;  %v3310_v24 = vrot.slane %v3299_v25, 7  ;;  %v3326_v12 = vadd.f32 %v3299_v25, %v5802_v54  ;;  %v4288_v18 = vpop.f32.mrf.mxu1  ;;  %v4299_v19 = vpop.f32.mrf.mxu0 }
 0xb3b   :  { %v3319_v5 = vadd.f32 %v3304_v26, %v5788_v45  ;;  %v3320_v27 = vadd.f32 %v3305_v28, %v5792_v47  ;;  %v3321_v36 = vadd.f32 %v3306_v6, %v5796_v43  ;;  %v3322_v40 = vadd.f32 %v3307_v38, %v5794_v49 }
 0xb3c   :  { %v3323_v51 = vadd.f32 %v3308_v22, %v5798_v52  ;;  %v3324_v20 = vadd.f32 %v3309_v59, %v5800_v10  ;;  %v3891_v9 = vmul.f32 -1.442695, %v3326_v12  ;;  %v3325_v60 = vadd.f32 %v3310_v24, %v5804_v8 }
 0xb3d   :  { %v3884_v61 = vmul.f32 -1.442695, %v3319_v5  ;;  %v3885_v0 = vmul.f32 -1.442695, %v3320_v27  ;;  %v3886_v54 = vmul.f32 -1.442695, %v3321_v36  ;;  %v3442_v56 = vadd.f32 %v6074_v58, %v3441_v41 }
 0xb3e   :  { %v3887_v23 = vmul.f32 -1.442695, %v3322_v40  ;;  %4792 = vpow2.f32 %v3891_v9  ;;  %v3888_v45 = vmul.f32 -1.442695, %v3323_v51  ;;  %v3889_v47 = vmul.f32 -1.442695, %v3324_v20 }
 0xb3f   :  { %4794 = vpow2.f32 %v3884_v61  ;;  %v3890_v43 = vmul.f32 -1.442695, %v3325_v60  ;;  %v3446_v35 = vrot.slane %v3442_v56, 1  ;;  %v3447_v11 = vrot.slane %v3442_v56, 2 }
 0xb40   :  { %4796 = vpow2.f32 %v3885_v0  ;;  %v3448_v46 = vrot.slane %v3442_v56, 3  ;;  %v3449_v39 = vrot.slane %v3442_v56, 4  ;;  %v3450_v28 = vrot.slane %v3442_v56, 5 }
 0xb41   :  { %4798 = vpow2.f32 %v3886_v54  ;;  %v3451_v24 = vrot.slane %v3442_v56, 6  ;;  %v3452_v12 = vrot.slane %v3442_v56, 7 }
 0xb42   :  { %4800 = vpow2.f32 %v3887_v23 }
 0xb43   :  { %4802 = vpow2.f32 %v3888_v45 }
 0xb44   :  { %4804 = vpow2.f32 %v3889_v47 }
 0xb45   :  { %4806 = vpow2.f32 %v3890_v43 }
 0xb4b   :  { %v4793_v49 = vpop.eup %4792 }
 0xb4c   :  { %v4795_v52 = vpop.eup %4794  ;;  %v3358_v10 = vadd.f32 1.0, %v4793_v49 }
 0xb4d   :  { %v4797_v2 = vpop.eup %4796  ;;  %v3351_v8 = vadd.f32 1.0, %v4795_v52 }
 0xb4e   :  { %v4799_v3 = vpop.eup %4798  ;;  %v3352_v30 = vadd.f32 1.0, %v4797_v2  ;;  %4808 = vrcp.f32 %v3358_v10 }
 0xb4f   :  { %v4801_v31 = vpop.eup %4800  ;;  %v3353_v42 = vadd.f32 1.0, %v4799_v3  ;;  %4810 = vrcp.f32 %v3351_v8 }
 0xb50   :  { %v4803_v55 = vpop.eup %4802  ;;  %v3354_v33 = vadd.f32 1.0, %v4801_v31  ;;  %4812 = vrcp.f32 %v3352_v30  ;;  %v3515_v31 = vpop.permute.xlu0 %3514 }
 0xb51   :  { %v4805_v48 = vpop.eup %4804  ;;  %v3355_v57 = vadd.f32 1.0, %v4803_v55  ;;  %4814 = vrcp.f32 %v3353_v42  ;;  %v3487_v42 = vpop.permute.xlu1 %3486 }
 0xb52   :  { %v4807_v13 = vpop.eup %4806  ;;  %v3356_v14 = vadd.f32 1.0, %v4805_v48  ;;  %4816 = vrcp.f32 %v3354_v33  ;;  %v3517_v48 = vmul.f32 %v3515_v31, %v6195_v34  ;;  %v4850_v34 = vld [vmem:[#allocation3] sm:$0xff] }
 0xb53   :  { %v3357_v62 = vadd.f32 1.0, %v4807_v13  ;;  %4818 = vrcp.f32 %v3355_v57  ;;  %v3675_v13 = vld [vmem:[#allocation17 + $0x18] sm:$0xff] }
 0xb54   :  { %4820 = vrcp.f32 %v3356_v14  ;;  %v3674_v14 = vld [vmem:[#allocation17 + $0x10] sm:$0xff] }
 0xb55   :  { %4822 = vrcp.f32 %v3357_v62  ;;  %v3673_v62 = vld [vmem:[#allocation17 + $0x8] sm:$0xff] }
 0xb5b   :  { %v4809_v15 = vpop.eup %4808 }
 0xb5c   :  { %v4811_v32 = vpop.eup %4810  ;;  %v3468_v27 = vmul.f32 %v4809_v15, %v3442_v56  ;;  %v3672_v56 = vld [vmem:[#allocation17] sm:$0xff]  ;;  %v3668_v15 = vpop.f32.mrf.mxu0 }
 0xb5d   :  { %v4813_v17 = vpop.eup %4812  ;;  %v3461_v37 = vmul.f32 %v4811_v32, %v3446_v35 }
 0xb5e   :  { %v4815_v44 = vpop.eup %4814  ;;  %v3462_v25 = vmul.f32 %v4813_v17, %v3447_v11  ;;  %v3476_v9 = vadd.f32 %v3468_v27, %v5836_v16  ;;  %v4321_v35 = vpop.f32.mrf.mxu0 }
 0xb5f   :  { %v4817_v26 = vpop.eup %4816  ;;  %v3463_v6 = vmul.f32 %v4815_v44, %v3448_v46  ;;  %v3469_v38 = vadd.f32 %v3461_v37, %v5818_v63 }
 0xb60   :  { %v4819_v22 = vpop.eup %4818  ;;  %v3470_v59 = vadd.f32 %v3462_v25, %v5821_v1  ;;  %v3464_v58 = vmul.f32 %v4817_v26, %v3449_v39 }
 0xb61   :  { %v4821_v41 = vpop.eup %4820  ;;  %v3465_v18 = vmul.f32 %v4819_v22, %v3450_v28  ;;  %v3471_v19 = vadd.f32 %v3463_v6, %v5827_v7  ;;  %4824 = vtanh.f32 %v3469_v38 }
 0xb62   :  { %v4823_v5 = vpop.eup %4822  ;;  %v3466_v36 = vmul.f32 %v4821_v41, %v3451_v24  ;;  %v3472_v40 = vadd.f32 %v3464_v58, %v5824_v4  ;;  %4826 = vtanh.f32 %v3470_v59 }
 0xb63   :  { %v3467_v51 = vmul.f32 %v4823_v5, %v3452_v12  ;;  %v3473_v63 = vadd.f32 %v3465_v18, %v5833_v29  ;;  %4828 = vtanh.f32 %v3471_v19 }
 0xb64   :  { %v3474_v1 = vadd.f32 %v3466_v36, %v5830_v53  ;;  %4830 = vtanh.f32 %v3472_v40 }
 0xb65   :  { %v3475_v20 = vadd.f32 %v3467_v51, %v5840_v21  ;;  %4832 = vtanh.f32 %v3473_v63 }
 0xb66   :  { %4834 = vtanh.f32 %v3474_v1 }
 0xb67   :  { %4836 = vtanh.f32 %v3475_v20 }
 0xb68   :  { %4838 = vtanh.f32 %v3476_v9 }
 0xb6e   :  { %v4825_v7 = vpop.eup %4824 }
 0xb6f   :  { %v4827_v60 = vpop.eup %4826  ;;  %v3497_v61 = vrot.slane %v4825_v7, 7 }
 0xb70   :  { %v4829_v4 = vpop.eup %4828  ;;  %v3498_v0 = vrot.slane %v4827_v60, 6 }
 0xb71   :  { %v4831_v54 = vpop.eup %4830  ;;  %v3500_v23 = vrot.slane %v4829_v4, 5 }
 0xb72   :  { %v4833_v29 = vpop.eup %4832  ;;  %v3499_v45 = vsel %vm710_vm13, %v3498_v0, %v3497_v61  ;;  %v3502_v53 = vrot.slane %v4831_v54, 4  ;;  %vm6323_vm13 = vmmov %vm6317_vm10 }
 0xb73   :  { %v4835_v47 = vpop.eup %4834  ;;  %v3501_v21 = vsel %vm713_vm12, %v3500_v23, %v3499_v45  ;;  %v3504_v43 = vrot.slane %v4833_v29, 3  ;;  %vm6324_vm12 = vmmov %vm6318_vm0 }
 0xb74   :  { %v4837_v49 = vpop.eup %4836  ;;  %v3503_v16 = vsel %vm716_vm9, %v3502_v53, %v3501_v21  ;;  %v3506_v52 = vrot.slane %v4835_v47, 2 }
 0xb75   :  { %v3505_v10 = vsel %vm719_vm8, %v3504_v43, %v3503_v16  ;;  %v3508_v2 = vrot.slane %v4837_v49, 1  ;;  %v4839_v3 = vpop.eup %4838  ;;  %vm6325_vm8 = vmmov %vm6318_vm0 }
 0xb76   :  { %v3507_v8 = vsel %vm6321_vm7, %v3506_v52, %v3505_v10 }
 0xb77   :  { %v3509_v30 = vsel %vm6322_vm11, %v3508_v2, %v3507_v8 }
 0xb78   :  { %v3510_v55 = vsel %vm6323_vm13, %v4839_v3, %v3509_v30 }
 0xb79   :  { %v3512_v33 = vmul.f32 %v3510_v55, %v3487_v42 }
 0xb7b   :  { %v3518_v57 = vadd.f32 %v3517_v48, %v3512_v33 }
 0xb7d   :  { %4309 = vmatmul.mubr.msk.f32.vlgmr.msra.gmra.mxu1 %vm6324_vm12, %v3518_v57 }
 0xb7e   :  { %4323 = vmatpush3.msra.mxu1 %v3675_v13  ;;  %4330 = vmatprep.mubr.msk.f32.mxu1 %vm5125_vm1, %v5124_v50 }
 0xb7f   :  { %4324 = vmatprep.subr.mxu1 %v5124_v50 }
 0xb80   :  { %4325 = vmatpush3.msra.mxu1 %v3674_v14 }
 0xb81   :  { %4326 = vmatprep.subr.mxu1 %v5124_v50 }
 0xb82   :  { %4327 = vmatpush3.msra.mxu1 %v3673_v62 }
 0xb83   :  { %4328 = vmatprep.subr.mxu1 %v5124_v50 }
 0xb84   :  { %4329 = vmatpush3.msra.mxu1 %v3672_v56 }
 0xb85   :  { %4331 = vmatmul.mubr.msk.f32.vlgmr.msra.gmra.mxu1 %vm6325_vm8, %v4850_v34 }
 0xb86   :  { %5062 = shalt.err (!%p5059_p12)
}
 0xb87   :  { %3778 = dma.vmem_to_hbm [thread:$0]  %s3776_s10, 128, %s6271_s19, [#allocation22]   ;;  %v3896_v46 = vld [vmem:[#allocation18] ss:$0 sm:$0xff]  ;;  %vm6326_vm9 = vmmov %vm6318_vm0 }
 0xb88   :  { %s5134_s23 = smov [#allocation20]  }
 0xb89   :  { %s3765_s0 = sshll.u32 %s5134_s23, 4  ;;  %s3766_s0 = int_to_ptr.vmem [resolvable:$true] %s3765_s0 }
 0xb8a   :  { %s5071_s30 = scalar_lea.vmem %s3766_s0, 128  ;;  %p5076_p0 = scmp.lt.s32.totalorder %s3766_s0, %s3766_s0 }
 0xb8b   :  { %p5072_p13 = scmp.ne.s32.totalorder %s3766_s0, %s5071_s30  ;;  %p5077_p1 = scmp.lt.s32.totalorder %s5071_s30, %s5071_s30 }
 0xb8d   :  { %p5078_p2 = por %p5077_p1, %p5076_p0 }
 0xb8f   :  { %p5079_p3 = pnand %p5078_p2, %p5072_p13 }
 0xc3d   :  { %v3596_v50 = vpop.f32.mrf.mxu1 }
 0xc3e   :  { %v3669_v11 = vadd.f32 %v3668_v15, %v3596_v50 }
 0xc3f   :  { %v4310_v32 = vpop.f32.mrf.mxu1 }
 0xc45   :  { %v3744_v17 = vpop.f32.mrf.mxu1 }
 0xc46   :  { %v3748_v37 = vadd.f32 %v3744_v17, %v3669_v11 }
 0xc47   :  { %v4332_v44 = vpop.f32.mrf.mxu1 }
 0xc48   :  { %v3756_v39 = vadd.f32 %v3896_v46, %v3748_v37 }
 0xc4a   :  { %v3757_v25 = vmax.f32 %v3756_v39, 0.0 }
 0xc4c   :  { %3758 = vst.msk [vmem:[#allocation20] sm:$0xff] %vm6326_vm9, %v3757_v25 }
 0xc4d   :  { %5082 = shalt.err (!%p5079_p3)
}
 0xc4e   :  { %3768 = dma.vmem_to_hbm [thread:$0]  %s3766_s0, 128, %s6270_s18, [#allocation5]  }
 0xc4f   :  { %5103 = dma.done.wait [#allocation5], 128  }
 0xc50   :  { %5104 = vsyncadd [#allocation5], 4294967168 }
 0xc51   :  { %5105 = dma.done.wait [#allocation22], 128  }
 0xc52   :  { %5106 = vsyncadd [#allocation22], 4294967168 }
 0xc53   :  { %3785 = vsyncpa [#allocation4], 1 }
 0xc54   :  { %3786 = vsyncpa [#allocation7], 1 }
 0xc55   :  { %3787 = vsyncpa [#allocation10], 1 }
 0xc56   :  { %3788 = vsyncpa [#allocation13], 1 }
 0xc57   :  { %3789 = vsyncpa [#allocation16], 1 }
 0xc58   :  { %3790 = vsyncpa [#allocation19], 1 }
 0xc59   :  { %3791 = vsyncpa [#allocation5], 1 }
 0xc5a   :  { %3792 = vsyncpa [#allocation22], 1 }

</bundles_post_ra>
